<compile_context>
chip_gen: v7x
topology: tpu7x:2x2x1
jax: 0.10.0
libtpu: 0.0.40
codegen_flags: <defaults>
</compile_context>

<pallas_src>
import jax
import jax.numpy as jnp
from jax import lax
from jax.experimental import pallas as pl
from jax.experimental.pallas import tpu as pltpu


CHANNELS = [4, 8, 16, 32, 64]
KSIZE = 4
STRIDE = 2


# ---------------------------------------------------------------------------
# Fused Pallas kernel
# ---------------------------------------------------------------------------
def _conv_relu(xs, w_ref, b_ref):
    """One Conv1d(k=4, s=2, pad=0) + ReLU on a list-of-timestep activation.

    xs    : python list (length L) of (Cin, Nt) f32 values (batch on lanes).
    w_ref : (K, Cout, Cin) VMEM ref (pre-packed weight).
    b_ref : (Cout, 1) VMEM ref.
    returns python list (length T) of (Cout, Nt) values.
    """
    K, Cout, Cin = w_ref.shape
    L = len(xs)
    T = (L - K) // STRIDE + 1
    ws = [w_ref[k] for k in range(K)]     # load each (Cout, Cin) slab once
    b = b_ref[...]                        # (Cout, 1), broadcast over lanes
    ys = []
    for t in range(T):
        s = STRIDE * t
        d0 = jnp.dot(ws[0], xs[s + 0], preferred_element_type=jnp.float32)
        d1 = jnp.dot(ws[1], xs[s + 1], preferred_element_type=jnp.float32)
        d2 = jnp.dot(ws[2], xs[s + 2], preferred_element_type=jnp.float32)
        d3 = jnp.dot(ws[3], xs[s + 3], preferred_element_type=jnp.float32)
        acc = (d0 + d1) + (d2 + d3) + b
        ys.append(jnp.maximum(acc, 0.0))  # (Cout, Nt)
    return ys


def _mannet_kernel(x_ref, w0, b0, w1, b1, w2, b2, w3, b3, wo_ref, bo_ref,
                   o_ref):
    # x_ref: (L, Cin0, Nt) -- length on the leading axis, batch on the lanes.
    L = x_ref.shape[0]
    xs = [x_ref[l] for l in range(L)]     # list of (Cin0, Nt)

    for w_ref, b_ref in ((w0, b0), (w1, b1), (w2, b2), (w3, b3)):
        xs = _conv_relu(xs, w_ref, b_ref)

    # After conv3 the spatial length is 1 -> this IS the squeeze.
    assert len(xs) == 1, "final conv output length must be 1 (input L ~ 46)"
    h = xs[0]                             # (64, Nt)

    # Linear(64 -> 1): VPU multiply + cross-sublane reduce (no 1-wide matmul).
    out = jnp.sum(h * wo_ref[...], axis=0, keepdims=True) + bo_ref[...]
    o_ref[...] = out                      # (1, Nt), batch lane-dense


# ---------------------------------------------------------------------------
# Wrapper
# ---------------------------------------------------------------------------
def pack_params(params):
    """One-time weight packing (hoisted off the hot path)."""
    packed = {}
    for i in range(4):
        W = params[f"conv{i}_w"]                                   # (Cout, Cin, K)
        b = params[f"conv{i}_b"]                                   # (Cout,)
        packed[f"w{i}"] = jnp.transpose(W, (2, 0, 1)).astype(jnp.float32)  # (K, Cout, Cin)
        packed[f"b{i}"] = b.reshape(-1, 1).astype(jnp.float32)             # (Cout, 1)
    packed["wo"] = params["out_w"].reshape(-1, 1).astype(jnp.float32)      # (64, 1)
    packed["bo"] = params["out_b"].reshape(1, 1).astype(jnp.float32)       # (1, 1)
    return packed


def _pick_batch_tile(n):
    # Lane-dense batch tiles; sized well under v7x's 32 MiB scoped VMEM.
    for t in (512, 256, 128):
        if n % t == 0:
            return t
    return n  # small / odd batches: single block


def mannet_forward(x, packed):
    """x: (N, Cin, L) float32  ->  (N, 1) float32 (matches ManNet for N > 1)."""
    N, Cin, L = x.shape
    xt = jnp.transpose(x, (2, 1, 0))      # (L, Cin, N): batch on the lane axis
    nt = _pick_batch_tile(N)
    grid = (N // nt,)

    def full(shape):
        return pl.BlockSpec(shape, lambda i, _s=len(shape): (0,) * _s)

    in_specs = [pl.BlockSpec((L, Cin, nt), lambda i: (0, 0, i))]
    for i in range(4):
        in_specs.append(full(packed[f"w{i}"].shape))
        in_specs.append(full(packed[f"b{i}"].shape))
    in_specs.append(full(packed["wo"].shape))
    in_specs.append(full(packed["bo"].shape))

    out = pl.pallas_call(
        _mannet_kernel,
        grid=grid,
        in_specs=in_specs,
        out_specs=pl.BlockSpec((1, nt), lambda i: (0, i)),
        out_shape=jax.ShapeDtypeStruct((1, N), jnp.float32),
        compiler_params=pltpu.CompilerParams(
            dimension_semantics=("parallel",)),
    )(xt, packed["w0"], packed["b0"], packed["w1"], packed["b1"],
      packed["w2"], packed["b2"], packed["w3"], packed["b3"],
      packed["wo"], packed["bo"])
    return out.reshape(N, 1)


# ---------------------------------------------------------------------------
# Parameters (deterministic, PyTorch-style uniform init shapes)
# ---------------------------------------------------------------------------
def init_params(key):
    params = {}
    for i in range(len(CHANNELS) - 1):
        cin, cout = CHANNELS[i], CHANNELS[i + 1]
        key, kw, kb = jax.random.split(key, 3)
        bound = 1.0 / jnp.sqrt(cin * KSIZE)
        params[f"conv{i}_w"] = jax.random.uniform(
            kw, (cout, cin, KSIZE), jnp.float32, -bound, bound)
        params[f"conv{i}_b"] = jax.random.uniform(
            kb, (cout,), jnp.float32, -bound, bound)
    key, kw, kb = jax.random.split(key, 3)
    bound = 1.0 / jnp.sqrt(CHANNELS[-1])
    params["out_w"] = jax.random.uniform(kw, (1, CHANNELS[-1]), jnp.float32, -bound, bound)
    params["out_b"] = jax.random.uniform(kb, (1,), jnp.float32, -bound, bound)
    return params


# ---------------------------------------------------------------------------
# Pure-JAX reference (same math, lax conv) for a sanity check
# ---------------------------------------------------------------------------
def mannet_reference(x, params):
    cur = x
    for i in range(4):
        W = params[f"conv{i}_w"]
        b = params[f"conv{i}_b"]
        cur = lax.conv_general_dilated(
            cur, W, window_strides=(2,), padding="VALID",
            dimension_numbers=("NCH", "OIH", "NCH"))
        cur = jnp.maximum(cur + b[None, :, None], 0.0)
    out = cur[:, :, 0]                                   # (N, 64)  == squeeze
    return out @ params["out_w"].T + params["out_b"]     # (N, 1)


if __name__ == "__main__":
    key = jax.random.PRNGKey(0)
    pkey, xkey = jax.random.split(key)
    params = init_params(pkey)
    packed = pack_params(params)

    # Length 46 -> 22 -> 10 -> 4 -> 1 through four (k=4, s=2) convs.
    N, C, L = 2, 4, 46
    x = jax.random.normal(xkey, (N, C, L), dtype=jnp.float32)

    fwd = jax.jit(mannet_forward)
    out = jax.block_until_ready(fwd(x, packed))
    ref = jax.block_until_ready(mannet_reference(x, params))

    assert out.shape == (N, 1), out.shape
    assert jnp.max(jnp.abs(out - ref)) < 1e-3, ("mismatch", out, ref)
    print("KERNEL_OK")
</pallas_src>

<mosaic_0001>
module attributes {stable_mosaic.version = 11 : i64} {
  func.func @_mannet_kernel(%arg0: i32, %arg1: memref<46x4x2xf32, #tpu.memory_space<vmem>>, %arg2: memref<4x8x4xf32, #tpu.memory_space<vmem>>, %arg3: memref<8x1xf32, #tpu.memory_space<vmem>>, %arg4: memref<4x16x8xf32, #tpu.memory_space<vmem>>, %arg5: memref<16x1xf32, #tpu.memory_space<vmem>>, %arg6: memref<4x32x16xf32, #tpu.memory_space<vmem>>, %arg7: memref<32x1xf32, #tpu.memory_space<vmem>>, %arg8: memref<4x64x32xf32, #tpu.memory_space<vmem>>, %arg9: memref<64x1xf32, #tpu.memory_space<vmem>>, %arg10: memref<64x1xf32, #tpu.memory_space<vmem>>, %arg11: memref<1x1xf32, #tpu.memory_space<vmem>>, %arg12: memref<1x2xf32, #tpu.memory_space<vmem>>) attributes {dimension_semantics = [#tpu.dimension_semantics<parallel>], iteration_bounds = array<i64: 1>, scalar_prefetch = 0 : i64, scratch_operands = 0 : i64, tpu.core_type = #tpu.core_type<tc>, window_params = [{transform_indices = @transform_0, window_bounds = array<i64: 46, 4, 2>}, {pipeline_mode = #tpu.pipeline_mode<synchronous>, transform_indices = @transform_1, window_bounds = array<i64: 4, 8, 4>}, {pipeline_mode = #tpu.pipeline_mode<synchronous>, transform_indices = @transform_2, window_bounds = array<i64: 8, 1>}, {pipeline_mode = #tpu.pipeline_mode<synchronous>, transform_indices = @transform_3, window_bounds = array<i64: 4, 16, 8>}, {pipeline_mode = #tpu.pipeline_mode<synchronous>, transform_indices = @transform_4, window_bounds = array<i64: 16, 1>}, {pipeline_mode = #tpu.pipeline_mode<synchronous>, transform_indices = @transform_5, window_bounds = array<i64: 4, 32, 16>}, {pipeline_mode = #tpu.pipeline_mode<synchronous>, transform_indices = @transform_6, window_bounds = array<i64: 32, 1>}, {pipeline_mode = #tpu.pipeline_mode<synchronous>, transform_indices = @transform_7, window_bounds = array<i64: 4, 64, 32>}, {pipeline_mode = #tpu.pipeline_mode<synchronous>, transform_indices = @transform_8, window_bounds = array<i64: 64, 1>}, {pipeline_mode = #tpu.pipeline_mode<synchronous>, transform_indices = @transform_9, window_bounds = array<i64: 64, 1>}, {pipeline_mode = #tpu.pipeline_mode<synchronous>, transform_indices = @transform_10, window_bounds = array<i64: 1, 1>}, {transform_indices = @transform_11, window_bounds = array<i64: 1, 2>}]} {
    %c0 = arith.constant 0 : index
    %c0_0 = arith.constant 0 : index
    %c0_1 = arith.constant 0 : index
    %0 = vector.load %arg1[%c0, %c0_0, %c0_1] : memref<46x4x2xf32, #tpu.memory_space<vmem>>, vector<1x4x2xf32>
    %1 = vector.shape_cast %0 : vector<1x4x2xf32> to vector<4x2xf32>
    %c1 = arith.constant 1 : index
    %c0_2 = arith.constant 0 : index
    %c0_3 = arith.constant 0 : index
    %2 = vector.load %arg1[%c1, %c0_2, %c0_3] : memref<46x4x2xf32, #tpu.memory_space<vmem>>, vector<1x4x2xf32>
    %3 = vector.shape_cast %2 : vector<1x4x2xf32> to vector<4x2xf32>
    %c2 = arith.constant 2 : index
    %c0_4 = arith.constant 0 : index
    %c0_5 = arith.constant 0 : index
    %4 = vector.load %arg1[%c2, %c0_4, %c0_5] : memref<46x4x2xf32, #tpu.memory_space<vmem>>, vector<1x4x2xf32>
    %5 = vector.shape_cast %4 : vector<1x4x2xf32> to vector<4x2xf32>
    %c3 = arith.constant 3 : index
    %c0_6 = arith.constant 0 : index
    %c0_7 = arith.constant 0 : index
    %6 = vector.load %arg1[%c3, %c0_6, %c0_7] : memref<46x4x2xf32, #tpu.memory_space<vmem>>, vector<1x4x2xf32>
    %7 = vector.shape_cast %6 : vector<1x4x2xf32> to vector<4x2xf32>
    %c4 = arith.constant 4 : index
    %c0_8 = arith.constant 0 : index
    %c0_9 = arith.constant 0 : index
    %8 = vector.load %arg1[%c4, %c0_8, %c0_9] : memref<46x4x2xf32, #tpu.memory_space<vmem>>, vector<1x4x2xf32>
    %9 = vector.shape_cast %8 : vector<1x4x2xf32> to vector<4x2xf32>
    %c5 = arith.constant 5 : index
    %c0_10 = arith.constant 0 : index
    %c0_11 = arith.constant 0 : index
    %10 = vector.load %arg1[%c5, %c0_10, %c0_11] : memref<46x4x2xf32, #tpu.memory_space<vmem>>, vector<1x4x2xf32>
    %11 = vector.shape_cast %10 : vector<1x4x2xf32> to vector<4x2xf32>
    %c6 = arith.constant 6 : index
    %c0_12 = arith.constant 0 : index
    %c0_13 = arith.constant 0 : index
    %12 = vector.load %arg1[%c6, %c0_12, %c0_13] : memref<46x4x2xf32, #tpu.memory_space<vmem>>, vector<1x4x2xf32>
    %13 = vector.shape_cast %12 : vector<1x4x2xf32> to vector<4x2xf32>
    %c7 = arith.constant 7 : index
    %c0_14 = arith.constant 0 : index
    %c0_15 = arith.constant 0 : index
    %14 = vector.load %arg1[%c7, %c0_14, %c0_15] : memref<46x4x2xf32, #tpu.memory_space<vmem>>, vector<1x4x2xf32>
    %15 = vector.shape_cast %14 : vector<1x4x2xf32> to vector<4x2xf32>
    %c8 = arith.constant 8 : index
    %c0_16 = arith.constant 0 : index
    %c0_17 = arith.constant 0 : index
    %16 = vector.load %arg1[%c8, %c0_16, %c0_17] : memref<46x4x2xf32, #tpu.memory_space<vmem>>, vector<1x4x2xf32>
    %17 = vector.shape_cast %16 : vector<1x4x2xf32> to vector<4x2xf32>
    %c9 = arith.constant 9 : index
    %c0_18 = arith.constant 0 : index
    %c0_19 = arith.constant 0 : index
    %18 = vector.load %arg1[%c9, %c0_18, %c0_19] : memref<46x4x2xf32, #tpu.memory_space<vmem>>, vector<1x4x2xf32>
    %19 = vector.shape_cast %18 : vector<1x4x2xf32> to vector<4x2xf32>
    %c10 = arith.constant 10 : index
    %c0_20 = arith.constant 0 : index
    %c0_21 = arith.constant 0 : index
    %20 = vector.load %arg1[%c10, %c0_20, %c0_21] : memref<46x4x2xf32, #tpu.memory_space<vmem>>, vector<1x4x2xf32>
    %21 = vector.shape_cast %20 : vector<1x4x2xf32> to vector<4x2xf32>
    %c11 = arith.constant 11 : index
    %c0_22 = arith.constant 0 : index
    %c0_23 = arith.constant 0 : index
    %22 = vector.load %arg1[%c11, %c0_22, %c0_23] : memref<46x4x2xf32, #tpu.memory_space<vmem>>, vector<1x4x2xf32>
    %23 = vector.shape_cast %22 : vector<1x4x2xf32> to vector<4x2xf32>
    %c12 = arith.constant 12 : index
    %c0_24 = arith.constant 0 : index
    %c0_25 = arith.constant 0 : index
    %24 = vector.load %arg1[%c12, %c0_24, %c0_25] : memref<46x4x2xf32, #tpu.memory_space<vmem>>, vector<1x4x2xf32>
    %25 = vector.shape_cast %24 : vector<1x4x2xf32> to vector<4x2xf32>
    %c13 = arith.constant 13 : index
    %c0_26 = arith.constant 0 : index
    %c0_27 = arith.constant 0 : index
    %26 = vector.load %arg1[%c13, %c0_26, %c0_27] : memref<46x4x2xf32, #tpu.memory_space<vmem>>, vector<1x4x2xf32>
    %27 = vector.shape_cast %26 : vector<1x4x2xf32> to vector<4x2xf32>
    %c14 = arith.constant 14 : index
    %c0_28 = arith.constant 0 : index
    %c0_29 = arith.constant 0 : index
    %28 = vector.load %arg1[%c14, %c0_28, %c0_29] : memref<46x4x2xf32, #tpu.memory_space<vmem>>, vector<1x4x2xf32>
    %29 = vector.shape_cast %28 : vector<1x4x2xf32> to vector<4x2xf32>
    %c15 = arith.constant 15 : index
    %c0_30 = arith.constant 0 : index
    %c0_31 = arith.constant 0 : index
    %30 = vector.load %arg1[%c15, %c0_30, %c0_31] : memref<46x4x2xf32, #tpu.memory_space<vmem>>, vector<1x4x2xf32>
    %31 = vector.shape_cast %30 : vector<1x4x2xf32> to vector<4x2xf32>
    %c16 = arith.constant 16 : index
    %c0_32 = arith.constant 0 : index
    %c0_33 = arith.constant 0 : index
    %32 = vector.load %arg1[%c16, %c0_32, %c0_33] : memref<46x4x2xf32, #tpu.memory_space<vmem>>, vector<1x4x2xf32>
    %33 = vector.shape_cast %32 : vector<1x4x2xf32> to vector<4x2xf32>
    %c17 = arith.constant 17 : index
    %c0_34 = arith.constant 0 : index
    %c0_35 = arith.constant 0 : index
    %34 = vector.load %arg1[%c17, %c0_34, %c0_35] : memref<46x4x2xf32, #tpu.memory_space<vmem>>, vector<1x4x2xf32>
    %35 = vector.shape_cast %34 : vector<1x4x2xf32> to vector<4x2xf32>
    %c18 = arith.constant 18 : index
    %c0_36 = arith.constant 0 : index
    %c0_37 = arith.constant 0 : index
    %36 = vector.load %arg1[%c18, %c0_36, %c0_37] : memref<46x4x2xf32, #tpu.memory_space<vmem>>, vector<1x4x2xf32>
    %37 = vector.shape_cast %36 : vector<1x4x2xf32> to vector<4x2xf32>
    %c19 = arith.constant 19 : index
    %c0_38 = arith.constant 0 : index
    %c0_39 = arith.constant 0 : index
    %38 = vector.load %arg1[%c19, %c0_38, %c0_39] : memref<46x4x2xf32, #tpu.memory_space<vmem>>, vector<1x4x2xf32>
    %39 = vector.shape_cast %38 : vector<1x4x2xf32> to vector<4x2xf32>
    %c20 = arith.constant 20 : index
    %c0_40 = arith.constant 0 : index
    %c0_41 = arith.constant 0 : index
    %40 = vector.load %arg1[%c20, %c0_40, %c0_41] : memref<46x4x2xf32, #tpu.memory_space<vmem>>, vector<1x4x2xf32>
    %41 = vector.shape_cast %40 : vector<1x4x2xf32> to vector<4x2xf32>
    %c21 = arith.constant 21 : index
    %c0_42 = arith.constant 0 : index
    %c0_43 = arith.constant 0 : index
    %42 = vector.load %arg1[%c21, %c0_42, %c0_43] : memref<46x4x2xf32, #tpu.memory_space<vmem>>, vector<1x4x2xf32>
    %43 = vector.shape_cast %42 : vector<1x4x2xf32> to vector<4x2xf32>
    %c22 = arith.constant 22 : index
    %c0_44 = arith.constant 0 : index
    %c0_45 = arith.constant 0 : index
    %44 = vector.load %arg1[%c22, %c0_44, %c0_45] : memref<46x4x2xf32, #tpu.memory_space<vmem>>, vector<1x4x2xf32>
    %45 = vector.shape_cast %44 : vector<1x4x2xf32> to vector<4x2xf32>
    %c23 = arith.constant 23 : index
    %c0_46 = arith.constant 0 : index
    %c0_47 = arith.constant 0 : index
    %46 = vector.load %arg1[%c23, %c0_46, %c0_47] : memref<46x4x2xf32, #tpu.memory_space<vmem>>, vector<1x4x2xf32>
    %47 = vector.shape_cast %46 : vector<1x4x2xf32> to vector<4x2xf32>
    %c24 = arith.constant 24 : index
    %c0_48 = arith.constant 0 : index
    %c0_49 = arith.constant 0 : index
    %48 = vector.load %arg1[%c24, %c0_48, %c0_49] : memref<46x4x2xf32, #tpu.memory_space<vmem>>, vector<1x4x2xf32>
    %49 = vector.shape_cast %48 : vector<1x4x2xf32> to vector<4x2xf32>
    %c25 = arith.constant 25 : index
    %c0_50 = arith.constant 0 : index
    %c0_51 = arith.constant 0 : index
    %50 = vector.load %arg1[%c25, %c0_50, %c0_51] : memref<46x4x2xf32, #tpu.memory_space<vmem>>, vector<1x4x2xf32>
    %51 = vector.shape_cast %50 : vector<1x4x2xf32> to vector<4x2xf32>
    %c26 = arith.constant 26 : index
    %c0_52 = arith.constant 0 : index
    %c0_53 = arith.constant 0 : index
    %52 = vector.load %arg1[%c26, %c0_52, %c0_53] : memref<46x4x2xf32, #tpu.memory_space<vmem>>, vector<1x4x2xf32>
    %53 = vector.shape_cast %52 : vector<1x4x2xf32> to vector<4x2xf32>
    %c27 = arith.constant 27 : index
    %c0_54 = arith.constant 0 : index
    %c0_55 = arith.constant 0 : index
    %54 = vector.load %arg1[%c27, %c0_54, %c0_55] : memref<46x4x2xf32, #tpu.memory_space<vmem>>, vector<1x4x2xf32>
    %55 = vector.shape_cast %54 : vector<1x4x2xf32> to vector<4x2xf32>
    %c28 = arith.constant 28 : index
    %c0_56 = arith.constant 0 : index
    %c0_57 = arith.constant 0 : index
    %56 = vector.load %arg1[%c28, %c0_56, %c0_57] : memref<46x4x2xf32, #tpu.memory_space<vmem>>, vector<1x4x2xf32>
    %57 = vector.shape_cast %56 : vector<1x4x2xf32> to vector<4x2xf32>
    %c29 = arith.constant 29 : index
    %c0_58 = arith.constant 0 : index
    %c0_59 = arith.constant 0 : index
    %58 = vector.load %arg1[%c29, %c0_58, %c0_59] : memref<46x4x2xf32, #tpu.memory_space<vmem>>, vector<1x4x2xf32>
    %59 = vector.shape_cast %58 : vector<1x4x2xf32> to vector<4x2xf32>
    %c30 = arith.constant 30 : index
    %c0_60 = arith.constant 0 : index
    %c0_61 = arith.constant 0 : index
    %60 = vector.load %arg1[%c30, %c0_60, %c0_61] : memref<46x4x2xf32, #tpu.memory_space<vmem>>, vector<1x4x2xf32>
    %61 = vector.shape_cast %60 : vector<1x4x2xf32> to vector<4x2xf32>
    %c31 = arith.constant 31 : index
    %c0_62 = arith.constant 0 : index
    %c0_63 = arith.constant 0 : index
    %62 = vector.load %arg1[%c31, %c0_62, %c0_63] : memref<46x4x2xf32, #tpu.memory_space<vmem>>, vector<1x4x2xf32>
    %63 = vector.shape_cast %62 : vector<1x4x2xf32> to vector<4x2xf32>
    %c32 = arith.constant 32 : index
    %c0_64 = arith.constant 0 : index
    %c0_65 = arith.constant 0 : index
    %64 = vector.load %arg1[%c32, %c0_64, %c0_65] : memref<46x4x2xf32, #tpu.memory_space<vmem>>, vector<1x4x2xf32>
    %65 = vector.shape_cast %64 : vector<1x4x2xf32> to vector<4x2xf32>
    %c33 = arith.constant 33 : index
    %c0_66 = arith.constant 0 : index
    %c0_67 = arith.constant 0 : index
    %66 = vector.load %arg1[%c33, %c0_66, %c0_67] : memref<46x4x2xf32, #tpu.memory_space<vmem>>, vector<1x4x2xf32>
    %67 = vector.shape_cast %66 : vector<1x4x2xf32> to vector<4x2xf32>
    %c34 = arith.constant 34 : index
    %c0_68 = arith.constant 0 : index
    %c0_69 = arith.constant 0 : index
    %68 = vector.load %arg1[%c34, %c0_68, %c0_69] : memref<46x4x2xf32, #tpu.memory_space<vmem>>, vector<1x4x2xf32>
    %69 = vector.shape_cast %68 : vector<1x4x2xf32> to vector<4x2xf32>
    %c35 = arith.constant 35 : index
    %c0_70 = arith.constant 0 : index
    %c0_71 = arith.constant 0 : index
    %70 = vector.load %arg1[%c35, %c0_70, %c0_71] : memref<46x4x2xf32, #tpu.memory_space<vmem>>, vector<1x4x2xf32>
    %71 = vector.shape_cast %70 : vector<1x4x2xf32> to vector<4x2xf32>
    %c36 = arith.constant 36 : index
    %c0_72 = arith.constant 0 : index
    %c0_73 = arith.constant 0 : index
    %72 = vector.load %arg1[%c36, %c0_72, %c0_73] : memref<46x4x2xf32, #tpu.memory_space<vmem>>, vector<1x4x2xf32>
    %73 = vector.shape_cast %72 : vector<1x4x2xf32> to vector<4x2xf32>
    %c37 = arith.constant 37 : index
    %c0_74 = arith.constant 0 : index
    %c0_75 = arith.constant 0 : index
    %74 = vector.load %arg1[%c37, %c0_74, %c0_75] : memref<46x4x2xf32, #tpu.memory_space<vmem>>, vector<1x4x2xf32>
    %75 = vector.shape_cast %74 : vector<1x4x2xf32> to vector<4x2xf32>
    %c38 = arith.constant 38 : index
    %c0_76 = arith.constant 0 : index
    %c0_77 = arith.constant 0 : index
    %76 = vector.load %arg1[%c38, %c0_76, %c0_77] : memref<46x4x2xf32, #tpu.memory_space<vmem>>, vector<1x4x2xf32>
    %77 = vector.shape_cast %76 : vector<1x4x2xf32> to vector<4x2xf32>
    %c39 = arith.constant 39 : index
    %c0_78 = arith.constant 0 : index
    %c0_79 = arith.constant 0 : index
    %78 = vector.load %arg1[%c39, %c0_78, %c0_79] : memref<46x4x2xf32, #tpu.memory_space<vmem>>, vector<1x4x2xf32>
    %79 = vector.shape_cast %78 : vector<1x4x2xf32> to vector<4x2xf32>
    %c40 = arith.constant 40 : index
    %c0_80 = arith.constant 0 : index
    %c0_81 = arith.constant 0 : index
    %80 = vector.load %arg1[%c40, %c0_80, %c0_81] : memref<46x4x2xf32, #tpu.memory_space<vmem>>, vector<1x4x2xf32>
    %81 = vector.shape_cast %80 : vector<1x4x2xf32> to vector<4x2xf32>
    %c41 = arith.constant 41 : index
    %c0_82 = arith.constant 0 : index
    %c0_83 = arith.constant 0 : index
    %82 = vector.load %arg1[%c41, %c0_82, %c0_83] : memref<46x4x2xf32, #tpu.memory_space<vmem>>, vector<1x4x2xf32>
    %83 = vector.shape_cast %82 : vector<1x4x2xf32> to vector<4x2xf32>
    %c42 = arith.constant 42 : index
    %c0_84 = arith.constant 0 : index
    %c0_85 = arith.constant 0 : index
    %84 = vector.load %arg1[%c42, %c0_84, %c0_85] : memref<46x4x2xf32, #tpu.memory_space<vmem>>, vector<1x4x2xf32>
    %85 = vector.shape_cast %84 : vector<1x4x2xf32> to vector<4x2xf32>
    %c43 = arith.constant 43 : index
    %c0_86 = arith.constant 0 : index
    %c0_87 = arith.constant 0 : index
    %86 = vector.load %arg1[%c43, %c0_86, %c0_87] : memref<46x4x2xf32, #tpu.memory_space<vmem>>, vector<1x4x2xf32>
    %87 = vector.shape_cast %86 : vector<1x4x2xf32> to vector<4x2xf32>
    %c44 = arith.constant 44 : index
    %c0_88 = arith.constant 0 : index
    %c0_89 = arith.constant 0 : index
    %88 = vector.load %arg1[%c44, %c0_88, %c0_89] : memref<46x4x2xf32, #tpu.memory_space<vmem>>, vector<1x4x2xf32>
    %89 = vector.shape_cast %88 : vector<1x4x2xf32> to vector<4x2xf32>
    %c45 = arith.constant 45 : index
    %c0_90 = arith.constant 0 : index
    %c0_91 = arith.constant 0 : index
    %90 = vector.load %arg1[%c45, %c0_90, %c0_91] : memref<46x4x2xf32, #tpu.memory_space<vmem>>, vector<1x4x2xf32>
    %91 = vector.shape_cast %90 : vector<1x4x2xf32> to vector<4x2xf32>
    %c0_92 = arith.constant 0 : index
    %c0_93 = arith.constant 0 : index
    %c0_94 = arith.constant 0 : index
    %92 = vector.load %arg2[%c0_92, %c0_93, %c0_94] : memref<4x8x4xf32, #tpu.memory_space<vmem>>, vector<1x8x4xf32>
    %93 = vector.shape_cast %92 : vector<1x8x4xf32> to vector<8x4xf32>
    %c1_95 = arith.constant 1 : index
    %c0_96 = arith.constant 0 : index
    %c0_97 = arith.constant 0 : index
    %94 = vector.load %arg2[%c1_95, %c0_96, %c0_97] : memref<4x8x4xf32, #tpu.memory_space<vmem>>, vector<1x8x4xf32>
    %95 = vector.shape_cast %94 : vector<1x8x4xf32> to vector<8x4xf32>
    %c2_98 = arith.constant 2 : index
    %c0_99 = arith.constant 0 : index
    %c0_100 = arith.constant 0 : index
    %96 = vector.load %arg2[%c2_98, %c0_99, %c0_100] : memref<4x8x4xf32, #tpu.memory_space<vmem>>, vector<1x8x4xf32>
    %97 = vector.shape_cast %96 : vector<1x8x4xf32> to vector<8x4xf32>
    %c3_101 = arith.constant 3 : index
    %c0_102 = arith.constant 0 : index
    %c0_103 = arith.constant 0 : index
    %98 = vector.load %arg2[%c3_101, %c0_102, %c0_103] : memref<4x8x4xf32, #tpu.memory_space<vmem>>, vector<1x8x4xf32>
    %99 = vector.shape_cast %98 : vector<1x8x4xf32> to vector<8x4xf32>
    %c0_104 = arith.constant 0 : index
    %c0_105 = arith.constant 0 : index
    %100 = vector.load %arg3[%c0_104, %c0_105] : memref<8x1xf32, #tpu.memory_space<vmem>>, vector<8x1xf32>
    %cst = arith.constant dense<0.000000e+00> : vector<8x2xf32>
    %101 = tpu.matmul %93, %1, %cst {dimension_numbers = #tpu.dot_dimension_numbers<[1], [0], [0], [1], [0, 0, 1, 1], [], []>} : vector<8x4xf32>, vector<4x2xf32>, vector<8x2xf32> -> vector<8x2xf32>
    %cst_106 = arith.constant dense<0.000000e+00> : vector<8x2xf32>
    %102 = tpu.matmul %95, %3, %cst_106 {dimension_numbers = #tpu.dot_dimension_numbers<[1], [0], [0], [1], [0, 0, 1, 1], [], []>} : vector<8x4xf32>, vector<4x2xf32>, vector<8x2xf32> -> vector<8x2xf32>
    %cst_107 = arith.constant dense<0.000000e+00> : vector<8x2xf32>
    %103 = tpu.matmul %97, %5, %cst_107 {dimension_numbers = #tpu.dot_dimension_numbers<[1], [0], [0], [1], [0, 0, 1, 1], [], []>} : vector<8x4xf32>, vector<4x2xf32>, vector<8x2xf32> -> vector<8x2xf32>
    %cst_108 = arith.constant dense<0.000000e+00> : vector<8x2xf32>
    %104 = tpu.matmul %99, %7, %cst_108 {dimension_numbers = #tpu.dot_dimension_numbers<[1], [0], [0], [1], [0, 0, 1, 1], [], []>} : vector<8x4xf32>, vector<4x2xf32>, vector<8x2xf32> -> vector<8x2xf32>
    %105 = arith.addf %101, %102 : vector<8x2xf32>
    %106 = arith.addf %103, %104 : vector<8x2xf32>
    %107 = arith.addf %105, %106 : vector<8x2xf32>
    %108 = vector.broadcast %100 : vector<8x1xf32> to vector<8x2xf32>
    %109 = arith.addf %107, %108 : vector<8x2xf32>
    %cst_109 = arith.constant 0.000000e+00 : f32
    %110 = vector.broadcast %cst_109 : f32 to vector<8x2xf32>
    %111 = arith.maximumf %109, %110 : vector<8x2xf32>
    %cst_110 = arith.constant dense<0.000000e+00> : vector<8x2xf32>
    %112 = tpu.matmul %93, %5, %cst_110 {dimension_numbers = #tpu.dot_dimension_numbers<[1], [0], [0], [1], [0, 0, 1, 1], [], []>} : vector<8x4xf32>, vector<4x2xf32>, vector<8x2xf32> -> vector<8x2xf32>
    %cst_111 = arith.constant dense<0.000000e+00> : vector<8x2xf32>
    %113 = tpu.matmul %95, %7, %cst_111 {dimension_numbers = #tpu.dot_dimension_numbers<[1], [0], [0], [1], [0, 0, 1, 1], [], []>} : vector<8x4xf32>, vector<4x2xf32>, vector<8x2xf32> -> vector<8x2xf32>
    %cst_112 = arith.constant dense<0.000000e+00> : vector<8x2xf32>
    %114 = tpu.matmul %97, %9, %cst_112 {dimension_numbers = #tpu.dot_dimension_numbers<[1], [0], [0], [1], [0, 0, 1, 1], [], []>} : vector<8x4xf32>, vector<4x2xf32>, vector<8x2xf32> -> vector<8x2xf32>
    %cst_113 = arith.constant dense<0.000000e+00> : vector<8x2xf32>
    %115 = tpu.matmul %99, %11, %cst_113 {dimension_numbers = #tpu.dot_dimension_numbers<[1], [0], [0], [1], [0, 0, 1, 1], [], []>} : vector<8x4xf32>, vector<4x2xf32>, vector<8x2xf32> -> vector<8x2xf32>
    %116 = arith.addf %112, %113 : vector<8x2xf32>
    %117 = arith.addf %114, %115 : vector<8x2xf32>
    %118 = arith.addf %116, %117 : vector<8x2xf32>
    %119 = vector.broadcast %100 : vector<8x1xf32> to vector<8x2xf32>
    %120 = arith.addf %118, %119 : vector<8x2xf32>
    %cst_114 = arith.constant 0.000000e+00 : f32
    %121 = vector.broadcast %cst_114 : f32 to vector<8x2xf32>
    %122 = arith.maximumf %120, %121 : vector<8x2xf32>
    %cst_115 = arith.constant dense<0.000000e+00> : vector<8x2xf32>
    %123 = tpu.matmul %93, %9, %cst_115 {dimension_numbers = #tpu.dot_dimension_numbers<[1], [0], [0], [1], [0, 0, 1, 1], [], []>} : vector<8x4xf32>, vector<4x2xf32>, vector<8x2xf32> -> vector<8x2xf32>
    %cst_116 = arith.constant dense<0.000000e+00> : vector<8x2xf32>
    %124 = tpu.matmul %95, %11, %cst_116 {dimension_numbers = #tpu.dot_dimension_numbers<[1], [0], [0], [1], [0, 0, 1, 1], [], []>} : vector<8x4xf32>, vector<4x2xf32>, vector<8x2xf32> -> vector<8x2xf32>
    %cst_117 = arith.constant dense<0.000000e+00> : vector<8x2xf32>
    %125 = tpu.matmul %97, %13, %cst_117 {dimension_numbers = #tpu.dot_dimension_numbers<[1], [0], [0], [1], [0, 0, 1, 1], [], []>} : vector<8x4xf32>, vector<4x2xf32>, vector<8x2xf32> -> vector<8x2xf32>
    %cst_118 = arith.constant dense<0.000000e+00> : vector<8x2xf32>
    %126 = tpu.matmul %99, %15, %cst_118 {dimension_numbers = #tpu.dot_dimension_numbers<[1], [0], [0], [1], [0, 0, 1, 1], [], []>} : vector<8x4xf32>, vector<4x2xf32>, vector<8x2xf32> -> vector<8x2xf32>
    %127 = arith.addf %123, %124 : vector<8x2xf32>
    %128 = arith.addf %125, %126 : vector<8x2xf32>
    %129 = arith.addf %127, %128 : vector<8x2xf32>
    %130 = vector.broadcast %100 : vector<8x1xf32> to vector<8x2xf32>
    %131 = arith.addf %129, %130 : vector<8x2xf32>
    %cst_119 = arith.constant 0.000000e+00 : f32
    %132 = vector.broadcast %cst_119 : f32 to vector<8x2xf32>
    %133 = arith.maximumf %131, %132 : vector<8x2xf32>
    %cst_120 = arith.constant dense<0.000000e+00> : vector<8x2xf32>
    %134 = tpu.matmul %93, %13, %cst_120 {dimension_numbers = #tpu.dot_dimension_numbers<[1], [0], [0], [1], [0, 0, 1, 1], [], []>} : vector<8x4xf32>, vector<4x2xf32>, vector<8x2xf32> -> vector<8x2xf32>
    %cst_121 = arith.constant dense<0.000000e+00> : vector<8x2xf32>
    %135 = tpu.matmul %95, %15, %cst_121 {dimension_numbers = #tpu.dot_dimension_numbers<[1], [0], [0], [1], [0, 0, 1, 1], [], []>} : vector<8x4xf32>, vector<4x2xf32>, vector<8x2xf32> -> vector<8x2xf32>
    %cst_122 = arith.constant dense<0.000000e+00> : vector<8x2xf32>
    %136 = tpu.matmul %97, %17, %cst_122 {dimension_numbers = #tpu.dot_dimension_numbers<[1], [0], [0], [1], [0, 0, 1, 1], [], []>} : vector<8x4xf32>, vector<4x2xf32>, vector<8x2xf32> -> vector<8x2xf32>
    %cst_123 = arith.constant dense<0.000000e+00> : vector<8x2xf32>
    %137 = tpu.matmul %99, %19, %cst_123 {dimension_numbers = #tpu.dot_dimension_numbers<[1], [0], [0], [1], [0, 0, 1, 1], [], []>} : vector<8x4xf32>, vector<4x2xf32>, vector<8x2xf32> -> vector<8x2xf32>
    %138 = arith.addf %134, %135 : vector<8x2xf32>
    %139 = arith.addf %136, %137 : vector<8x2xf32>
    %140 = arith.addf %138, %139 : vector<8x2xf32>
    %141 = vector.broadcast %100 : vector<8x1xf32> to vector<8x2xf32>
    %142 = arith.addf %140, %141 : vector<8x2xf32>
    %cst_124 = arith.constant 0.000000e+00 : f32
    %143 = vector.broadcast %cst_124 : f32 to vector<8x2xf32>
    %144 = arith.maximumf %142, %143 : vector<8x2xf32>
    %cst_125 = arith.constant dense<0.000000e+00> : vector<8x2xf32>
    %145 = tpu.matmul %93, %17, %cst_125 {dimension_numbers = #tpu.dot_dimension_numbers<[1], [0], [0], [1], [0, 0, 1, 1], [], []>} : vector<8x4xf32>, vector<4x2xf32>, vector<8x2xf32> -> vector<8x2xf32>
    %cst_126 = arith.constant dense<0.000000e+00> : vector<8x2xf32>
    %146 = tpu.matmul %95, %19, %cst_126 {dimension_numbers = #tpu.dot_dimension_numbers<[1], [0], [0], [1], [0, 0, 1, 1], [], []>} : vector<8x4xf32>, vector<4x2xf32>, vector<8x2xf32> -> vector<8x2xf32>
    %cst_127 = arith.constant dense<0.000000e+00> : vector<8x2xf32>
    %147 = tpu.matmul %97, %21, %cst_127 {dimension_numbers = #tpu.dot_dimension_numbers<[1], [0], [0], [1], [0, 0, 1, 1], [], []>} : vector<8x4xf32>, vector<4x2xf32>, vector<8x2xf32> -> vector<8x2xf32>
    %cst_128 = arith.constant dense<0.000000e+00> : vector<8x2xf32>
    %148 = tpu.matmul %99, %23, %cst_128 {dimension_numbers = #tpu.dot_dimension_numbers<[1], [0], [0], [1], [0, 0, 1, 1], [], []>} : vector<8x4xf32>, vector<4x2xf32>, vector<8x2xf32> -> vector<8x2xf32>
    %149 = arith.addf %145, %146 : vector<8x2xf32>
    %150 = arith.addf %147, %148 : vector<8x2xf32>
    %151 = arith.addf %149, %150 : vector<8x2xf32>
    %152 = vector.broadcast %100 : vector<8x1xf32> to vector<8x2xf32>
    %153 = arith.addf %151, %152 : vector<8x2xf32>
    %cst_129 = arith.constant 0.000000e+00 : f32
    %154 = vector.broadcast %cst_129 : f32 to vector<8x2xf32>
    %155 = arith.maximumf %153, %154 : vector<8x2xf32>
    %cst_130 = arith.constant dense<0.000000e+00> : vector<8x2xf32>
    %156 = tpu.matmul %93, %21, %cst_130 {dimension_numbers = #tpu.dot_dimension_numbers<[1], [0], [0], [1], [0, 0, 1, 1], [], []>} : vector<8x4xf32>, vector<4x2xf32>, vector<8x2xf32> -> vector<8x2xf32>
    %cst_131 = arith.constant dense<0.000000e+00> : vector<8x2xf32>
    %157 = tpu.matmul %95, %23, %cst_131 {dimension_numbers = #tpu.dot_dimension_numbers<[1], [0], [0], [1], [0, 0, 1, 1], [], []>} : vector<8x4xf32>, vector<4x2xf32>, vector<8x2xf32> -> vector<8x2xf32>
    %cst_132 = arith.constant dense<0.000000e+00> : vector<8x2xf32>
    %158 = tpu.matmul %97, %25, %cst_132 {dimension_numbers = #tpu.dot_dimension_numbers<[1], [0], [0], [1], [0, 0, 1, 1], [], []>} : vector<8x4xf32>, vector<4x2xf32>, vector<8x2xf32> -> vector<8x2xf32>
    %cst_133 = arith.constant dense<0.000000e+00> : vector<8x2xf32>
    %159 = tpu.matmul %99, %27, %cst_133 {dimension_numbers = #tpu.dot_dimension_numbers<[1], [0], [0], [1], [0, 0, 1, 1], [], []>} : vector<8x4xf32>, vector<4x2xf32>, vector<8x2xf32> -> vector<8x2xf32>
    %160 = arith.addf %156, %157 : vector<8x2xf32>
    %161 = arith.addf %158, %159 : vector<8x2xf32>
    %162 = arith.addf %160, %161 : vector<8x2xf32>
    %163 = vector.broadcast %100 : vector<8x1xf32> to vector<8x2xf32>
    %164 = arith.addf %162, %163 : vector<8x2xf32>
    %cst_134 = arith.constant 0.000000e+00 : f32
    %165 = vector.broadcast %cst_134 : f32 to vector<8x2xf32>
    %166 = arith.maximumf %164, %165 : vector<8x2xf32>
    %cst_135 = arith.constant dense<0.000000e+00> : vector<8x2xf32>
    %167 = tpu.matmul %93, %25, %cst_135 {dimension_numbers = #tpu.dot_dimension_numbers<[1], [0], [0], [1], [0, 0, 1, 1], [], []>} : vector<8x4xf32>, vector<4x2xf32>, vector<8x2xf32> -> vector<8x2xf32>
    %cst_136 = arith.constant dense<0.000000e+00> : vector<8x2xf32>
    %168 = tpu.matmul %95, %27, %cst_136 {dimension_numbers = #tpu.dot_dimension_numbers<[1], [0], [0], [1], [0, 0, 1, 1], [], []>} : vector<8x4xf32>, vector<4x2xf32>, vector<8x2xf32> -> vector<8x2xf32>
    %cst_137 = arith.constant dense<0.000000e+00> : vector<8x2xf32>
    %169 = tpu.matmul %97, %29, %cst_137 {dimension_numbers = #tpu.dot_dimension_numbers<[1], [0], [0], [1], [0, 0, 1, 1], [], []>} : vector<8x4xf32>, vector<4x2xf32>, vector<8x2xf32> -> vector<8x2xf32>
    %cst_138 = arith.constant dense<0.000000e+00> : vector<8x2xf32>
    %170 = tpu.matmul %99, %31, %cst_138 {dimension_numbers = #tpu.dot_dimension_numbers<[1], [0], [0], [1], [0, 0, 1, 1], [], []>} : vector<8x4xf32>, vector<4x2xf32>, vector<8x2xf32> -> vector<8x2xf32>
    %171 = arith.addf %167, %168 : vector<8x2xf32>
    %172 = arith.addf %169, %170 : vector<8x2xf32>
    %173 = arith.addf %171, %172 : vector<8x2xf32>
    %174 = vector.broadcast %100 : vector<8x1xf32> to vector<8x2xf32>
    %175 = arith.addf %173, %174 : vector<8x2xf32>
    %cst_139 = arith.constant 0.000000e+00 : f32
    %176 = vector.broadcast %cst_139 : f32 to vector<8x2xf32>
    %177 = arith.maximumf %175, %176 : vector<8x2xf32>
    %cst_140 = arith.constant dense<0.000000e+00> : vector<8x2xf32>
    %178 = tpu.matmul %93, %29, %cst_140 {dimension_numbers = #tpu.dot_dimension_numbers<[1], [0], [0], [1], [0, 0, 1, 1], [], []>} : vector<8x4xf32>, vector<4x2xf32>, vector<8x2xf32> -> vector<8x2xf32>
    %cst_141 = arith.constant dense<0.000000e+00> : vector<8x2xf32>
    %179 = tpu.matmul %95, %31, %cst_141 {dimension_numbers = #tpu.dot_dimension_numbers<[1], [0], [0], [1], [0, 0, 1, 1], [], []>} : vector<8x4xf32>, vector<4x2xf32>, vector<8x2xf32> -> vector<8x2xf32>
    %cst_142 = arith.constant dense<0.000000e+00> : vector<8x2xf32>
    %180 = tpu.matmul %97, %33, %cst_142 {dimension_numbers = #tpu.dot_dimension_numbers<[1], [0], [0], [1], [0, 0, 1, 1], [], []>} : vector<8x4xf32>, vector<4x2xf32>, vector<8x2xf32> -> vector<8x2xf32>
    %cst_143 = arith.constant dense<0.000000e+00> : vector<8x2xf32>
    %181 = tpu.matmul %99, %35, %cst_143 {dimension_numbers = #tpu.dot_dimension_numbers<[1], [0], [0], [1], [0, 0, 1, 1], [], []>} : vector<8x4xf32>, vector<4x2xf32>, vector<8x2xf32> -> vector<8x2xf32>
    %182 = arith.addf %178, %179 : vector<8x2xf32>
    %183 = arith.addf %180, %181 : vector<8x2xf32>
    %184 = arith.addf %182, %183 : vector<8x2xf32>
    %185 = vector.broadcast %100 : vector<8x1xf32> to vector<8x2xf32>
    %186 = arith.addf %184, %185 : vector<8x2xf32>
    %cst_144 = arith.constant 0.000000e+00 : f32
    %187 = vector.broadcast %cst_144 : f32 to vector<8x2xf32>
    %188 = arith.maximumf %186, %187 : vector<8x2xf32>
    %cst_145 = arith.constant dense<0.000000e+00> : vector<8x2xf32>
    %189 = tpu.matmul %93, %33, %cst_145 {dimension_numbers = #tpu.dot_dimension_numbers<[1], [0], [0], [1], [0, 0, 1, 1], [], []>} : vector<8x4xf32>, vector<4x2xf32>, vector<8x2xf32> -> vector<8x2xf32>
    %cst_146 = arith.constant dense<0.000000e+00> : vector<8x2xf32>
    %190 = tpu.matmul %95, %35, %cst_146 {dimension_numbers = #tpu.dot_dimension_numbers<[1], [0], [0], [1], [0, 0, 1, 1], [], []>} : vector<8x4xf32>, vector<4x2xf32>, vector<8x2xf32> -> vector<8x2xf32>
    %cst_147 = arith.constant dense<0.000000e+00> : vector<8x2xf32>
    %191 = tpu.matmul %97, %37, %cst_147 {dimension_numbers = #tpu.dot_dimension_numbers<[1], [0], [0], [1], [0, 0, 1, 1], [], []>} : vector<8x4xf32>, vector<4x2xf32>, vector<8x2xf32> -> vector<8x2xf32>
    %cst_148 = arith.constant dense<0.000000e+00> : vector<8x2xf32>
    %192 = tpu.matmul %99, %39, %cst_148 {dimension_numbers = #tpu.dot_dimension_numbers<[1], [0], [0], [1], [0, 0, 1, 1], [], []>} : vector<8x4xf32>, vector<4x2xf32>, vector<8x2xf32> -> vector<8x2xf32>
    %193 = arith.addf %189, %190 : vector<8x2xf32>
    %194 = arith.addf %191, %192 : vector<8x2xf32>
    %195 = arith.addf %193, %194 : vector<8x2xf32>
    %196 = vector.broadcast %100 : vector<8x1xf32> to vector<8x2xf32>
    %197 = arith.addf %195, %196 : vector<8x2xf32>
    %cst_149 = arith.constant 0.000000e+00 : f32
    %198 = vector.broadcast %cst_149 : f32 to vector<8x2xf32>
    %199 = arith.maximumf %197, %198 : vector<8x2xf32>
    %cst_150 = arith.constant dense<0.000000e+00> : vector<8x2xf32>
    %200 = tpu.matmul %93, %37, %cst_150 {dimension_numbers = #tpu.dot_dimension_numbers<[1], [0], [0], [1], [0, 0, 1, 1], [], []>} : vector<8x4xf32>, vector<4x2xf32>, vector<8x2xf32> -> vector<8x2xf32>
    %cst_151 = arith.constant dense<0.000000e+00> : vector<8x2xf32>
    %201 = tpu.matmul %95, %39, %cst_151 {dimension_numbers = #tpu.dot_dimension_numbers<[1], [0], [0], [1], [0, 0, 1, 1], [], []>} : vector<8x4xf32>, vector<4x2xf32>, vector<8x2xf32> -> vector<8x2xf32>
    %cst_152 = arith.constant dense<0.000000e+00> : vector<8x2xf32>
    %202 = tpu.matmul %97, %41, %cst_152 {dimension_numbers = #tpu.dot_dimension_numbers<[1], [0], [0], [1], [0, 0, 1, 1], [], []>} : vector<8x4xf32>, vector<4x2xf32>, vector<8x2xf32> -> vector<8x2xf32>
    %cst_153 = arith.constant dense<0.000000e+00> : vector<8x2xf32>
    %203 = tpu.matmul %99, %43, %cst_153 {dimension_numbers = #tpu.dot_dimension_numbers<[1], [0], [0], [1], [0, 0, 1, 1], [], []>} : vector<8x4xf32>, vector<4x2xf32>, vector<8x2xf32> -> vector<8x2xf32>
    %204 = arith.addf %200, %201 : vector<8x2xf32>
    %205 = arith.addf %202, %203 : vector<8x2xf32>
    %206 = arith.addf %204, %205 : vector<8x2xf32>
    %207 = vector.broadcast %100 : vector<8x1xf32> to vector<8x2xf32>
    %208 = arith.addf %206, %207 : vector<8x2xf32>
    %cst_154 = arith.constant 0.000000e+00 : f32
    %209 = vector.broadcast %cst_154 : f32 to vector<8x2xf32>
    %210 = arith.maximumf %208, %209 : vector<8x2xf32>
    %cst_155 = arith.constant dense<0.000000e+00> : vector<8x2xf32>
    %211 = tpu.matmul %93, %41, %cst_155 {dimension_numbers = #tpu.dot_dimension_numbers<[1], [0], [0], [1], [0, 0, 1, 1], [], []>} : vector<8x4xf32>, vector<4x2xf32>, vector<8x2xf32> -> vector<8x2xf32>
    %cst_156 = arith.constant dense<0.000000e+00> : vector<8x2xf32>
    %212 = tpu.matmul %95, %43, %cst_156 {dimension_numbers = #tpu.dot_dimension_numbers<[1], [0], [0], [1], [0, 0, 1, 1], [], []>} : vector<8x4xf32>, vector<4x2xf32>, vector<8x2xf32> -> vector<8x2xf32>
    %cst_157 = arith.constant dense<0.000000e+00> : vector<8x2xf32>
    %213 = tpu.matmul %97, %45, %cst_157 {dimension_numbers = #tpu.dot_dimension_numbers<[1], [0], [0], [1], [0, 0, 1, 1], [], []>} : vector<8x4xf32>, vector<4x2xf32>, vector<8x2xf32> -> vector<8x2xf32>
    %cst_158 = arith.constant dense<0.000000e+00> : vector<8x2xf32>
    %214 = tpu.matmul %99, %47, %cst_158 {dimension_numbers = #tpu.dot_dimension_numbers<[1], [0], [0], [1], [0, 0, 1, 1], [], []>} : vector<8x4xf32>, vector<4x2xf32>, vector<8x2xf32> -> vector<8x2xf32>
    %215 = arith.addf %211, %212 : vector<8x2xf32>
    %216 = arith.addf %213, %214 : vector<8x2xf32>
    %217 = arith.addf %215, %216 : vector<8x2xf32>
    %218 = vector.broadcast %100 : vector<8x1xf32> to vector<8x2xf32>
    %219 = arith.addf %217, %218 : vector<8x2xf32>
    %cst_159 = arith.constant 0.000000e+00 : f32
    %220 = vector.broadcast %cst_159 : f32 to vector<8x2xf32>
    %221 = arith.maximumf %219, %220 : vector<8x2xf32>
    %cst_160 = arith.constant dense<0.000000e+00> : vector<8x2xf32>
    %222 = tpu.matmul %93, %45, %cst_160 {dimension_numbers = #tpu.dot_dimension_numbers<[1], [0], [0], [1], [0, 0, 1, 1], [], []>} : vector<8x4xf32>, vector<4x2xf32>, vector<8x2xf32> -> vector<8x2xf32>
    %cst_161 = arith.constant dense<0.000000e+00> : vector<8x2xf32>
    %223 = tpu.matmul %95, %47, %cst_161 {dimension_numbers = #tpu.dot_dimension_numbers<[1], [0], [0], [1], [0, 0, 1, 1], [], []>} : vector<8x4xf32>, vector<4x2xf32>, vector<8x2xf32> -> vector<8x2xf32>
    %cst_162 = arith.constant dense<0.000000e+00> : vector<8x2xf32>
    %224 = tpu.matmul %97, %49, %cst_162 {dimension_numbers = #tpu.dot_dimension_numbers<[1], [0], [0], [1], [0, 0, 1, 1], [], []>} : vector<8x4xf32>, vector<4x2xf32>, vector<8x2xf32> -> vector<8x2xf32>
    %cst_163 = arith.constant dense<0.000000e+00> : vector<8x2xf32>
    %225 = tpu.matmul %99, %51, %cst_163 {dimension_numbers = #tpu.dot_dimension_numbers<[1], [0], [0], [1], [0, 0, 1, 1], [], []>} : vector<8x4xf32>, vector<4x2xf32>, vector<8x2xf32> -> vector<8x2xf32>
    %226 = arith.addf %222, %223 : vector<8x2xf32>
    %227 = arith.addf %224, %225 : vector<8x2xf32>
    %228 = arith.addf %226, %227 : vector<8x2xf32>
    %229 = vector.broadcast %100 : vector<8x1xf32> to vector<8x2xf32>
    %230 = arith.addf %228, %229 : vector<8x2xf32>
    %cst_164 = arith.constant 0.000000e+00 : f32
    %231 = vector.broadcast %cst_164 : f32 to vector<8x2xf32>
    %232 = arith.maximumf %230, %231 : vector<8x2xf32>
    %cst_165 = arith.constant dense<0.000000e+00> : vector<8x2xf32>
    %233 = tpu.matmul %93, %49, %cst_165 {dimension_numbers = #tpu.dot_dimension_numbers<[1], [0], [0], [1], [0, 0, 1, 1], [], []>} : vector<8x4xf32>, vector<4x2xf32>, vector<8x2xf32> -> vector<8x2xf32>
    %cst_166 = arith.constant dense<0.000000e+00> : vector<8x2xf32>
    %234 = tpu.matmul %95, %51, %cst_166 {dimension_numbers = #tpu.dot_dimension_numbers<[1], [0], [0], [1], [0, 0, 1, 1], [], []>} : vector<8x4xf32>, vector<4x2xf32>, vector<8x2xf32> -> vector<8x2xf32>
    %cst_167 = arith.constant dense<0.000000e+00> : vector<8x2xf32>
    %235 = tpu.matmul %97, %53, %cst_167 {dimension_numbers = #tpu.dot_dimension_numbers<[1], [0], [0], [1], [0, 0, 1, 1], [], []>} : vector<8x4xf32>, vector<4x2xf32>, vector<8x2xf32> -> vector<8x2xf32>
    %cst_168 = arith.constant dense<0.000000e+00> : vector<8x2xf32>
    %236 = tpu.matmul %99, %55, %cst_168 {dimension_numbers = #tpu.dot_dimension_numbers<[1], [0], [0], [1], [0, 0, 1, 1], [], []>} : vector<8x4xf32>, vector<4x2xf32>, vector<8x2xf32> -> vector<8x2xf32>
    %237 = arith.addf %233, %234 : vector<8x2xf32>
    %238 = arith.addf %235, %236 : vector<8x2xf32>
    %239 = arith.addf %237, %238 : vector<8x2xf32>
    %240 = vector.broadcast %100 : vector<8x1xf32> to vector<8x2xf32>
    %241 = arith.addf %239, %240 : vector<8x2xf32>
    %cst_169 = arith.constant 0.000000e+00 : f32
    %242 = vector.broadcast %cst_169 : f32 to vector<8x2xf32>
    %243 = arith.maximumf %241, %242 : vector<8x2xf32>
    %cst_170 = arith.constant dense<0.000000e+00> : vector<8x2xf32>
    %244 = tpu.matmul %93, %53, %cst_170 {dimension_numbers = #tpu.dot_dimension_numbers<[1], [0], [0], [1], [0, 0, 1, 1], [], []>} : vector<8x4xf32>, vector<4x2xf32>, vector<8x2xf32> -> vector<8x2xf32>
    %cst_171 = arith.constant dense<0.000000e+00> : vector<8x2xf32>
    %245 = tpu.matmul %95, %55, %cst_171 {dimension_numbers = #tpu.dot_dimension_numbers<[1], [0], [0], [1], [0, 0, 1, 1], [], []>} : vector<8x4xf32>, vector<4x2xf32>, vector<8x2xf32> -> vector<8x2xf32>
    %cst_172 = arith.constant dense<0.000000e+00> : vector<8x2xf32>
    %246 = tpu.matmul %97, %57, %cst_172 {dimension_numbers = #tpu.dot_dimension_numbers<[1], [0], [0], [1], [0, 0, 1, 1], [], []>} : vector<8x4xf32>, vector<4x2xf32>, vector<8x2xf32> -> vector<8x2xf32>
    %cst_173 = arith.constant dense<0.000000e+00> : vector<8x2xf32>
    %247 = tpu.matmul %99, %59, %cst_173 {dimension_numbers = #tpu.dot_dimension_numbers<[1], [0], [0], [1], [0, 0, 1, 1], [], []>} : vector<8x4xf32>, vector<4x2xf32>, vector<8x2xf32> -> vector<8x2xf32>
    %248 = arith.addf %244, %245 : vector<8x2xf32>
    %249 = arith.addf %246, %247 : vector<8x2xf32>
    %250 = arith.addf %248, %249 : vector<8x2xf32>
    %251 = vector.broadcast %100 : vector<8x1xf32> to vector<8x2xf32>
    %252 = arith.addf %250, %251 : vector<8x2xf32>
    %cst_174 = arith.constant 0.000000e+00 : f32
    %253 = vector.broadcast %cst_174 : f32 to vector<8x2xf32>
    %254 = arith.maximumf %252, %253 : vector<8x2xf32>
    %cst_175 = arith.constant dense<0.000000e+00> : vector<8x2xf32>
    %255 = tpu.matmul %93, %57, %cst_175 {dimension_numbers = #tpu.dot_dimension_numbers<[1], [0], [0], [1], [0, 0, 1, 1], [], []>} : vector<8x4xf32>, vector<4x2xf32>, vector<8x2xf32> -> vector<8x2xf32>
    %cst_176 = arith.constant dense<0.000000e+00> : vector<8x2xf32>
    %256 = tpu.matmul %95, %59, %cst_176 {dimension_numbers = #tpu.dot_dimension_numbers<[1], [0], [0], [1], [0, 0, 1, 1], [], []>} : vector<8x4xf32>, vector<4x2xf32>, vector<8x2xf32> -> vector<8x2xf32>
    %cst_177 = arith.constant dense<0.000000e+00> : vector<8x2xf32>
    %257 = tpu.matmul %97, %61, %cst_177 {dimension_numbers = #tpu.dot_dimension_numbers<[1], [0], [0], [1], [0, 0, 1, 1], [], []>} : vector<8x4xf32>, vector<4x2xf32>, vector<8x2xf32> -> vector<8x2xf32>
    %cst_178 = arith.constant dense<0.000000e+00> : vector<8x2xf32>
    %258 = tpu.matmul %99, %63, %cst_178 {dimension_numbers = #tpu.dot_dimension_numbers<[1], [0], [0], [1], [0, 0, 1, 1], [], []>} : vector<8x4xf32>, vector<4x2xf32>, vector<8x2xf32> -> vector<8x2xf32>
    %259 = arith.addf %255, %256 : vector<8x2xf32>
    %260 = arith.addf %257, %258 : vector<8x2xf32>
    %261 = arith.addf %259, %260 : vector<8x2xf32>
    %262 = vector.broadcast %100 : vector<8x1xf32> to vector<8x2xf32>
    %263 = arith.addf %261, %262 : vector<8x2xf32>
    %cst_179 = arith.constant 0.000000e+00 : f32
    %264 = vector.broadcast %cst_179 : f32 to vector<8x2xf32>
    %265 = arith.maximumf %263, %264 : vector<8x2xf32>
    %cst_180 = arith.constant dense<0.000000e+00> : vector<8x2xf32>
    %266 = tpu.matmul %93, %61, %cst_180 {dimension_numbers = #tpu.dot_dimension_numbers<[1], [0], [0], [1], [0, 0, 1, 1], [], []>} : vector<8x4xf32>, vector<4x2xf32>, vector<8x2xf32> -> vector<8x2xf32>
    %cst_181 = arith.constant dense<0.000000e+00> : vector<8x2xf32>
    %267 = tpu.matmul %95, %63, %cst_181 {dimension_numbers = #tpu.dot_dimension_numbers<[1], [0], [0], [1], [0, 0, 1, 1], [], []>} : vector<8x4xf32>, vector<4x2xf32>, vector<8x2xf32> -> vector<8x2xf32>
    %cst_182 = arith.constant dense<0.000000e+00> : vector<8x2xf32>
    %268 = tpu.matmul %97, %65, %cst_182 {dimension_numbers = #tpu.dot_dimension_numbers<[1], [0], [0], [1], [0, 0, 1, 1], [], []>} : vector<8x4xf32>, vector<4x2xf32>, vector<8x2xf32> -> vector<8x2xf32>
    %cst_183 = arith.constant dense<0.000000e+00> : vector<8x2xf32>
    %269 = tpu.matmul %99, %67, %cst_183 {dimension_numbers = #tpu.dot_dimension_numbers<[1], [0], [0], [1], [0, 0, 1, 1], [], []>} : vector<8x4xf32>, vector<4x2xf32>, vector<8x2xf32> -> vector<8x2xf32>
    %270 = arith.addf %266, %267 : vector<8x2xf32>
    %271 = arith.addf %268, %269 : vector<8x2xf32>
    %272 = arith.addf %270, %271 : vector<8x2xf32>
    %273 = vector.broadcast %100 : vector<8x1xf32> to vector<8x2xf32>
    %274 = arith.addf %272, %273 : vector<8x2xf32>
    %cst_184 = arith.constant 0.000000e+00 : f32
    %275 = vector.broadcast %cst_184 : f32 to vector<8x2xf32>
    %276 = arith.maximumf %274, %275 : vector<8x2xf32>
    %cst_185 = arith.constant dense<0.000000e+00> : vector<8x2xf32>
    %277 = tpu.matmul %93, %65, %cst_185 {dimension_numbers = #tpu.dot_dimension_numbers<[1], [0], [0], [1], [0, 0, 1, 1], [], []>} : vector<8x4xf32>, vector<4x2xf32>, vector<8x2xf32> -> vector<8x2xf32>
    %cst_186 = arith.constant dense<0.000000e+00> : vector<8x2xf32>
    %278 = tpu.matmul %95, %67, %cst_186 {dimension_numbers = #tpu.dot_dimension_numbers<[1], [0], [0], [1], [0, 0, 1, 1], [], []>} : vector<8x4xf32>, vector<4x2xf32>, vector<8x2xf32> -> vector<8x2xf32>
    %cst_187 = arith.constant dense<0.000000e+00> : vector<8x2xf32>
    %279 = tpu.matmul %97, %69, %cst_187 {dimension_numbers = #tpu.dot_dimension_numbers<[1], [0], [0], [1], [0, 0, 1, 1], [], []>} : vector<8x4xf32>, vector<4x2xf32>, vector<8x2xf32> -> vector<8x2xf32>
    %cst_188 = arith.constant dense<0.000000e+00> : vector<8x2xf32>
    %280 = tpu.matmul %99, %71, %cst_188 {dimension_numbers = #tpu.dot_dimension_numbers<[1], [0], [0], [1], [0, 0, 1, 1], [], []>} : vector<8x4xf32>, vector<4x2xf32>, vector<8x2xf32> -> vector<8x2xf32>
    %281 = arith.addf %277, %278 : vector<8x2xf32>
    %282 = arith.addf %279, %280 : vector<8x2xf32>
    %283 = arith.addf %281, %282 : vector<8x2xf32>
    %284 = vector.broadcast %100 : vector<8x1xf32> to vector<8x2xf32>
    %285 = arith.addf %283, %284 : vector<8x2xf32>
    %cst_189 = arith.constant 0.000000e+00 : f32
    %286 = vector.broadcast %cst_189 : f32 to vector<8x2xf32>
    %287 = arith.maximumf %285, %286 : vector<8x2xf32>
    %cst_190 = arith.constant dense<0.000000e+00> : vector<8x2xf32>
    %288 = tpu.matmul %93, %69, %cst_190 {dimension_numbers = #tpu.dot_dimension_numbers<[1], [0], [0], [1], [0, 0, 1, 1], [], []>} : vector<8x4xf32>, vector<4x2xf32>, vector<8x2xf32> -> vector<8x2xf32>
    %cst_191 = arith.constant dense<0.000000e+00> : vector<8x2xf32>
    %289 = tpu.matmul %95, %71, %cst_191 {dimension_numbers = #tpu.dot_dimension_numbers<[1], [0], [0], [1], [0, 0, 1, 1], [], []>} : vector<8x4xf32>, vector<4x2xf32>, vector<8x2xf32> -> vector<8x2xf32>
    %cst_192 = arith.constant dense<0.000000e+00> : vector<8x2xf32>
    %290 = tpu.matmul %97, %73, %cst_192 {dimension_numbers = #tpu.dot_dimension_numbers<[1], [0], [0], [1], [0, 0, 1, 1], [], []>} : vector<8x4xf32>, vector<4x2xf32>, vector<8x2xf32> -> vector<8x2xf32>
    %cst_193 = arith.constant dense<0.000000e+00> : vector<8x2xf32>
    %291 = tpu.matmul %99, %75, %cst_193 {dimension_numbers = #tpu.dot_dimension_numbers<[1], [0], [0], [1], [0, 0, 1, 1], [], []>} : vector<8x4xf32>, vector<4x2xf32>, vector<8x2xf32> -> vector<8x2xf32>
    %292 = arith.addf %288, %289 : vector<8x2xf32>
    %293 = arith.addf %290, %291 : vector<8x2xf32>
    %294 = arith.addf %292, %293 : vector<8x2xf32>
    %295 = vector.broadcast %100 : vector<8x1xf32> to vector<8x2xf32>
    %296 = arith.addf %294, %295 : vector<8x2xf32>
    %cst_194 = arith.constant 0.000000e+00 : f32
    %297 = vector.broadcast %cst_194 : f32 to vector<8x2xf32>
    %298 = arith.maximumf %296, %297 : vector<8x2xf32>
    %cst_195 = arith.constant dense<0.000000e+00> : vector<8x2xf32>
    %299 = tpu.matmul %93, %73, %cst_195 {dimension_numbers = #tpu.dot_dimension_numbers<[1], [0], [0], [1], [0, 0, 1, 1], [], []>} : vector<8x4xf32>, vector<4x2xf32>, vector<8x2xf32> -> vector<8x2xf32>
    %cst_196 = arith.constant dense<0.000000e+00> : vector<8x2xf32>
    %300 = tpu.matmul %95, %75, %cst_196 {dimension_numbers = #tpu.dot_dimension_numbers<[1], [0], [0], [1], [0, 0, 1, 1], [], []>} : vector<8x4xf32>, vector<4x2xf32>, vector<8x2xf32> -> vector<8x2xf32>
    %cst_197 = arith.constant dense<0.000000e+00> : vector<8x2xf32>
    %301 = tpu.matmul %97, %77, %cst_197 {dimension_numbers = #tpu.dot_dimension_numbers<[1], [0], [0], [1], [0, 0, 1, 1], [], []>} : vector<8x4xf32>, vector<4x2xf32>, vector<8x2xf32> -> vector<8x2xf32>
    %cst_198 = arith.constant dense<0.000000e+00> : vector<8x2xf32>
    %302 = tpu.matmul %99, %79, %cst_198 {dimension_numbers = #tpu.dot_dimension_numbers<[1], [0], [0], [1], [0, 0, 1, 1], [], []>} : vector<8x4xf32>, vector<4x2xf32>, vector<8x2xf32> -> vector<8x2xf32>
    %303 = arith.addf %299, %300 : vector<8x2xf32>
    %304 = arith.addf %301, %302 : vector<8x2xf32>
    %305 = arith.addf %303, %304 : vector<8x2xf32>
    %306 = vector.broadcast %100 : vector<8x1xf32> to vector<8x2xf32>
    %307 = arith.addf %305, %306 : vector<8x2xf32>
    %cst_199 = arith.constant 0.000000e+00 : f32
    %308 = vector.broadcast %cst_199 : f32 to vector<8x2xf32>
    %309 = arith.maximumf %307, %308 : vector<8x2xf32>
    %cst_200 = arith.constant dense<0.000000e+00> : vector<8x2xf32>
    %310 = tpu.matmul %93, %77, %cst_200 {dimension_numbers = #tpu.dot_dimension_numbers<[1], [0], [0], [1], [0, 0, 1, 1], [], []>} : vector<8x4xf32>, vector<4x2xf32>, vector<8x2xf32> -> vector<8x2xf32>
    %cst_201 = arith.constant dense<0.000000e+00> : vector<8x2xf32>
    %311 = tpu.matmul %95, %79, %cst_201 {dimension_numbers = #tpu.dot_dimension_numbers<[1], [0], [0], [1], [0, 0, 1, 1], [], []>} : vector<8x4xf32>, vector<4x2xf32>, vector<8x2xf32> -> vector<8x2xf32>
    %cst_202 = arith.constant dense<0.000000e+00> : vector<8x2xf32>
    %312 = tpu.matmul %97, %81, %cst_202 {dimension_numbers = #tpu.dot_dimension_numbers<[1], [0], [0], [1], [0, 0, 1, 1], [], []>} : vector<8x4xf32>, vector<4x2xf32>, vector<8x2xf32> -> vector<8x2xf32>
    %cst_203 = arith.constant dense<0.000000e+00> : vector<8x2xf32>
    %313 = tpu.matmul %99, %83, %cst_203 {dimension_numbers = #tpu.dot_dimension_numbers<[1], [0], [0], [1], [0, 0, 1, 1], [], []>} : vector<8x4xf32>, vector<4x2xf32>, vector<8x2xf32> -> vector<8x2xf32>
    %314 = arith.addf %310, %311 : vector<8x2xf32>
    %315 = arith.addf %312, %313 : vector<8x2xf32>
    %316 = arith.addf %314, %315 : vector<8x2xf32>
    %317 = vector.broadcast %100 : vector<8x1xf32> to vector<8x2xf32>
    %318 = arith.addf %316, %317 : vector<8x2xf32>
    %cst_204 = arith.constant 0.000000e+00 : f32
    %319 = vector.broadcast %cst_204 : f32 to vector<8x2xf32>
    %320 = arith.maximumf %318, %319 : vector<8x2xf32>
    %cst_205 = arith.constant dense<0.000000e+00> : vector<8x2xf32>
    %321 = tpu.matmul %93, %81, %cst_205 {dimension_numbers = #tpu.dot_dimension_numbers<[1], [0], [0], [1], [0, 0, 1, 1], [], []>} : vector<8x4xf32>, vector<4x2xf32>, vector<8x2xf32> -> vector<8x2xf32>
    %cst_206 = arith.constant dense<0.000000e+00> : vector<8x2xf32>
    %322 = tpu.matmul %95, %83, %cst_206 {dimension_numbers = #tpu.dot_dimension_numbers<[1], [0], [0], [1], [0, 0, 1, 1], [], []>} : vector<8x4xf32>, vector<4x2xf32>, vector<8x2xf32> -> vector<8x2xf32>
    %cst_207 = arith.constant dense<0.000000e+00> : vector<8x2xf32>
    %323 = tpu.matmul %97, %85, %cst_207 {dimension_numbers = #tpu.dot_dimension_numbers<[1], [0], [0], [1], [0, 0, 1, 1], [], []>} : vector<8x4xf32>, vector<4x2xf32>, vector<8x2xf32> -> vector<8x2xf32>
    %cst_208 = arith.constant dense<0.000000e+00> : vector<8x2xf32>
    %324 = tpu.matmul %99, %87, %cst_208 {dimension_numbers = #tpu.dot_dimension_numbers<[1], [0], [0], [1], [0, 0, 1, 1], [], []>} : vector<8x4xf32>, vector<4x2xf32>, vector<8x2xf32> -> vector<8x2xf32>
    %325 = arith.addf %321, %322 : vector<8x2xf32>
    %326 = arith.addf %323, %324 : vector<8x2xf32>
    %327 = arith.addf %325, %326 : vector<8x2xf32>
    %328 = vector.broadcast %100 : vector<8x1xf32> to vector<8x2xf32>
    %329 = arith.addf %327, %328 : vector<8x2xf32>
    %cst_209 = arith.constant 0.000000e+00 : f32
    %330 = vector.broadcast %cst_209 : f32 to vector<8x2xf32>
    %331 = arith.maximumf %329, %330 : vector<8x2xf32>
    %cst_210 = arith.constant dense<0.000000e+00> : vector<8x2xf32>
    %332 = tpu.matmul %93, %85, %cst_210 {dimension_numbers = #tpu.dot_dimension_numbers<[1], [0], [0], [1], [0, 0, 1, 1], [], []>} : vector<8x4xf32>, vector<4x2xf32>, vector<8x2xf32> -> vector<8x2xf32>
    %cst_211 = arith.constant dense<0.000000e+00> : vector<8x2xf32>
    %333 = tpu.matmul %95, %87, %cst_211 {dimension_numbers = #tpu.dot_dimension_numbers<[1], [0], [0], [1], [0, 0, 1, 1], [], []>} : vector<8x4xf32>, vector<4x2xf32>, vector<8x2xf32> -> vector<8x2xf32>
    %cst_212 = arith.constant dense<0.000000e+00> : vector<8x2xf32>
    %334 = tpu.matmul %97, %89, %cst_212 {dimension_numbers = #tpu.dot_dimension_numbers<[1], [0], [0], [1], [0, 0, 1, 1], [], []>} : vector<8x4xf32>, vector<4x2xf32>, vector<8x2xf32> -> vector<8x2xf32>
    %cst_213 = arith.constant dense<0.000000e+00> : vector<8x2xf32>
    %335 = tpu.matmul %99, %91, %cst_213 {dimension_numbers = #tpu.dot_dimension_numbers<[1], [0], [0], [1], [0, 0, 1, 1], [], []>} : vector<8x4xf32>, vector<4x2xf32>, vector<8x2xf32> -> vector<8x2xf32>
    %336 = arith.addf %332, %333 : vector<8x2xf32>
    %337 = arith.addf %334, %335 : vector<8x2xf32>
    %338 = arith.addf %336, %337 : vector<8x2xf32>
    %339 = vector.broadcast %100 : vector<8x1xf32> to vector<8x2xf32>
    %340 = arith.addf %338, %339 : vector<8x2xf32>
    %cst_214 = arith.constant 0.000000e+00 : f32
    %341 = vector.broadcast %cst_214 : f32 to vector<8x2xf32>
    %342 = arith.maximumf %340, %341 : vector<8x2xf32>
    %c0_215 = arith.constant 0 : index
    %c0_216 = arith.constant 0 : index
    %c0_217 = arith.constant 0 : index
    %343 = vector.load %arg4[%c0_215, %c0_216, %c0_217] : memref<4x16x8xf32, #tpu.memory_space<vmem>>, vector<1x16x8xf32>
    %344 = vector.shape_cast %343 : vector<1x16x8xf32> to vector<16x8xf32>
    %c1_218 = arith.constant 1 : index
    %c0_219 = arith.constant 0 : index
    %c0_220 = arith.constant 0 : index
    %345 = vector.load %arg4[%c1_218, %c0_219, %c0_220] : memref<4x16x8xf32, #tpu.memory_space<vmem>>, vector<1x16x8xf32>
    %346 = vector.shape_cast %345 : vector<1x16x8xf32> to vector<16x8xf32>
    %c2_221 = arith.constant 2 : index
    %c0_222 = arith.constant 0 : index
    %c0_223 = arith.constant 0 : index
    %347 = vector.load %arg4[%c2_221, %c0_222, %c0_223] : memref<4x16x8xf32, #tpu.memory_space<vmem>>, vector<1x16x8xf32>
    %348 = vector.shape_cast %347 : vector<1x16x8xf32> to vector<16x8xf32>
    %c3_224 = arith.constant 3 : index
    %c0_225 = arith.constant 0 : index
    %c0_226 = arith.constant 0 : index
    %349 = vector.load %arg4[%c3_224, %c0_225, %c0_226] : memref<4x16x8xf32, #tpu.memory_space<vmem>>, vector<1x16x8xf32>
    %350 = vector.shape_cast %349 : vector<1x16x8xf32> to vector<16x8xf32>
    %c0_227 = arith.constant 0 : index
    %c0_228 = arith.constant 0 : index
    %351 = vector.load %arg5[%c0_227, %c0_228] : memref<16x1xf32, #tpu.memory_space<vmem>>, vector<16x1xf32>
    %cst_229 = arith.constant dense<0.000000e+00> : vector<16x2xf32>
    %352 = tpu.matmul %344, %111, %cst_229 {dimension_numbers = #tpu.dot_dimension_numbers<[1], [0], [0], [1], [0, 0, 1, 1], [], []>} : vector<16x8xf32>, vector<8x2xf32>, vector<16x2xf32> -> vector<16x2xf32>
    %cst_230 = arith.constant dense<0.000000e+00> : vector<16x2xf32>
    %353 = tpu.matmul %346, %122, %cst_230 {dimension_numbers = #tpu.dot_dimension_numbers<[1], [0], [0], [1], [0, 0, 1, 1], [], []>} : vector<16x8xf32>, vector<8x2xf32>, vector<16x2xf32> -> vector<16x2xf32>
    %cst_231 = arith.constant dense<0.000000e+00> : vector<16x2xf32>
    %354 = tpu.matmul %348, %133, %cst_231 {dimension_numbers = #tpu.dot_dimension_numbers<[1], [0], [0], [1], [0, 0, 1, 1], [], []>} : vector<16x8xf32>, vector<8x2xf32>, vector<16x2xf32> -> vector<16x2xf32>
    %cst_232 = arith.constant dense<0.000000e+00> : vector<16x2xf32>
    %355 = tpu.matmul %350, %144, %cst_232 {dimension_numbers = #tpu.dot_dimension_numbers<[1], [0], [0], [1], [0, 0, 1, 1], [], []>} : vector<16x8xf32>, vector<8x2xf32>, vector<16x2xf32> -> vector<16x2xf32>
    %356 = arith.addf %352, %353 : vector<16x2xf32>
    %357 = arith.addf %354, %355 : vector<16x2xf32>
    %358 = arith.addf %356, %357 : vector<16x2xf32>
    %359 = vector.broadcast %351 : vector<16x1xf32> to vector<16x2xf32>
    %360 = arith.addf %358, %359 : vector<16x2xf32>
    %cst_233 = arith.constant 0.000000e+00 : f32
    %361 = vector.broadcast %cst_233 : f32 to vector<16x2xf32>
    %362 = arith.maximumf %360, %361 : vector<16x2xf32>
    %cst_234 = arith.constant dense<0.000000e+00> : vector<16x2xf32>
    %363 = tpu.matmul %344, %133, %cst_234 {dimension_numbers = #tpu.dot_dimension_numbers<[1], [0], [0], [1], [0, 0, 1, 1], [], []>} : vector<16x8xf32>, vector<8x2xf32>, vector<16x2xf32> -> vector<16x2xf32>
    %cst_235 = arith.constant dense<0.000000e+00> : vector<16x2xf32>
    %364 = tpu.matmul %346, %144, %cst_235 {dimension_numbers = #tpu.dot_dimension_numbers<[1], [0], [0], [1], [0, 0, 1, 1], [], []>} : vector<16x8xf32>, vector<8x2xf32>, vector<16x2xf32> -> vector<16x2xf32>
    %cst_236 = arith.constant dense<0.000000e+00> : vector<16x2xf32>
    %365 = tpu.matmul %348, %155, %cst_236 {dimension_numbers = #tpu.dot_dimension_numbers<[1], [0], [0], [1], [0, 0, 1, 1], [], []>} : vector<16x8xf32>, vector<8x2xf32>, vector<16x2xf32> -> vector<16x2xf32>
    %cst_237 = arith.constant dense<0.000000e+00> : vector<16x2xf32>
    %366 = tpu.matmul %350, %166, %cst_237 {dimension_numbers = #tpu.dot_dimension_numbers<[1], [0], [0], [1], [0, 0, 1, 1], [], []>} : vector<16x8xf32>, vector<8x2xf32>, vector<16x2xf32> -> vector<16x2xf32>
    %367 = arith.addf %363, %364 : vector<16x2xf32>
    %368 = arith.addf %365, %366 : vector<16x2xf32>
    %369 = arith.addf %367, %368 : vector<16x2xf32>
    %370 = vector.broadcast %351 : vector<16x1xf32> to vector<16x2xf32>
    %371 = arith.addf %369, %370 : vector<16x2xf32>
    %cst_238 = arith.constant 0.000000e+00 : f32
    %372 = vector.broadcast %cst_238 : f32 to vector<16x2xf32>
    %373 = arith.maximumf %371, %372 : vector<16x2xf32>
    %cst_239 = arith.constant dense<0.000000e+00> : vector<16x2xf32>
    %374 = tpu.matmul %344, %155, %cst_239 {dimension_numbers = #tpu.dot_dimension_numbers<[1], [0], [0], [1], [0, 0, 1, 1], [], []>} : vector<16x8xf32>, vector<8x2xf32>, vector<16x2xf32> -> vector<16x2xf32>
    %cst_240 = arith.constant dense<0.000000e+00> : vector<16x2xf32>
    %375 = tpu.matmul %346, %166, %cst_240 {dimension_numbers = #tpu.dot_dimension_numbers<[1], [0], [0], [1], [0, 0, 1, 1], [], []>} : vector<16x8xf32>, vector<8x2xf32>, vector<16x2xf32> -> vector<16x2xf32>
    %cst_241 = arith.constant dense<0.000000e+00> : vector<16x2xf32>
    %376 = tpu.matmul %348, %177, %cst_241 {dimension_numbers = #tpu.dot_dimension_numbers<[1], [0], [0], [1], [0, 0, 1, 1], [], []>} : vector<16x8xf32>, vector<8x2xf32>, vector<16x2xf32> -> vector<16x2xf32>
    %cst_242 = arith.constant dense<0.000000e+00> : vector<16x2xf32>
    %377 = tpu.matmul %350, %188, %cst_242 {dimension_numbers = #tpu.dot_dimension_numbers<[1], [0], [0], [1], [0, 0, 1, 1], [], []>} : vector<16x8xf32>, vector<8x2xf32>, vector<16x2xf32> -> vector<16x2xf32>
    %378 = arith.addf %374, %375 : vector<16x2xf32>
    %379 = arith.addf %376, %377 : vector<16x2xf32>
    %380 = arith.addf %378, %379 : vector<16x2xf32>
    %381 = vector.broadcast %351 : vector<16x1xf32> to vector<16x2xf32>
    %382 = arith.addf %380, %381 : vector<16x2xf32>
    %cst_243 = arith.constant 0.000000e+00 : f32
    %383 = vector.broadcast %cst_243 : f32 to vector<16x2xf32>
    %384 = arith.maximumf %382, %383 : vector<16x2xf32>
    %cst_244 = arith.constant dense<0.000000e+00> : vector<16x2xf32>
    %385 = tpu.matmul %344, %177, %cst_244 {dimension_numbers = #tpu.dot_dimension_numbers<[1], [0], [0], [1], [0, 0, 1, 1], [], []>} : vector<16x8xf32>, vector<8x2xf32>, vector<16x2xf32> -> vector<16x2xf32>
    %cst_245 = arith.constant dense<0.000000e+00> : vector<16x2xf32>
    %386 = tpu.matmul %346, %188, %cst_245 {dimension_numbers = #tpu.dot_dimension_numbers<[1], [0], [0], [1], [0, 0, 1, 1], [], []>} : vector<16x8xf32>, vector<8x2xf32>, vector<16x2xf32> -> vector<16x2xf32>
    %cst_246 = arith.constant dense<0.000000e+00> : vector<16x2xf32>
    %387 = tpu.matmul %348, %199, %cst_246 {dimension_numbers = #tpu.dot_dimension_numbers<[1], [0], [0], [1], [0, 0, 1, 1], [], []>} : vector<16x8xf32>, vector<8x2xf32>, vector<16x2xf32> -> vector<16x2xf32>
    %cst_247 = arith.constant dense<0.000000e+00> : vector<16x2xf32>
    %388 = tpu.matmul %350, %210, %cst_247 {dimension_numbers = #tpu.dot_dimension_numbers<[1], [0], [0], [1], [0, 0, 1, 1], [], []>} : vector<16x8xf32>, vector<8x2xf32>, vector<16x2xf32> -> vector<16x2xf32>
    %389 = arith.addf %385, %386 : vector<16x2xf32>
    %390 = arith.addf %387, %388 : vector<16x2xf32>
    %391 = arith.addf %389, %390 : vector<16x2xf32>
    %392 = vector.broadcast %351 : vector<16x1xf32> to vector<16x2xf32>
    %393 = arith.addf %391, %392 : vector<16x2xf32>
    %cst_248 = arith.constant 0.000000e+00 : f32
    %394 = vector.broadcast %cst_248 : f32 to vector<16x2xf32>
    %395 = arith.maximumf %393, %394 : vector<16x2xf32>
    %cst_249 = arith.constant dense<0.000000e+00> : vector<16x2xf32>
    %396 = tpu.matmul %344, %199, %cst_249 {dimension_numbers = #tpu.dot_dimension_numbers<[1], [0], [0], [1], [0, 0, 1, 1], [], []>} : vector<16x8xf32>, vector<8x2xf32>, vector<16x2xf32> -> vector<16x2xf32>
    %cst_250 = arith.constant dense<0.000000e+00> : vector<16x2xf32>
    %397 = tpu.matmul %346, %210, %cst_250 {dimension_numbers = #tpu.dot_dimension_numbers<[1], [0], [0], [1], [0, 0, 1, 1], [], []>} : vector<16x8xf32>, vector<8x2xf32>, vector<16x2xf32> -> vector<16x2xf32>
    %cst_251 = arith.constant dense<0.000000e+00> : vector<16x2xf32>
    %398 = tpu.matmul %348, %221, %cst_251 {dimension_numbers = #tpu.dot_dimension_numbers<[1], [0], [0], [1], [0, 0, 1, 1], [], []>} : vector<16x8xf32>, vector<8x2xf32>, vector<16x2xf32> -> vector<16x2xf32>
    %cst_252 = arith.constant dense<0.000000e+00> : vector<16x2xf32>
    %399 = tpu.matmul %350, %232, %cst_252 {dimension_numbers = #tpu.dot_dimension_numbers<[1], [0], [0], [1], [0, 0, 1, 1], [], []>} : vector<16x8xf32>, vector<8x2xf32>, vector<16x2xf32> -> vector<16x2xf32>
    %400 = arith.addf %396, %397 : vector<16x2xf32>
    %401 = arith.addf %398, %399 : vector<16x2xf32>
    %402 = arith.addf %400, %401 : vector<16x2xf32>
    %403 = vector.broadcast %351 : vector<16x1xf32> to vector<16x2xf32>
    %404 = arith.addf %402, %403 : vector<16x2xf32>
    %cst_253 = arith.constant 0.000000e+00 : f32
    %405 = vector.broadcast %cst_253 : f32 to vector<16x2xf32>
    %406 = arith.maximumf %404, %405 : vector<16x2xf32>
    %cst_254 = arith.constant dense<0.000000e+00> : vector<16x2xf32>
    %407 = tpu.matmul %344, %221, %cst_254 {dimension_numbers = #tpu.dot_dimension_numbers<[1], [0], [0], [1], [0, 0, 1, 1], [], []>} : vector<16x8xf32>, vector<8x2xf32>, vector<16x2xf32> -> vector<16x2xf32>
    %cst_255 = arith.constant dense<0.000000e+00> : vector<16x2xf32>
    %408 = tpu.matmul %346, %232, %cst_255 {dimension_numbers = #tpu.dot_dimension_numbers<[1], [0], [0], [1], [0, 0, 1, 1], [], []>} : vector<16x8xf32>, vector<8x2xf32>, vector<16x2xf32> -> vector<16x2xf32>
    %cst_256 = arith.constant dense<0.000000e+00> : vector<16x2xf32>
    %409 = tpu.matmul %348, %243, %cst_256 {dimension_numbers = #tpu.dot_dimension_numbers<[1], [0], [0], [1], [0, 0, 1, 1], [], []>} : vector<16x8xf32>, vector<8x2xf32>, vector<16x2xf32> -> vector<16x2xf32>
    %cst_257 = arith.constant dense<0.000000e+00> : vector<16x2xf32>
    %410 = tpu.matmul %350, %254, %cst_257 {dimension_numbers = #tpu.dot_dimension_numbers<[1], [0], [0], [1], [0, 0, 1, 1], [], []>} : vector<16x8xf32>, vector<8x2xf32>, vector<16x2xf32> -> vector<16x2xf32>
    %411 = arith.addf %407, %408 : vector<16x2xf32>
    %412 = arith.addf %409, %410 : vector<16x2xf32>
    %413 = arith.addf %411, %412 : vector<16x2xf32>
    %414 = vector.broadcast %351 : vector<16x1xf32> to vector<16x2xf32>
    %415 = arith.addf %413, %414 : vector<16x2xf32>
    %cst_258 = arith.constant 0.000000e+00 : f32
    %416 = vector.broadcast %cst_258 : f32 to vector<16x2xf32>
    %417 = arith.maximumf %415, %416 : vector<16x2xf32>
    %cst_259 = arith.constant dense<0.000000e+00> : vector<16x2xf32>
    %418 = tpu.matmul %344, %243, %cst_259 {dimension_numbers = #tpu.dot_dimension_numbers<[1], [0], [0], [1], [0, 0, 1, 1], [], []>} : vector<16x8xf32>, vector<8x2xf32>, vector<16x2xf32> -> vector<16x2xf32>
    %cst_260 = arith.constant dense<0.000000e+00> : vector<16x2xf32>
    %419 = tpu.matmul %346, %254, %cst_260 {dimension_numbers = #tpu.dot_dimension_numbers<[1], [0], [0], [1], [0, 0, 1, 1], [], []>} : vector<16x8xf32>, vector<8x2xf32>, vector<16x2xf32> -> vector<16x2xf32>
    %cst_261 = arith.constant dense<0.000000e+00> : vector<16x2xf32>
    %420 = tpu.matmul %348, %265, %cst_261 {dimension_numbers = #tpu.dot_dimension_numbers<[1], [0], [0], [1], [0, 0, 1, 1], [], []>} : vector<16x8xf32>, vector<8x2xf32>, vector<16x2xf32> -> vector<16x2xf32>
    %cst_262 = arith.constant dense<0.000000e+00> : vector<16x2xf32>
    %421 = tpu.matmul %350, %276, %cst_262 {dimension_numbers = #tpu.dot_dimension_numbers<[1], [0], [0], [1], [0, 0, 1, 1], [], []>} : vector<16x8xf32>, vector<8x2xf32>, vector<16x2xf32> -> vector<16x2xf32>
    %422 = arith.addf %418, %419 : vector<16x2xf32>
    %423 = arith.addf %420, %421 : vector<16x2xf32>
    %424 = arith.addf %422, %423 : vector<16x2xf32>
    %425 = vector.broadcast %351 : vector<16x1xf32> to vector<16x2xf32>
    %426 = arith.addf %424, %425 : vector<16x2xf32>
    %cst_263 = arith.constant 0.000000e+00 : f32
    %427 = vector.broadcast %cst_263 : f32 to vector<16x2xf32>
    %428 = arith.maximumf %426, %427 : vector<16x2xf32>
    %cst_264 = arith.constant dense<0.000000e+00> : vector<16x2xf32>
    %429 = tpu.matmul %344, %265, %cst_264 {dimension_numbers = #tpu.dot_dimension_numbers<[1], [0], [0], [1], [0, 0, 1, 1], [], []>} : vector<16x8xf32>, vector<8x2xf32>, vector<16x2xf32> -> vector<16x2xf32>
    %cst_265 = arith.constant dense<0.000000e+00> : vector<16x2xf32>
    %430 = tpu.matmul %346, %276, %cst_265 {dimension_numbers = #tpu.dot_dimension_numbers<[1], [0], [0], [1], [0, 0, 1, 1], [], []>} : vector<16x8xf32>, vector<8x2xf32>, vector<16x2xf32> -> vector<16x2xf32>
    %cst_266 = arith.constant dense<0.000000e+00> : vector<16x2xf32>
    %431 = tpu.matmul %348, %287, %cst_266 {dimension_numbers = #tpu.dot_dimension_numbers<[1], [0], [0], [1], [0, 0, 1, 1], [], []>} : vector<16x8xf32>, vector<8x2xf32>, vector<16x2xf32> -> vector<16x2xf32>
    %cst_267 = arith.constant dense<0.000000e+00> : vector<16x2xf32>
    %432 = tpu.matmul %350, %298, %cst_267 {dimension_numbers = #tpu.dot_dimension_numbers<[1], [0], [0], [1], [0, 0, 1, 1], [], []>} : vector<16x8xf32>, vector<8x2xf32>, vector<16x2xf32> -> vector<16x2xf32>
    %433 = arith.addf %429, %430 : vector<16x2xf32>
    %434 = arith.addf %431, %432 : vector<16x2xf32>
    %435 = arith.addf %433, %434 : vector<16x2xf32>
    %436 = vector.broadcast %351 : vector<16x1xf32> to vector<16x2xf32>
    %437 = arith.addf %435, %436 : vector<16x2xf32>
    %cst_268 = arith.constant 0.000000e+00 : f32
    %438 = vector.broadcast %cst_268 : f32 to vector<16x2xf32>
    %439 = arith.maximumf %437, %438 : vector<16x2xf32>
    %cst_269 = arith.constant dense<0.000000e+00> : vector<16x2xf32>
    %440 = tpu.matmul %344, %287, %cst_269 {dimension_numbers = #tpu.dot_dimension_numbers<[1], [0], [0], [1], [0, 0, 1, 1], [], []>} : vector<16x8xf32>, vector<8x2xf32>, vector<16x2xf32> -> vector<16x2xf32>
    %cst_270 = arith.constant dense<0.000000e+00> : vector<16x2xf32>
    %441 = tpu.matmul %346, %298, %cst_270 {dimension_numbers = #tpu.dot_dimension_numbers<[1], [0], [0], [1], [0, 0, 1, 1], [], []>} : vector<16x8xf32>, vector<8x2xf32>, vector<16x2xf32> -> vector<16x2xf32>
    %cst_271 = arith.constant dense<0.000000e+00> : vector<16x2xf32>
    %442 = tpu.matmul %348, %309, %cst_271 {dimension_numbers = #tpu.dot_dimension_numbers<[1], [0], [0], [1], [0, 0, 1, 1], [], []>} : vector<16x8xf32>, vector<8x2xf32>, vector<16x2xf32> -> vector<16x2xf32>
    %cst_272 = arith.constant dense<0.000000e+00> : vector<16x2xf32>
    %443 = tpu.matmul %350, %320, %cst_272 {dimension_numbers = #tpu.dot_dimension_numbers<[1], [0], [0], [1], [0, 0, 1, 1], [], []>} : vector<16x8xf32>, vector<8x2xf32>, vector<16x2xf32> -> vector<16x2xf32>
    %444 = arith.addf %440, %441 : vector<16x2xf32>
    %445 = arith.addf %442, %443 : vector<16x2xf32>
    %446 = arith.addf %444, %445 : vector<16x2xf32>
    %447 = vector.broadcast %351 : vector<16x1xf32> to vector<16x2xf32>
    %448 = arith.addf %446, %447 : vector<16x2xf32>
    %cst_273 = arith.constant 0.000000e+00 : f32
    %449 = vector.broadcast %cst_273 : f32 to vector<16x2xf32>
    %450 = arith.maximumf %448, %449 : vector<16x2xf32>
    %cst_274 = arith.constant dense<0.000000e+00> : vector<16x2xf32>
    %451 = tpu.matmul %344, %309, %cst_274 {dimension_numbers = #tpu.dot_dimension_numbers<[1], [0], [0], [1], [0, 0, 1, 1], [], []>} : vector<16x8xf32>, vector<8x2xf32>, vector<16x2xf32> -> vector<16x2xf32>
    %cst_275 = arith.constant dense<0.000000e+00> : vector<16x2xf32>
    %452 = tpu.matmul %346, %320, %cst_275 {dimension_numbers = #tpu.dot_dimension_numbers<[1], [0], [0], [1], [0, 0, 1, 1], [], []>} : vector<16x8xf32>, vector<8x2xf32>, vector<16x2xf32> -> vector<16x2xf32>
    %cst_276 = arith.constant dense<0.000000e+00> : vector<16x2xf32>
    %453 = tpu.matmul %348, %331, %cst_276 {dimension_numbers = #tpu.dot_dimension_numbers<[1], [0], [0], [1], [0, 0, 1, 1], [], []>} : vector<16x8xf32>, vector<8x2xf32>, vector<16x2xf32> -> vector<16x2xf32>
    %cst_277 = arith.constant dense<0.000000e+00> : vector<16x2xf32>
    %454 = tpu.matmul %350, %342, %cst_277 {dimension_numbers = #tpu.dot_dimension_numbers<[1], [0], [0], [1], [0, 0, 1, 1], [], []>} : vector<16x8xf32>, vector<8x2xf32>, vector<16x2xf32> -> vector<16x2xf32>
    %455 = arith.addf %451, %452 : vector<16x2xf32>
    %456 = arith.addf %453, %454 : vector<16x2xf32>
    %457 = arith.addf %455, %456 : vector<16x2xf32>
    %458 = vector.broadcast %351 : vector<16x1xf32> to vector<16x2xf32>
    %459 = arith.addf %457, %458 : vector<16x2xf32>
    %cst_278 = arith.constant 0.000000e+00 : f32
    %460 = vector.broadcast %cst_278 : f32 to vector<16x2xf32>
    %461 = arith.maximumf %459, %460 : vector<16x2xf32>
    %c0_279 = arith.constant 0 : index
    %c0_280 = arith.constant 0 : index
    %c0_281 = arith.constant 0 : index
    %462 = vector.load %arg6[%c0_279, %c0_280, %c0_281] : memref<4x32x16xf32, #tpu.memory_space<vmem>>, vector<1x32x16xf32>
    %463 = vector.shape_cast %462 : vector<1x32x16xf32> to vector<32x16xf32>
    %c1_282 = arith.constant 1 : index
    %c0_283 = arith.constant 0 : index
    %c0_284 = arith.constant 0 : index
    %464 = vector.load %arg6[%c1_282, %c0_283, %c0_284] : memref<4x32x16xf32, #tpu.memory_space<vmem>>, vector<1x32x16xf32>
    %465 = vector.shape_cast %464 : vector<1x32x16xf32> to vector<32x16xf32>
    %c2_285 = arith.constant 2 : index
    %c0_286 = arith.constant 0 : index
    %c0_287 = arith.constant 0 : index
    %466 = vector.load %arg6[%c2_285, %c0_286, %c0_287] : memref<4x32x16xf32, #tpu.memory_space<vmem>>, vector<1x32x16xf32>
    %467 = vector.shape_cast %466 : vector<1x32x16xf32> to vector<32x16xf32>
    %c3_288 = arith.constant 3 : index
    %c0_289 = arith.constant 0 : index
    %c0_290 = arith.constant 0 : index
    %468 = vector.load %arg6[%c3_288, %c0_289, %c0_290] : memref<4x32x16xf32, #tpu.memory_space<vmem>>, vector<1x32x16xf32>
    %469 = vector.shape_cast %468 : vector<1x32x16xf32> to vector<32x16xf32>
    %c0_291 = arith.constant 0 : index
    %c0_292 = arith.constant 0 : index
    %470 = vector.load %arg7[%c0_291, %c0_292] : memref<32x1xf32, #tpu.memory_space<vmem>>, vector<32x1xf32>
    %cst_293 = arith.constant dense<0.000000e+00> : vector<32x2xf32>
    %471 = tpu.matmul %463, %362, %cst_293 {dimension_numbers = #tpu.dot_dimension_numbers<[1], [0], [0], [1], [0, 0, 1, 1], [], []>} : vector<32x16xf32>, vector<16x2xf32>, vector<32x2xf32> -> vector<32x2xf32>
    %cst_294 = arith.constant dense<0.000000e+00> : vector<32x2xf32>
    %472 = tpu.matmul %465, %373, %cst_294 {dimension_numbers = #tpu.dot_dimension_numbers<[1], [0], [0], [1], [0, 0, 1, 1], [], []>} : vector<32x16xf32>, vector<16x2xf32>, vector<32x2xf32> -> vector<32x2xf32>
    %cst_295 = arith.constant dense<0.000000e+00> : vector<32x2xf32>
    %473 = tpu.matmul %467, %384, %cst_295 {dimension_numbers = #tpu.dot_dimension_numbers<[1], [0], [0], [1], [0, 0, 1, 1], [], []>} : vector<32x16xf32>, vector<16x2xf32>, vector<32x2xf32> -> vector<32x2xf32>
    %cst_296 = arith.constant dense<0.000000e+00> : vector<32x2xf32>
    %474 = tpu.matmul %469, %395, %cst_296 {dimension_numbers = #tpu.dot_dimension_numbers<[1], [0], [0], [1], [0, 0, 1, 1], [], []>} : vector<32x16xf32>, vector<16x2xf32>, vector<32x2xf32> -> vector<32x2xf32>
    %475 = arith.addf %471, %472 : vector<32x2xf32>
    %476 = arith.addf %473, %474 : vector<32x2xf32>
    %477 = arith.addf %475, %476 : vector<32x2xf32>
    %478 = vector.broadcast %470 : vector<32x1xf32> to vector<32x2xf32>
    %479 = arith.addf %477, %478 : vector<32x2xf32>
    %cst_297 = arith.constant 0.000000e+00 : f32
    %480 = vector.broadcast %cst_297 : f32 to vector<32x2xf32>
    %481 = arith.maximumf %479, %480 : vector<32x2xf32>
    %cst_298 = arith.constant dense<0.000000e+00> : vector<32x2xf32>
    %482 = tpu.matmul %463, %384, %cst_298 {dimension_numbers = #tpu.dot_dimension_numbers<[1], [0], [0], [1], [0, 0, 1, 1], [], []>} : vector<32x16xf32>, vector<16x2xf32>, vector<32x2xf32> -> vector<32x2xf32>
    %cst_299 = arith.constant dense<0.000000e+00> : vector<32x2xf32>
    %483 = tpu.matmul %465, %395, %cst_299 {dimension_numbers = #tpu.dot_dimension_numbers<[1], [0], [0], [1], [0, 0, 1, 1], [], []>} : vector<32x16xf32>, vector<16x2xf32>, vector<32x2xf32> -> vector<32x2xf32>
    %cst_300 = arith.constant dense<0.000000e+00> : vector<32x2xf32>
    %484 = tpu.matmul %467, %406, %cst_300 {dimension_numbers = #tpu.dot_dimension_numbers<[1], [0], [0], [1], [0, 0, 1, 1], [], []>} : vector<32x16xf32>, vector<16x2xf32>, vector<32x2xf32> -> vector<32x2xf32>
    %cst_301 = arith.constant dense<0.000000e+00> : vector<32x2xf32>
    %485 = tpu.matmul %469, %417, %cst_301 {dimension_numbers = #tpu.dot_dimension_numbers<[1], [0], [0], [1], [0, 0, 1, 1], [], []>} : vector<32x16xf32>, vector<16x2xf32>, vector<32x2xf32> -> vector<32x2xf32>
    %486 = arith.addf %482, %483 : vector<32x2xf32>
    %487 = arith.addf %484, %485 : vector<32x2xf32>
    %488 = arith.addf %486, %487 : vector<32x2xf32>
    %489 = vector.broadcast %470 : vector<32x1xf32> to vector<32x2xf32>
    %490 = arith.addf %488, %489 : vector<32x2xf32>
    %cst_302 = arith.constant 0.000000e+00 : f32
    %491 = vector.broadcast %cst_302 : f32 to vector<32x2xf32>
    %492 = arith.maximumf %490, %491 : vector<32x2xf32>
    %cst_303 = arith.constant dense<0.000000e+00> : vector<32x2xf32>
    %493 = tpu.matmul %463, %406, %cst_303 {dimension_numbers = #tpu.dot_dimension_numbers<[1], [0], [0], [1], [0, 0, 1, 1], [], []>} : vector<32x16xf32>, vector<16x2xf32>, vector<32x2xf32> -> vector<32x2xf32>
    %cst_304 = arith.constant dense<0.000000e+00> : vector<32x2xf32>
    %494 = tpu.matmul %465, %417, %cst_304 {dimension_numbers = #tpu.dot_dimension_numbers<[1], [0], [0], [1], [0, 0, 1, 1], [], []>} : vector<32x16xf32>, vector<16x2xf32>, vector<32x2xf32> -> vector<32x2xf32>
    %cst_305 = arith.constant dense<0.000000e+00> : vector<32x2xf32>
    %495 = tpu.matmul %467, %428, %cst_305 {dimension_numbers = #tpu.dot_dimension_numbers<[1], [0], [0], [1], [0, 0, 1, 1], [], []>} : vector<32x16xf32>, vector<16x2xf32>, vector<32x2xf32> -> vector<32x2xf32>
    %cst_306 = arith.constant dense<0.000000e+00> : vector<32x2xf32>
    %496 = tpu.matmul %469, %439, %cst_306 {dimension_numbers = #tpu.dot_dimension_numbers<[1], [0], [0], [1], [0, 0, 1, 1], [], []>} : vector<32x16xf32>, vector<16x2xf32>, vector<32x2xf32> -> vector<32x2xf32>
    %497 = arith.addf %493, %494 : vector<32x2xf32>
    %498 = arith.addf %495, %496 : vector<32x2xf32>
    %499 = arith.addf %497, %498 : vector<32x2xf32>
    %500 = vector.broadcast %470 : vector<32x1xf32> to vector<32x2xf32>
    %501 = arith.addf %499, %500 : vector<32x2xf32>
    %cst_307 = arith.constant 0.000000e+00 : f32
    %502 = vector.broadcast %cst_307 : f32 to vector<32x2xf32>
    %503 = arith.maximumf %501, %502 : vector<32x2xf32>
    %cst_308 = arith.constant dense<0.000000e+00> : vector<32x2xf32>
    %504 = tpu.matmul %463, %428, %cst_308 {dimension_numbers = #tpu.dot_dimension_numbers<[1], [0], [0], [1], [0, 0, 1, 1], [], []>} : vector<32x16xf32>, vector<16x2xf32>, vector<32x2xf32> -> vector<32x2xf32>
    %cst_309 = arith.constant dense<0.000000e+00> : vector<32x2xf32>
    %505 = tpu.matmul %465, %439, %cst_309 {dimension_numbers = #tpu.dot_dimension_numbers<[1], [0], [0], [1], [0, 0, 1, 1], [], []>} : vector<32x16xf32>, vector<16x2xf32>, vector<32x2xf32> -> vector<32x2xf32>
    %cst_310 = arith.constant dense<0.000000e+00> : vector<32x2xf32>
    %506 = tpu.matmul %467, %450, %cst_310 {dimension_numbers = #tpu.dot_dimension_numbers<[1], [0], [0], [1], [0, 0, 1, 1], [], []>} : vector<32x16xf32>, vector<16x2xf32>, vector<32x2xf32> -> vector<32x2xf32>
    %cst_311 = arith.constant dense<0.000000e+00> : vector<32x2xf32>
    %507 = tpu.matmul %469, %461, %cst_311 {dimension_numbers = #tpu.dot_dimension_numbers<[1], [0], [0], [1], [0, 0, 1, 1], [], []>} : vector<32x16xf32>, vector<16x2xf32>, vector<32x2xf32> -> vector<32x2xf32>
    %508 = arith.addf %504, %505 : vector<32x2xf32>
    %509 = arith.addf %506, %507 : vector<32x2xf32>
    %510 = arith.addf %508, %509 : vector<32x2xf32>
    %511 = vector.broadcast %470 : vector<32x1xf32> to vector<32x2xf32>
    %512 = arith.addf %510, %511 : vector<32x2xf32>
    %cst_312 = arith.constant 0.000000e+00 : f32
    %513 = vector.broadcast %cst_312 : f32 to vector<32x2xf32>
    %514 = arith.maximumf %512, %513 : vector<32x2xf32>
    %c0_313 = arith.constant 0 : index
    %c0_314 = arith.constant 0 : index
    %c0_315 = arith.constant 0 : index
    %515 = vector.load %arg8[%c0_313, %c0_314, %c0_315] : memref<4x64x32xf32, #tpu.memory_space<vmem>>, vector<1x64x32xf32>
    %516 = vector.shape_cast %515 : vector<1x64x32xf32> to vector<64x32xf32>
    %c1_316 = arith.constant 1 : index
    %c0_317 = arith.constant 0 : index
    %c0_318 = arith.constant 0 : index
    %517 = vector.load %arg8[%c1_316, %c0_317, %c0_318] : memref<4x64x32xf32, #tpu.memory_space<vmem>>, vector<1x64x32xf32>
    %518 = vector.shape_cast %517 : vector<1x64x32xf32> to vector<64x32xf32>
    %c2_319 = arith.constant 2 : index
    %c0_320 = arith.constant 0 : index
    %c0_321 = arith.constant 0 : index
    %519 = vector.load %arg8[%c2_319, %c0_320, %c0_321] : memref<4x64x32xf32, #tpu.memory_space<vmem>>, vector<1x64x32xf32>
    %520 = vector.shape_cast %519 : vector<1x64x32xf32> to vector<64x32xf32>
    %c3_322 = arith.constant 3 : index
    %c0_323 = arith.constant 0 : index
    %c0_324 = arith.constant 0 : index
    %521 = vector.load %arg8[%c3_322, %c0_323, %c0_324] : memref<4x64x32xf32, #tpu.memory_space<vmem>>, vector<1x64x32xf32>
    %522 = vector.shape_cast %521 : vector<1x64x32xf32> to vector<64x32xf32>
    %c0_325 = arith.constant 0 : index
    %c0_326 = arith.constant 0 : index
    %523 = vector.load %arg9[%c0_325, %c0_326] : memref<64x1xf32, #tpu.memory_space<vmem>>, vector<64x1xf32>
    %cst_327 = arith.constant dense<0.000000e+00> : vector<64x2xf32>
    %524 = tpu.matmul %516, %481, %cst_327 {dimension_numbers = #tpu.dot_dimension_numbers<[1], [0], [0], [1], [0, 0, 1, 1], [], []>} : vector<64x32xf32>, vector<32x2xf32>, vector<64x2xf32> -> vector<64x2xf32>
    %cst_328 = arith.constant dense<0.000000e+00> : vector<64x2xf32>
    %525 = tpu.matmul %518, %492, %cst_328 {dimension_numbers = #tpu.dot_dimension_numbers<[1], [0], [0], [1], [0, 0, 1, 1], [], []>} : vector<64x32xf32>, vector<32x2xf32>, vector<64x2xf32> -> vector<64x2xf32>
    %cst_329 = arith.constant dense<0.000000e+00> : vector<64x2xf32>
    %526 = tpu.matmul %520, %503, %cst_329 {dimension_numbers = #tpu.dot_dimension_numbers<[1], [0], [0], [1], [0, 0, 1, 1], [], []>} : vector<64x32xf32>, vector<32x2xf32>, vector<64x2xf32> -> vector<64x2xf32>
    %cst_330 = arith.constant dense<0.000000e+00> : vector<64x2xf32>
    %527 = tpu.matmul %522, %514, %cst_330 {dimension_numbers = #tpu.dot_dimension_numbers<[1], [0], [0], [1], [0, 0, 1, 1], [], []>} : vector<64x32xf32>, vector<32x2xf32>, vector<64x2xf32> -> vector<64x2xf32>
    %528 = arith.addf %524, %525 : vector<64x2xf32>
    %529 = arith.addf %526, %527 : vector<64x2xf32>
    %530 = arith.addf %528, %529 : vector<64x2xf32>
    %531 = vector.broadcast %523 : vector<64x1xf32> to vector<64x2xf32>
    %532 = arith.addf %530, %531 : vector<64x2xf32>
    %cst_331 = arith.constant 0.000000e+00 : f32
    %533 = vector.broadcast %cst_331 : f32 to vector<64x2xf32>
    %534 = arith.maximumf %532, %533 : vector<64x2xf32>
    %c0_332 = arith.constant 0 : index
    %c0_333 = arith.constant 0 : index
    %535 = vector.load %arg10[%c0_332, %c0_333] : memref<64x1xf32, #tpu.memory_space<vmem>>, vector<64x1xf32>
    %536 = vector.broadcast %535 : vector<64x1xf32> to vector<64x2xf32>
    %537 = arith.mulf %534, %536 : vector<64x2xf32>
    %cst_334 = arith.constant dense<0.000000e+00> : vector<2xf32>
    %538 = vector.multi_reduction <add>, %537, %cst_334 [0] : vector<64x2xf32> to vector<2xf32>
    %539 = vector.shape_cast %538 : vector<2xf32> to vector<1x2xf32>
    %c0_335 = arith.constant 0 : index
    %c0_336 = arith.constant 0 : index
    %540 = vector.load %arg11[%c0_335, %c0_336] : memref<1x1xf32, #tpu.memory_space<vmem>>, vector<1x1xf32>
    %541 = vector.broadcast %540 : vector<1x1xf32> to vector<1x2xf32>
    %542 = arith.addf %539, %541 : vector<1x2xf32>
    %c0_337 = arith.constant 0 : index
    %c0_338 = arith.constant 0 : index
    %543 = vector.load %arg12[%c0_337, %c0_338] : memref<1x2xf32, #tpu.memory_space<vmem>>, vector<1x2xf32>
    tpu.vector_store %arg12[%c0_337, %c0_338], %542 {strides = array<i32>} : memref<1x2xf32, #tpu.memory_space<vmem>>, vector<1x2xf32>,
    return
  }
  func.func @transform_0(%arg0: i32) -> (i32, i32, i32) {
    %c0_i32 = arith.constant 0 : i32
    %c0_i32_0 = arith.constant 0 : i32
    %c0_i32_1 = arith.constant 0 : i32
    return %c0_i32, %c0_i32_0, %arg0 : i32, i32, i32
  }
  func.func @transform_1(%arg0: i32) -> (i32, i32, i32) {
    %c0_i32 = arith.constant 0 : i32
    %c0_i32_0 = arith.constant 0 : i32
    %c0_i32_1 = arith.constant 0 : i32
    %c0_i32_2 = arith.constant 0 : i32
    return %c0_i32, %c0_i32_0, %c0_i32_1 : i32, i32, i32
  }
  func.func @transform_2(%arg0: i32) -> (i32, i32) {
    %c0_i32 = arith.constant 0 : i32
    %c0_i32_0 = arith.constant 0 : i32
    %c0_i32_1 = arith.constant 0 : i32
    return %c0_i32, %c0_i32_0 : i32, i32
  }
  func.func @transform_3(%arg0: i32) -> (i32, i32, i32) {
    %c0_i32 = arith.constant 0 : i32
    %c0_i32_0 = arith.constant 0 : i32
    %c0_i32_1 = arith.constant 0 : i32
    %c0_i32_2 = arith.constant 0 : i32
    return %c0_i32, %c0_i32_0, %c0_i32_1 : i32, i32, i32
  }
  func.func @transform_4(%arg0: i32) -> (i32, i32) {
    %c0_i32 = arith.constant 0 : i32
    %c0_i32_0 = arith.constant 0 : i32
    %c0_i32_1 = arith.constant 0 : i32
    return %c0_i32, %c0_i32_0 : i32, i32
  }
  func.func @transform_5(%arg0: i32) -> (i32, i32, i32) {
    %c0_i32 = arith.constant 0 : i32
    %c0_i32_0 = arith.constant 0 : i32
    %c0_i32_1 = arith.constant 0 : i32
    %c0_i32_2 = arith.constant 0 : i32
    return %c0_i32, %c0_i32_0, %c0_i32_1 : i32, i32, i32
  }
  func.func @transform_6(%arg0: i32) -> (i32, i32) {
    %c0_i32 = arith.constant 0 : i32
    %c0_i32_0 = arith.constant 0 : i32
    %c0_i32_1 = arith.constant 0 : i32
    return %c0_i32, %c0_i32_0 : i32, i32
  }
  func.func @transform_7(%arg0: i32) -> (i32, i32, i32) {
    %c0_i32 = arith.constant 0 : i32
    %c0_i32_0 = arith.constant 0 : i32
    %c0_i32_1 = arith.constant 0 : i32
    %c0_i32_2 = arith.constant 0 : i32
    return %c0_i32, %c0_i32_0, %c0_i32_1 : i32, i32, i32
  }
  func.func @transform_8(%arg0: i32) -> (i32, i32) {
    %c0_i32 = arith.constant 0 : i32
    %c0_i32_0 = arith.constant 0 : i32
    %c0_i32_1 = arith.constant 0 : i32
    return %c0_i32, %c0_i32_0 : i32, i32
  }
  func.func @transform_9(%arg0: i32) -> (i32, i32) {
    %c0_i32 = arith.constant 0 : i32
    %c0_i32_0 = arith.constant 0 : i32
    %c0_i32_1 = arith.constant 0 : i32
    return %c0_i32, %c0_i32_0 : i32, i32
  }
  func.func @transform_10(%arg0: i32) -> (i32, i32) {
    %c0_i32 = arith.constant 0 : i32
    %c0_i32_0 = arith.constant 0 : i32
    %c0_i32_1 = arith.constant 0 : i32
    return %c0_i32, %c0_i32_0 : i32, i32
  }
  func.func @transform_11(%arg0: i32) -> (i32, i32) {
    %c0_i32 = arith.constant 0 : i32
    %c0_i32_0 = arith.constant 0 : i32
    return %c0_i32, %arg0 : i32, i32
  }
}

</mosaic_0001>

<bundles_post_ra>
// kernel: mannet_forward.1
= control target key start
LH: loop header
LB: loop body
LE: loop exit
PB: predicated region body
PF: predicated region fallthrough
CT: control target
= control target key end

     0   :  { %s15338_s0 = inlined_call_operand.vmem [shape: f32[46,4,2], index: 0, kind: input, shape index: {}]   ;;  %s15339_s1 = inlined_call_operand.vmem [shape: f32[4,8,4], index: 1, kind: input, shape index: {}]   ;;  %s15340_s2 = inlined_call_operand.vmem [shape: f32[8,1], index: 2, kind: input, shape index: {}]   ;;  %s15341_s3 = inlined_call_operand.vmem [shape: f32[4,16,8], index: 3, kind: input, shape index: {}]   ;;  %s15342_s4 = inlined_call_operand.vmem [shape: f32[16,1], index: 4, kind: input, shape index: {}]   ;;  %s15343_s5 = inlined_call_operand.vmem [shape: f32[4,32,16], index: 5, kind: input, shape index: {}]   ;;  %s15344_s6 = inlined_call_operand.vmem [shape: f32[32,1], index: 6, kind: input, shape index: {}]   ;;  %s15345_s7 = inlined_call_operand.vmem [shape: f32[4,64,32], index: 7, kind: input, shape index: {}]   ;;  %s15346_s8 = inlined_call_operand.vmem [shape: f32[64,1], index: 8, kind: input, shape index: {}]   ;;  %s15347_s9 = inlined_call_operand.vmem [shape: f32[64,1], index: 9, kind: input, shape index: {}]   ;;  %s15348_s10 = inlined_call_operand.<no memory space> [shape: f32[1,1], index: 10, kind: input, shape index: {}]   ;;  %s15349_s11 = inlined_call_operand.hbm [shape: f32[1,2], index: 11, kind: output, shape index: {}]  }
   0x1   :  { %v16_v0 = vstv %s15348_s10 }
   0x2   :  { %17 = vst [vmem:[#allocation2] sm:$0x1] %v16_v0 }
   0x3   :  { %v11860_v1 = vld [vmem:[%s15338_s0 + $0x4] sm:$0xf]  ;;  %vm144_vm0 = vcmask 1043456   ;;  %v13880_v2 = vmov 0.0   ;;  %v11862_v3 = vld [vmem:[%s15338_s0 + $0xc] sm:$0xf] }
   0x4   :  { %12742 = vmatprep.subr.mxu0 %v13880_v2  ;;  %12747 = vmatprep.subr.mxu1 %v13880_v2  ;;  %v13958_v4 = vld [vmem:[%s15339_s1 + $0x8] sm:$0xff]  ;;  %vm140_vm1 = vcmask 31744   ;;  %v13963_v5 = vld [vmem:[%s15339_s1 + $0x18] sm:$0xff]  ;;  %vm13881_vm2 = vmmov 0   ;;  %v41_v6 = vld [vmem:[%s15338_s0] sm:$0xf] }
   0x5   :  { %12743 = vmatpush3.msk.msra.mxu0 %vm144_vm0, %v11860_v1  ;;  %12744 = vmatprep.mubr.msk.f32.mxu0 %vm13881_vm2, %v13880_v2  ;;  %v11861_v7 = vld [vmem:[%s15338_s0 + $0x8] sm:$0xf]  ;;  %v13986_v8 = vld [vmem:[%s15339_s1] sm:$0xff]  ;;  %v13991_v9 = vld [vmem:[%s15339_s1 + $0x10] sm:$0xff] }
   0x6   :  { %12748 = vmatpush3.msk.msra.mxu1 %vm144_vm0, %v11862_v3  ;;  %12749 = vmatprep.mubr.msk.f32.mxu1 %vm13881_vm2, %v13880_v2  ;;  %v11864_v10 = vld [vmem:[%s15338_s0 + $0x14] sm:$0xf]  ;;  %v11863_v11 = vld [vmem:[%s15338_s0 + $0x10] sm:$0xf]  ;;  %v11866_v12 = vld [vmem:[%s15338_s0 + $0x1c] sm:$0xf] }
   0x7   :  { %12745 = vmatmul.mubr.msk.f32.vlgmr.msra.gmra.mrb[0].mxu0 %vm140_vm1, %v13958_v4  ;;  %12750 = vmatmul.mubr.msk.f32.vlgmr.msra.gmra.mrb[0].mxu1 %vm140_vm1, %v13963_v5 }
   0x8   :  { %12752 = vmatprep.subr.mxu0 %v13880_v2  ;;  %12757 = vmatprep.subr.mxu1 %v13880_v2 }
   0x9   :  { %12753 = vmatpush3.msk.msra.mxu0 %vm144_vm0, %v41_v6  ;;  %12754 = vmatprep.mubr.msk.f32.mxu0 %vm13881_vm2, %v13880_v2 }
   0xa   :  { %12758 = vmatpush3.msk.msra.mxu1 %vm144_vm0, %v11861_v7  ;;  %12759 = vmatprep.mubr.msk.f32.mxu1 %vm13881_vm2, %v13880_v2 }
   0xb   :  { %12755 = vmatmul.mubr.msk.f32.vlgmr.msra.gmra.mrb[2].mxu0 %vm140_vm1, %v13986_v8  ;;  %12760 = vmatmul.mubr.msk.f32.vlgmr.msra.gmra.mrb[2].mxu1 %vm140_vm1, %v13991_v9 }
   0xc   :  { %12762 = vmatprep.subr.mxu0 %v13880_v2  ;;  %12767 = vmatprep.subr.mxu1 %v13880_v2 }
   0xd   :  { %12763 = vmatpush3.msk.msra.mxu0 %vm144_vm0, %v11862_v3  ;;  %12764 = vmatprep.mubr.msk.f32.mxu0 %vm13881_vm2, %v13880_v2 }
   0xe   :  { %12768 = vmatpush3.msk.msra.mxu1 %vm144_vm0, %v11864_v10  ;;  %12769 = vmatprep.mubr.msk.f32.mxu1 %vm13881_vm2, %v13880_v2 }
   0xf   :  { %12765 = vmatmul.mubr.msk.f32.vlgmr.msra.gmra.mrb[4].mxu0 %vm140_vm1, %v13958_v4  ;;  %12770 = vmatmul.mubr.msk.f32.vlgmr.msra.gmra.mrb[4].mxu1 %vm140_vm1, %v13963_v5 }
  0x10   :  { %12772 = vmatprep.subr.mxu0 %v13880_v2  ;;  %12777 = vmatprep.subr.mxu1 %v13880_v2 }
  0x11   :  { %12773 = vmatpush3.msk.msra.mxu0 %vm144_vm0, %v11861_v7  ;;  %12774 = vmatprep.mubr.msk.f32.mxu0 %vm13881_vm2, %v13880_v2 }
  0x12   :  { %12778 = vmatpush3.msk.msra.mxu1 %vm144_vm0, %v11863_v11  ;;  %12779 = vmatprep.mubr.msk.f32.mxu1 %vm13881_vm2, %v13880_v2 }
  0x13   :  { %12775 = vmatmul.mubr.msk.f32.vlgmr.msra.gmra.mrb[6].mxu0 %vm140_vm1, %v13986_v8  ;;  %12780 = vmatmul.mubr.msk.f32.vlgmr.msra.gmra.mrb[6].mxu1 %vm140_vm1, %v13991_v9 }
  0x14   :  { %12782 = vmatprep.subr.mxu0 %v13880_v2  ;;  %12787 = vmatprep.subr.mxu1 %v13880_v2 }
  0x15   :  { %18 = vsyncpa [#allocation4], 0  ;;  %12783 = vmatpush3.msk.msra.mxu0 %vm144_vm0, %v11864_v10  ;;  %12784 = vmatprep.mubr.msk.f32.mxu0 %vm13881_vm2, %v13880_v2  ;;  %v11865_v13 = vld [vmem:[%s15338_s0 + $0x18] sm:$0xf]  ;;  %v11868_v14 = vld [vmem:[%s15338_s0 + $0x24] sm:$0xf] }
  0x16   :  { %12788 = vmatpush3.msk.msra.mxu1 %vm144_vm0, %v11866_v12  ;;  %12789 = vmatprep.mubr.msk.f32.mxu1 %vm13881_vm2, %v13880_v2  ;;  %v11867_v15 = vld [vmem:[%s15338_s0 + $0x20] sm:$0xf]  ;;  %v11870_v16 = vld [vmem:[%s15338_s0 + $0x2c] sm:$0xf]  ;;  %v11869_v17 = vld [vmem:[%s15338_s0 + $0x28] sm:$0xf] }
  0x17   :  { %12785 = vmatmul.mubr.msk.f32.vlgmr.msra.gmra.mrb[8].mxu0 %vm140_vm1, %v13958_v4  ;;  %12790 = vmatmul.mubr.msk.f32.vlgmr.msra.gmra.mrb[8].mxu1 %vm140_vm1, %v13963_v5  ;;  %v11872_v18 = vld [vmem:[%s15338_s0 + $0x34] sm:$0xf]  ;;  %v11871_v19 = vld [vmem:[%s15338_s0 + $0x30] sm:$0xf]  ;;  %v11874_v20 = vld [vmem:[%s15338_s0 + $0x3c] sm:$0xf] }
  0x18   :  { %12792 = vmatprep.subr.mxu0 %v13880_v2  ;;  %12797 = vmatprep.subr.mxu1 %v13880_v2  ;;  %v11873_v21 = vld [vmem:[%s15338_s0 + $0x38] sm:$0xf]  ;;  %v11876_v22 = vld [vmem:[%s15338_s0 + $0x44] sm:$0xf]  ;;  %v11875_v23 = vld [vmem:[%s15338_s0 + $0x40] sm:$0xf] }
  0x19   :  { %12793 = vmatpush3.msk.msra.mxu0 %vm144_vm0, %v11863_v11  ;;  %12794 = vmatprep.mubr.msk.f32.mxu0 %vm13881_vm2, %v13880_v2  ;;  %v11878_v24 = vld [vmem:[%s15338_s0 + $0x4c] sm:$0xf]  ;;  %v11877_v25 = vld [vmem:[%s15338_s0 + $0x48] sm:$0xf]  ;;  %v11880_v26 = vld [vmem:[%s15338_s0 + $0x54] sm:$0xf] }
  0x1a   :  { %12798 = vmatpush3.msk.msra.mxu1 %vm144_vm0, %v11865_v13  ;;  %12799 = vmatprep.mubr.msk.f32.mxu1 %vm13881_vm2, %v13880_v2  ;;  %v11879_v27 = vld [vmem:[%s15338_s0 + $0x50] sm:$0xf]  ;;  %v11882_v28 = vld [vmem:[%s15338_s0 + $0x5c] sm:$0xf]  ;;  %v11881_v29 = vld [vmem:[%s15338_s0 + $0x58] sm:$0xf] }
  0x1b   :  { %12795 = vmatmul.mubr.msk.f32.vlgmr.msra.gmra.mrb[10].mxu0 %vm140_vm1, %v13986_v8  ;;  %12800 = vmatmul.mubr.msk.f32.vlgmr.msra.gmra.mrb[10].mxu1 %vm140_vm1, %v13991_v9  ;;  %v11884_v30 = vld [vmem:[%s15338_s0 + $0x64] sm:$0xf]  ;;  %v11883_v31 = vld [vmem:[%s15338_s0 + $0x60] sm:$0xf]  ;;  %v13882_v33 = vmov 0   ;;  %v9651_v38 = vld [vmem:[%s15344_s6 + $0x8] sm:$0xff] }
  0x1c   :  { %12802 = vmatprep.subr.mxu0 %v13880_v2  ;;  %12807 = vmatprep.subr.mxu1 %v13880_v2  ;;  %v139_v32 = vld [vmem:[%s15340_s2] sm:$0xff]  ;;  %v11886_v34 = vld [vmem:[%s15338_s0 + $0x6c] sm:$0xf]  ;;  %v11885_v35 = vld [vmem:[%s15338_s0 + $0x68] sm:$0xf]  ;;  %vm6536_vm3 = vcmask 64512  }
  0x1d   :  { %12803 = vmatpush3.msk.msra.mxu0 %vm144_vm0, %v11866_v12  ;;  %12804 = vmatprep.mubr.msk.f32.mxu0 %vm13881_vm2, %v13880_v2  ;;  %v6534_v36 = vld [vmem:[%s15342_s4] sm:$0xff]  ;;  %v11888_v37 = vld [vmem:[%s15338_s0 + $0x74] sm:$0xf]  ;;  %v11887_v39 = vld [vmem:[%s15338_s0 + $0x70] sm:$0xf]  ;;  %vm9654_vm4 = vcmask 130048  }
  0x1e   :  { %12808 = vmatpush3.msk.msra.mxu1 %vm144_vm0, %v11868_v14  ;;  %12809 = vmatprep.mubr.msk.f32.mxu1 %vm13881_vm2, %v13880_v2  ;;  %v9653_v40 = vld [vmem:[%s15344_s6 + $0x18] sm:$0xff]  ;;  %v11167_v42 = vld [vmem:[%s15346_s8 + $0x8] sm:$0xff]  ;;  %v11892_v45 = vld [vmem:[%s15338_s0 + $0x84] sm:$0xf]  ;;  %vm11174_vm5 = vcmask 261120   ;;  %vm11811_vm6 = vcmask 15360  }
  0x1f   :  { %12805 = vmatmul.mubr.msk.f32.vlgmr.msra.gmra.mrb[12].mxu0 %vm140_vm1, %v13958_v4  ;;  %12810 = vmatmul.mubr.msk.f32.vlgmr.msra.gmra.mrb[12].mxu1 %vm140_vm1, %v13963_v5  ;;  %v11890_v41 = vld [vmem:[%s15338_s0 + $0x7c] sm:$0xf]  ;;  %v11889_v43 = vld [vmem:[%s15338_s0 + $0x78] sm:$0xf]  ;;  %v11756_v46 = vld [vmem:[%s15347_s9 + $0x8] sm:$0xff]  ;;  %vm11844_vm7 = vcmask 8192  }
  0x20   :  { %12812 = vmatprep.subr.mxu0 %v13880_v2  ;;  %12817 = vmatprep.subr.mxu1 %v13880_v2  ;;  %v11169_v44 = vld [vmem:[%s15346_s8 + $0x18] sm:$0xff]  ;;  %v11891_v47 = vld [vmem:[%s15338_s0 + $0x80] sm:$0xf]  ;;  %v11757_v48 = vld [vmem:[%s15347_s9 + $0x10] sm:$0xff] }
  0x21   :  { %12813 = vmatpush3.msk.msra.mxu0 %vm144_vm0, %v11865_v13  ;;  %12814 = vmatprep.mubr.msk.f32.mxu0 %vm13881_vm2, %v13880_v2  ;;  %v11894_v49 = vld [vmem:[%s15338_s0 + $0x8c] sm:$0xf]  ;;  %v11758_v50 = vld [vmem:[%s15347_s9 + $0x18] sm:$0xff]  ;;  %v11893_v51 = vld [vmem:[%s15338_s0 + $0x88] sm:$0xf] }
  0x22   :  { %12818 = vmatpush3.msk.msra.mxu1 %vm144_vm0, %v11867_v15  ;;  %12819 = vmatprep.mubr.msk.f32.mxu1 %vm13881_vm2, %v13880_v2  ;;  %v11759_v52 = vld [vmem:[%s15347_s9 + $0x20] sm:$0xff]  ;;  %v11896_v53 = vld [vmem:[%s15338_s0 + $0x94] sm:$0xf]  ;;  %v11760_v54 = vld [vmem:[%s15347_s9 + $0x28] sm:$0xff] }
  0x23   :  { %12815 = vmatmul.mubr.msk.f32.vlgmr.msra.gmra.mrb[14].mxu0 %vm140_vm1, %v13986_v8  ;;  %12820 = vmatmul.mubr.msk.f32.vlgmr.msra.gmra.mrb[14].mxu1 %vm140_vm1, %v13991_v9  ;;  %v11895_v55 = vld [vmem:[%s15338_s0 + $0x90] sm:$0xf]  ;;  %v11762_v56 = vld [vmem:[%s15347_s9 + $0x38] sm:$0xff]  ;;  %v11900_v59 = vld [vmem:[%s15338_s0 + $0xa4] sm:$0xf] }
  0x24   :  { %12822 = vmatprep.subr.mxu0 %v13880_v2  ;;  %12827 = vmatprep.subr.mxu1 %v13880_v2  ;;  %v11898_v57 = vld [vmem:[%s15338_s0 + $0x9c] sm:$0xf]  ;;  %v11897_v58 = vld [vmem:[%s15338_s0 + $0x98] sm:$0xf]  ;;  %v11899_v60 = vld [vmem:[%s15338_s0 + $0xa0] sm:$0xf] }
  0x25   :  { %12823 = vmatpush3.msk.msra.mxu0 %vm144_vm0, %v11868_v14  ;;  %12824 = vmatprep.mubr.msk.f32.mxu0 %vm13881_vm2, %v13880_v2  ;;  %v11902_v61 = vld [vmem:[%s15338_s0 + $0xac] sm:$0xf]  ;;  %v11901_v62 = vld [vmem:[%s15338_s0 + $0xa8] sm:$0xf]  ;;  %v11904_v63 = vld [vmem:[%s15338_s0 + $0xb4] sm:$0xf] }
  0x26   :  { %12828 = vmatpush3.msk.msra.mxu1 %vm144_vm0, %v11870_v16  ;;  %12829 = vmatprep.mubr.msk.f32.mxu1 %vm13881_vm2, %v13880_v2  ;;  %v11903_v0 = vld [vmem:[%s15338_s0 + $0xb0] sm:$0xf] }
  0x27   :  { %12825 = vmatmul.mubr.msk.f32.vlgmr.msra.gmra.mrb[16].mxu0 %vm140_vm1, %v13958_v4  ;;  %12830 = vmatmul.mubr.msk.f32.vlgmr.msra.gmra.mrb[16].mxu1 %vm140_vm1, %v13963_v5  ;;  %v14664_v1 = vld [vmem:[%s15341_s3 + $0x10] sm:$0xff] }
  0x28   :  { %12832 = vmatprep.subr.mxu0 %v13880_v2  ;;  %12837 = vmatprep.subr.mxu1 %v13880_v2 }
  0x29   :  { %12833 = vmatpush3.msk.msra.mxu0 %vm144_vm0, %v11867_v15  ;;  %12834 = vmatprep.mubr.msk.f32.mxu0 %vm13881_vm2, %v13880_v2 }
  0x2a   :  { %12838 = vmatpush3.msk.msra.mxu1 %vm144_vm0, %v11869_v17  ;;  %12839 = vmatprep.mubr.msk.f32.mxu1 %vm13881_vm2, %v13880_v2 }
  0x2b   :  { %12835 = vmatmul.mubr.msk.f32.vlgmr.msra.gmra.mrb[18].mxu0 %vm140_vm1, %v13986_v8  ;;  %12840 = vmatmul.mubr.msk.f32.vlgmr.msra.gmra.mrb[18].mxu1 %vm140_vm1, %v13991_v9 }
  0x2c   :  { %12842 = vmatprep.subr.mxu0 %v13880_v2  ;;  %12847 = vmatprep.subr.mxu1 %v13880_v2 }
  0x2d   :  { %12843 = vmatpush3.msk.msra.mxu0 %vm144_vm0, %v11870_v16  ;;  %12844 = vmatprep.mubr.msk.f32.mxu0 %vm13881_vm2, %v13880_v2 }
  0x2e   :  { %12848 = vmatpush3.msk.msra.mxu1 %vm144_vm0, %v11872_v18  ;;  %12849 = vmatprep.mubr.msk.f32.mxu1 %vm13881_vm2, %v13880_v2 }
  0x2f   :  { %12845 = vmatmul.mubr.msk.f32.vlgmr.msra.gmra.mrb[20].mxu0 %vm140_vm1, %v13958_v4  ;;  %12850 = vmatmul.mubr.msk.f32.vlgmr.msra.gmra.mrb[20].mxu1 %vm140_vm1, %v13963_v5 }
  0x30   :  { %12852 = vmatprep.subr.mxu0 %v13880_v2  ;;  %12857 = vmatprep.subr.mxu1 %v13880_v2 }
  0x31   :  { %12853 = vmatpush3.msk.msra.mxu0 %vm144_vm0, %v11869_v17  ;;  %12854 = vmatprep.mubr.msk.f32.mxu0 %vm13881_vm2, %v13880_v2 }
  0x32   :  { %12858 = vmatpush3.msk.msra.mxu1 %vm144_vm0, %v11871_v19  ;;  %12859 = vmatprep.mubr.msk.f32.mxu1 %vm13881_vm2, %v13880_v2 }
  0x33   :  { %12855 = vmatmul.mubr.msk.f32.vlgmr.msra.gmra.mrb[22].mxu0 %vm140_vm1, %v13986_v8  ;;  %12860 = vmatmul.mubr.msk.f32.vlgmr.msra.gmra.mrb[22].mxu1 %vm140_vm1, %v13991_v9 }
  0x34   :  { %12862 = vmatprep.subr.mxu0 %v13880_v2  ;;  %12867 = vmatprep.subr.mxu1 %v13880_v2 }
  0x35   :  { %12863 = vmatpush3.msk.msra.mxu0 %vm144_vm0, %v11872_v18  ;;  %12864 = vmatprep.mubr.msk.f32.mxu0 %vm13881_vm2, %v13880_v2 }
  0x36   :  { %12868 = vmatpush3.msk.msra.mxu1 %vm144_vm0, %v11874_v20  ;;  %12869 = vmatprep.mubr.msk.f32.mxu1 %vm13881_vm2, %v13880_v2 }
  0x37   :  { %12865 = vmatmul.mubr.msk.f32.vlgmr.msra.gmra.mrb[24].mxu0 %vm140_vm1, %v13958_v4  ;;  %12870 = vmatmul.mubr.msk.f32.vlgmr.msra.gmra.mrb[24].mxu1 %vm140_vm1, %v13963_v5 }
  0x38   :  { %12872 = vmatprep.subr.mxu0 %v13880_v2  ;;  %12877 = vmatprep.subr.mxu1 %v13880_v2 }
  0x39   :  { %12873 = vmatpush3.msk.msra.mxu0 %vm144_vm0, %v11871_v19  ;;  %12874 = vmatprep.mubr.msk.f32.mxu0 %vm13881_vm2, %v13880_v2 }
  0x3a   :  { %12878 = vmatpush3.msk.msra.mxu1 %vm144_vm0, %v11873_v21  ;;  %12879 = vmatprep.mubr.msk.f32.mxu1 %vm13881_vm2, %v13880_v2 }
  0x3b   :  { %12875 = vmatmul.mubr.msk.f32.vlgmr.msra.gmra.mrb[26].mxu0 %vm140_vm1, %v13986_v8  ;;  %12880 = vmatmul.mubr.msk.f32.vlgmr.msra.gmra.mrb[26].mxu1 %vm140_vm1, %v13991_v9 }
  0x3c   :  { %12882 = vmatprep.subr.mxu0 %v13880_v2  ;;  %12887 = vmatprep.subr.mxu1 %v13880_v2 }
  0x3d   :  { %12883 = vmatpush3.msk.msra.mxu0 %vm144_vm0, %v11874_v20  ;;  %12884 = vmatprep.mubr.msk.f32.mxu0 %vm13881_vm2, %v13880_v2 }
  0x3e   :  { %12888 = vmatpush3.msk.msra.mxu1 %vm144_vm0, %v11876_v22  ;;  %12889 = vmatprep.mubr.msk.f32.mxu1 %vm13881_vm2, %v13880_v2 }
  0x3f   :  { %12885 = vmatmul.mubr.msk.f32.vlgmr.msra.gmra.mrb[28].mxu0 %vm140_vm1, %v13958_v4  ;;  %12890 = vmatmul.mubr.msk.f32.vlgmr.msra.gmra.mrb[28].mxu1 %vm140_vm1, %v13963_v5 }
  0x40   :  { %12892 = vmatprep.subr.mxu0 %v13880_v2  ;;  %12897 = vmatprep.subr.mxu1 %v13880_v2 }
  0x41   :  { %12893 = vmatpush3.msk.msra.mxu0 %vm144_vm0, %v11873_v21  ;;  %12894 = vmatprep.mubr.msk.f32.mxu0 %vm13881_vm2, %v13880_v2 }
  0x42   :  { %12898 = vmatpush3.msk.msra.mxu1 %vm144_vm0, %v11875_v23  ;;  %12899 = vmatprep.mubr.msk.f32.mxu1 %vm13881_vm2, %v13880_v2 }
  0x43   :  { %12895 = vmatmul.mubr.msk.f32.vlgmr.msra.gmra.mrb[30].mxu0 %vm140_vm1, %v13986_v8  ;;  %12900 = vmatmul.mubr.msk.f32.vlgmr.msra.gmra.mrb[30].mxu1 %vm140_vm1, %v13991_v9 }
  0x44   :  { %12902 = vmatprep.subr.mxu0 %v13880_v2  ;;  %12907 = vmatprep.subr.mxu1 %v13880_v2 }
  0x45   :  { %12903 = vmatpush3.msk.msra.mxu0 %vm144_vm0, %v11876_v22  ;;  %12904 = vmatprep.mubr.msk.f32.mxu0 %vm13881_vm2, %v13880_v2 }
  0x46   :  { %12908 = vmatpush3.msk.msra.mxu1 %vm144_vm0, %v11878_v24  ;;  %12909 = vmatprep.mubr.msk.f32.mxu1 %vm13881_vm2, %v13880_v2 }
  0x47   :  { %12905 = vmatmul.mubr.msk.f32.vlgmr.msra.gmra.mrb[32].mxu0 %vm140_vm1, %v13958_v4  ;;  %12910 = vmatmul.mubr.msk.f32.vlgmr.msra.gmra.mrb[32].mxu1 %vm140_vm1, %v13963_v5 }
  0x48   :  { %12912 = vmatprep.subr.mxu0 %v13880_v2  ;;  %12917 = vmatprep.subr.mxu1 %v13880_v2 }
  0x49   :  { %12913 = vmatpush3.msk.msra.mxu0 %vm144_vm0, %v11875_v23  ;;  %12914 = vmatprep.mubr.msk.f32.mxu0 %vm13881_vm2, %v13880_v2 }
  0x4a   :  { %12918 = vmatpush3.msk.msra.mxu1 %vm144_vm0, %v11877_v25  ;;  %12919 = vmatprep.mubr.msk.f32.mxu1 %vm13881_vm2, %v13880_v2 }
  0x4b   :  { %12915 = vmatmul.mubr.msk.f32.vlgmr.msra.gmra.mrb[34].mxu0 %vm140_vm1, %v13986_v8  ;;  %12920 = vmatmul.mubr.msk.f32.vlgmr.msra.gmra.mrb[34].mxu1 %vm140_vm1, %v13991_v9 }
  0x4c   :  { %12922 = vmatprep.subr.mxu0 %v13880_v2  ;;  %12927 = vmatprep.subr.mxu1 %v13880_v2 }
  0x4d   :  { %12923 = vmatpush3.msk.msra.mxu0 %vm144_vm0, %v11878_v24  ;;  %12924 = vmatprep.mubr.msk.f32.mxu0 %vm13881_vm2, %v13880_v2 }
  0x4e   :  { %12928 = vmatpush3.msk.msra.mxu1 %vm144_vm0, %v11880_v26  ;;  %12929 = vmatprep.mubr.msk.f32.mxu1 %vm13881_vm2, %v13880_v2 }
  0x4f   :  { %12925 = vmatmul.mubr.msk.f32.vlgmr.msra.gmra.mrb[36].mxu0 %vm140_vm1, %v13958_v4  ;;  %12930 = vmatmul.mubr.msk.f32.vlgmr.msra.gmra.mrb[36].mxu1 %vm140_vm1, %v13963_v5 }
  0x50   :  { %12932 = vmatprep.subr.mxu0 %v13880_v2  ;;  %12937 = vmatprep.subr.mxu1 %v13880_v2 }
  0x51   :  { %12933 = vmatpush3.msk.msra.mxu0 %vm144_vm0, %v11877_v25  ;;  %12934 = vmatprep.mubr.msk.f32.mxu0 %vm13881_vm2, %v13880_v2 }
  0x52   :  { %12938 = vmatpush3.msk.msra.mxu1 %vm144_vm0, %v11879_v27  ;;  %12939 = vmatprep.mubr.msk.f32.mxu1 %vm13881_vm2, %v13880_v2 }
  0x53   :  { %12935 = vmatmul.mubr.msk.f32.vlgmr.msra.gmra.mrb[38].mxu0 %vm140_vm1, %v13986_v8  ;;  %12940 = vmatmul.mubr.msk.f32.vlgmr.msra.gmra.mrb[38].mxu1 %vm140_vm1, %v13991_v9 }
  0x54   :  { %12942 = vmatprep.subr.mxu0 %v13880_v2  ;;  %12947 = vmatprep.subr.mxu1 %v13880_v2 }
  0x55   :  { %12943 = vmatpush3.msk.msra.mxu0 %vm144_vm0, %v11880_v26  ;;  %12944 = vmatprep.mubr.msk.f32.mxu0 %vm13881_vm2, %v13880_v2 }
  0x56   :  { %12948 = vmatpush3.msk.msra.mxu1 %vm144_vm0, %v11882_v28  ;;  %12949 = vmatprep.mubr.msk.f32.mxu1 %vm13881_vm2, %v13880_v2 }
  0x57   :  { %12945 = vmatmul.mubr.msk.f32.vlgmr.msra.gmra.mrb[40].mxu0 %vm140_vm1, %v13958_v4  ;;  %12950 = vmatmul.mubr.msk.f32.vlgmr.msra.gmra.mrb[40].mxu1 %vm140_vm1, %v13963_v5 }
  0x58   :  { %12952 = vmatprep.subr.mxu0 %v13880_v2  ;;  %12957 = vmatprep.subr.mxu1 %v13880_v2 }
  0x59   :  { %12953 = vmatpush3.msk.msra.mxu0 %vm144_vm0, %v11879_v27  ;;  %12954 = vmatprep.mubr.msk.f32.mxu0 %vm13881_vm2, %v13880_v2 }
  0x5a   :  { %12958 = vmatpush3.msk.msra.mxu1 %vm144_vm0, %v11881_v29  ;;  %12959 = vmatprep.mubr.msk.f32.mxu1 %vm13881_vm2, %v13880_v2 }
  0x5b   :  { %12955 = vmatmul.mubr.msk.f32.vlgmr.msra.gmra.mrb[42].mxu0 %vm140_vm1, %v13986_v8  ;;  %12960 = vmatmul.mubr.msk.f32.vlgmr.msra.gmra.mrb[42].mxu1 %vm140_vm1, %v13991_v9 }
  0x5c   :  { %12962 = vmatprep.subr.mxu0 %v13880_v2  ;;  %12967 = vmatprep.subr.mxu1 %v13880_v2 }
  0x5d   :  { %12963 = vmatpush3.msk.msra.mxu0 %vm144_vm0, %v11882_v28  ;;  %12964 = vmatprep.mubr.msk.f32.mxu0 %vm13881_vm2, %v13880_v2 }
  0x5e   :  { %12968 = vmatpush3.msk.msra.mxu1 %vm144_vm0, %v11884_v30  ;;  %12969 = vmatprep.mubr.msk.f32.mxu1 %vm13881_vm2, %v13880_v2 }
  0x5f   :  { %12965 = vmatmul.mubr.msk.f32.vlgmr.msra.gmra.mrb[44].mxu0 %vm140_vm1, %v13958_v4  ;;  %12970 = vmatmul.mubr.msk.f32.vlgmr.msra.gmra.mrb[44].mxu1 %vm140_vm1, %v13963_v5 }
  0x60   :  { %12972 = vmatprep.subr.mxu0 %v13880_v2  ;;  %12977 = vmatprep.subr.mxu1 %v13880_v2 }
  0x61   :  { %13854 = vset.pattern.permute.xlu0 %v13882_v33  ;;  %12973 = vmatpush3.msk.msra.mxu0 %vm144_vm0, %v11881_v29  ;;  %v6535_v29 = vld [vmem:[%s15342_s4 + $0x8] sm:$0xff] }
  0x62   :  { %12974 = vmatprep.mubr.msk.f32.mxu0 %vm13881_vm2, %v13880_v2  ;;  %12978 = vmatpush3.msk.msra.mxu1 %vm144_vm0, %v11883_v31 }
  0x63   :  { %12979 = vmatprep.mubr.msk.f32.mxu1 %vm13881_vm2, %v13880_v2  ;;  %449 = vperm.xlu0 %13854, %v139_v32  }
  0x64   :  { %12975 = vmatmul.mubr.msk.f32.vlgmr.msra.gmra.mrb[46].mxu0 %vm140_vm1, %v13986_v8  ;;  %12980 = vmatmul.mubr.msk.f32.vlgmr.msra.gmra.mrb[46].mxu1 %vm140_vm1, %v13991_v9 }
  0x65   :  { %12982 = vmatprep.subr.mxu0 %v13880_v2  ;;  %12987 = vmatprep.subr.mxu1 %v13880_v2 }
  0x66   :  { %12983 = vmatpush3.msk.msra.mxu0 %vm144_vm0, %v11884_v30  ;;  %12984 = vmatprep.mubr.msk.f32.mxu0 %vm13881_vm2, %v13880_v2 }
  0x67   :  { %12988 = vmatpush3.msk.msra.mxu1 %vm144_vm0, %v11886_v34  ;;  %12989 = vmatprep.mubr.msk.f32.mxu1 %vm13881_vm2, %v13880_v2 }
  0x68   :  { %12985 = vmatmul.mubr.msk.f32.vlgmr.msra.gmra.mrb[48].mxu0 %vm140_vm1, %v13958_v4  ;;  %12990 = vmatmul.mubr.msk.f32.vlgmr.msra.gmra.mrb[48].mxu1 %vm140_vm1, %v13963_v5 }
  0x69   :  { %12992 = vmatprep.subr.mxu0 %v13880_v2  ;;  %12997 = vmatprep.subr.mxu1 %v13880_v2 }
  0x6a   :  { %12993 = vmatpush3.msk.msra.mxu0 %vm144_vm0, %v11883_v31  ;;  %12994 = vmatprep.mubr.msk.f32.mxu0 %vm13881_vm2, %v13880_v2 }
  0x6b   :  { %12998 = vmatpush3.msk.msra.mxu1 %vm144_vm0, %v11885_v35  ;;  %12999 = vmatprep.mubr.msk.f32.mxu1 %vm13881_vm2, %v13880_v2 }
  0x6c   :  { %6865 = vperm.xlu0 %13854, %v6534_v36   ;;  %12995 = vmatmul.mubr.msk.f32.vlgmr.msra.gmra.mrb[50].mxu0 %vm140_vm1, %v13986_v8 }
  0x6d   :  { %13000 = vmatmul.mubr.msk.f32.vlgmr.msra.gmra.mrb[50].mxu1 %vm140_vm1, %v13991_v9  ;;  %13002 = vmatprep.subr.mxu0 %v13880_v2 }
  0x6e   :  { %13007 = vmatprep.subr.mxu1 %v13880_v2  ;;  %13003 = vmatpush3.msk.msra.mxu0 %vm144_vm0, %v11886_v34  ;;  %v14689_v34 = vld [vmem:[%s15341_s3 + $0x18] sm:$0xff] }
  0x6f   :  { %13004 = vmatprep.mubr.msk.f32.mxu0 %vm13881_vm2, %v13880_v2  ;;  %13008 = vmatpush3.msk.msra.mxu1 %vm144_vm0, %v11888_v37 }
  0x70   :  { %13009 = vmatprep.mubr.msk.f32.mxu1 %vm13881_vm2, %v13880_v2  ;;  %10054 = vperm.xlu0 %13854, %v9651_v38   ;;  %v14694_v38 = vld [vmem:[%s15341_s3 + $0x30] sm:$0xff] }
  0x71   :  { %13005 = vmatmul.mubr.msk.f32.vlgmr.msra.gmra.mrb[52].mxu0 %vm140_vm1, %v13958_v4  ;;  %13010 = vmatmul.mubr.msk.f32.vlgmr.msra.gmra.mrb[52].mxu1 %vm140_vm1, %v13963_v5 }
  0x72   :  { %13012 = vmatprep.subr.mxu0 %v13880_v2  ;;  %13017 = vmatprep.subr.mxu1 %v13880_v2 }
  0x73   :  { %13013 = vmatpush3.msk.msra.mxu0 %vm144_vm0, %v11885_v35  ;;  %13014 = vmatprep.mubr.msk.f32.mxu0 %vm13881_vm2, %v13880_v2 }
  0x74   :  { %13018 = vmatpush3.msk.msra.mxu1 %vm144_vm0, %v11887_v39  ;;  %13019 = vmatprep.mubr.msk.f32.mxu1 %vm13881_vm2, %v13880_v2 }
  0x75   :  { %10064 = vperm.xlu0 %13854, %v9653_v40   ;;  %13015 = vmatmul.mubr.msk.f32.vlgmr.msra.gmra.mrb[54].mxu0 %vm140_vm1, %v13986_v8 }
  0x76   :  { %13020 = vmatmul.mubr.msk.f32.vlgmr.msra.gmra.mrb[54].mxu1 %vm140_vm1, %v13991_v9  ;;  %13022 = vmatprep.subr.mxu0 %v13880_v2 }
  0x77   :  { %13027 = vmatprep.subr.mxu1 %v13880_v2  ;;  %13023 = vmatpush3.msk.msra.mxu0 %vm144_vm0, %v11888_v37 }
  0x78   :  { %13024 = vmatprep.mubr.msk.f32.mxu0 %vm13881_vm2, %v13880_v2  ;;  %13028 = vmatpush3.msk.msra.mxu1 %vm144_vm0, %v11890_v41 }
  0x79   :  { %13029 = vmatprep.mubr.msk.f32.mxu1 %vm13881_vm2, %v13880_v2  ;;  %11706 = vperm.xlu0 %13854, %v11167_v42  }
  0x7a   :  { %13025 = vmatmul.mubr.msk.f32.vlgmr.msra.gmra.mrb[56].mxu0 %vm140_vm1, %v13958_v4  ;;  %13030 = vmatmul.mubr.msk.f32.vlgmr.msra.gmra.mrb[56].mxu1 %vm140_vm1, %v13963_v5 }
  0x7b   :  { %13032 = vmatprep.subr.mxu0 %v13880_v2  ;;  %13037 = vmatprep.subr.mxu1 %v13880_v2 }
  0x7c   :  { %13033 = vmatpush3.msk.msra.mxu0 %vm144_vm0, %v11887_v39  ;;  %13034 = vmatprep.mubr.msk.f32.mxu0 %vm13881_vm2, %v13880_v2 }
  0x7d   :  { %13038 = vmatpush3.msk.msra.mxu1 %vm144_vm0, %v11889_v43  ;;  %13039 = vmatprep.mubr.msk.f32.mxu1 %vm13881_vm2, %v13880_v2 }
  0x7e   :  { %11716 = vperm.xlu0 %13854, %v11169_v44   ;;  %13035 = vmatmul.mubr.msk.f32.vlgmr.msra.gmra.mrb[58].mxu0 %vm140_vm1, %v13986_v8 }
  0x7f   :  { %13040 = vmatmul.mubr.msk.f32.vlgmr.msra.gmra.mrb[58].mxu1 %vm140_vm1, %v13991_v9  ;;  %13042 = vmatprep.subr.mxu0 %v13880_v2 }
  0x80   :  { %13047 = vmatprep.subr.mxu1 %v13880_v2  ;;  %13043 = vmatpush3.msk.msra.mxu0 %vm144_vm0, %v11890_v41 }
  0x81   :  { %13044 = vmatprep.mubr.msk.f32.mxu0 %vm13881_vm2, %v13880_v2  ;;  %13048 = vmatpush3.msk.msra.mxu1 %vm144_vm0, %v11892_v45 }
  0x82   :  { %13049 = vmatprep.mubr.msk.f32.mxu1 %vm13881_vm2, %v13880_v2  ;;  %11770 = vperm.xlu0 %13854, %v11756_v46  }
  0x83   :  { %13045 = vmatmul.mubr.msk.f32.vlgmr.msra.gmra.mrb[60].mxu0 %vm140_vm1, %v13958_v4  ;;  %13050 = vmatmul.mubr.msk.f32.vlgmr.msra.gmra.mrb[60].mxu1 %vm140_vm1, %v13963_v5 }
  0x84   :  { %13052 = vmatprep.subr.mxu0 %v13880_v2  ;;  %13057 = vmatprep.subr.mxu1 %v13880_v2 }
  0x85   :  { %13053 = vmatpush3.msk.msra.mxu0 %vm144_vm0, %v11889_v43  ;;  %13054 = vmatprep.mubr.msk.f32.mxu0 %vm13881_vm2, %v13880_v2 }
  0x86   :  { %13058 = vmatpush3.msk.msra.mxu1 %vm144_vm0, %v11891_v47  ;;  %13059 = vmatprep.mubr.msk.f32.mxu1 %vm13881_vm2, %v13880_v2 }
  0x87   :  { %11775 = vperm.xlu0 %13854, %v11757_v48   ;;  %13055 = vmatmul.mubr.msk.f32.vlgmr.msra.gmra.mrb[62].mxu0 %vm140_vm1, %v13986_v8 }
  0x88   :  { %13060 = vmatmul.mubr.msk.f32.vlgmr.msra.gmra.mrb[62].mxu1 %vm140_vm1, %v13991_v9  ;;  %13062 = vmatprep.subr.mxu0 %v13880_v2 }
  0x89   :  { %13067 = vmatprep.subr.mxu1 %v13880_v2  ;;  %13063 = vmatpush3.msk.msra.mxu0 %vm144_vm0, %v11892_v45 }
  0x8a   :  { %13064 = vmatprep.mubr.msk.f32.mxu0 %vm13881_vm2, %v13880_v2  ;;  %13068 = vmatpush3.msk.msra.mxu1 %vm144_vm0, %v11894_v49 }
  0x8b   :  { %13069 = vmatprep.mubr.msk.f32.mxu1 %vm13881_vm2, %v13880_v2  ;;  %11780 = vperm.xlu0 %13854, %v11758_v50  }
  0x8c   :  { %13065 = vmatmul.mubr.msk.f32.vlgmr.msra.gmra.mrb[64].mxu0 %vm140_vm1, %v13958_v4  ;;  %13070 = vmatmul.mubr.msk.f32.vlgmr.msra.gmra.mrb[64].mxu1 %vm140_vm1, %v13963_v5 }
  0x8d   :  { %13072 = vmatprep.subr.mxu0 %v13880_v2  ;;  %13077 = vmatprep.subr.mxu1 %v13880_v2 }
  0x8e   :  { %13073 = vmatpush3.msk.msra.mxu0 %vm144_vm0, %v11891_v47  ;;  %13074 = vmatprep.mubr.msk.f32.mxu0 %vm13881_vm2, %v13880_v2 }
  0x8f   :  { %13078 = vmatpush3.msk.msra.mxu1 %vm144_vm0, %v11893_v51  ;;  %13079 = vmatprep.mubr.msk.f32.mxu1 %vm13881_vm2, %v13880_v2 }
  0x90   :  { %11785 = vperm.xlu0 %13854, %v11759_v52   ;;  %13075 = vmatmul.mubr.msk.f32.vlgmr.msra.gmra.mrb[66].mxu0 %vm140_vm1, %v13986_v8 }
  0x91   :  { %13080 = vmatmul.mubr.msk.f32.vlgmr.msra.gmra.mrb[66].mxu1 %vm140_vm1, %v13991_v9  ;;  %13082 = vmatprep.subr.mxu0 %v13880_v2 }
  0x92   :  { %13087 = vmatprep.subr.mxu1 %v13880_v2  ;;  %13083 = vmatpush3.msk.msra.mxu0 %vm144_vm0, %v11894_v49 }
  0x93   :  { %13084 = vmatprep.mubr.msk.f32.mxu0 %vm13881_vm2, %v13880_v2  ;;  %13088 = vmatpush3.msk.msra.mxu1 %vm144_vm0, %v11896_v53 }
  0x94   :  { %13089 = vmatprep.mubr.msk.f32.mxu1 %vm13881_vm2, %v13880_v2  ;;  %11790 = vperm.xlu0 %13854, %v11760_v54  }
  0x95   :  { %13085 = vmatmul.mubr.msk.f32.vlgmr.msra.gmra.mrb[68].mxu0 %vm140_vm1, %v13958_v4  ;;  %13090 = vmatmul.mubr.msk.f32.vlgmr.msra.gmra.mrb[68].mxu1 %vm140_vm1, %v13963_v5 }
  0x96   :  { %13092 = vmatprep.subr.mxu0 %v13880_v2  ;;  %13097 = vmatprep.subr.mxu1 %v13880_v2 }
  0x97   :  { %13093 = vmatpush3.msk.msra.mxu0 %vm144_vm0, %v11893_v51  ;;  %13094 = vmatprep.mubr.msk.f32.mxu0 %vm13881_vm2, %v13880_v2 }
  0x98   :  { %13098 = vmatpush3.msk.msra.mxu1 %vm144_vm0, %v11895_v55  ;;  %13099 = vmatprep.mubr.msk.f32.mxu1 %vm13881_vm2, %v13880_v2 }
  0x99   :  { %11800 = vperm.xlu0 %13854, %v11762_v56   ;;  %13095 = vmatmul.mubr.msk.f32.vlgmr.msra.gmra.mrb[70].mxu0 %vm140_vm1, %v13986_v8 }
  0x9a   :  { %13100 = vmatmul.mubr.msk.f32.vlgmr.msra.gmra.mrb[70].mxu1 %vm140_vm1, %v13991_v9  ;;  %13102 = vmatprep.subr.mxu0 %v13880_v2 }
  0x9b   :  { %13107 = vmatprep.subr.mxu1 %v13880_v2  ;;  %13103 = vmatpush3.msk.msra.mxu0 %vm144_vm0, %v11896_v53 }
  0x9c   :  { %13104 = vmatprep.mubr.msk.f32.mxu0 %vm13881_vm2, %v13880_v2  ;;  %13108 = vmatpush3.msk.msra.mxu1 %vm144_vm0, %v11898_v57 }
  0x9d   :  { %13109 = vmatprep.mubr.msk.f32.mxu1 %vm13881_vm2, %v13880_v2  ;;  %13105 = vmatmul.mubr.msk.f32.vlgmr.msra.gmra.mrb[72].mxu0 %vm140_vm1, %v13958_v4 }
  0x9e   :  { %13110 = vmatmul.mubr.msk.f32.vlgmr.msra.gmra.mrb[72].mxu1 %vm140_vm1, %v13963_v5  ;;  %13112 = vmatprep.subr.mxu0 %v13880_v2 }
  0x9f   :  { %13117 = vmatprep.subr.mxu1 %v13880_v2  ;;  %13113 = vmatpush3.msk.msra.mxu0 %vm144_vm0, %v11895_v55 }
  0xa0   :  { %13114 = vmatprep.mubr.msk.f32.mxu0 %vm13881_vm2, %v13880_v2  ;;  %13118 = vmatpush3.msk.msra.mxu1 %vm144_vm0, %v11897_v58 }
  0xa1   :  { %13119 = vmatprep.mubr.msk.f32.mxu1 %vm13881_vm2, %v13880_v2  ;;  %13115 = vmatmul.mubr.msk.f32.vlgmr.msra.gmra.mrb[74].mxu0 %vm140_vm1, %v13986_v8 }
  0xa2   :  { %13120 = vmatmul.mubr.msk.f32.vlgmr.msra.gmra.mrb[74].mxu1 %vm140_vm1, %v13991_v9  ;;  %13122 = vmatprep.subr.mxu0 %v13880_v2 }
  0xa3   :  { %13127 = vmatprep.subr.mxu1 %v13880_v2  ;;  %13123 = vmatpush3.msk.msra.mxu0 %vm144_vm0, %v11898_v57 }
  0xa4   :  { %13124 = vmatprep.mubr.msk.f32.mxu0 %vm13881_vm2, %v13880_v2  ;;  %13128 = vmatpush3.msk.msra.mxu1 %vm144_vm0, %v11900_v59 }
  0xa5   :  { %13129 = vmatprep.mubr.msk.f32.mxu1 %vm13881_vm2, %v13880_v2  ;;  %13125 = vmatmul.mubr.msk.f32.vlgmr.msra.gmra.mrb[76].mxu0 %vm140_vm1, %v13958_v4 }
  0xa6   :  { %13130 = vmatmul.mubr.msk.f32.vlgmr.msra.gmra.mrb[76].mxu1 %vm140_vm1, %v13963_v5  ;;  %13132 = vmatprep.subr.mxu0 %v13880_v2 }
  0xa7   :  { %13137 = vmatprep.subr.mxu1 %v13880_v2  ;;  %13133 = vmatpush3.msk.msra.mxu0 %vm144_vm0, %v11897_v58 }
  0xa8   :  { %13134 = vmatprep.mubr.msk.f32.mxu0 %vm13881_vm2, %v13880_v2  ;;  %13138 = vmatpush3.msk.msra.mxu1 %vm144_vm0, %v11899_v60 }
  0xa9   :  { %13139 = vmatprep.mubr.msk.f32.mxu1 %vm13881_vm2, %v13880_v2  ;;  %13135 = vmatmul.mubr.msk.f32.vlgmr.msra.gmra.mrb[78].mxu0 %vm140_vm1, %v13986_v8 }
  0xaa   :  { %13140 = vmatmul.mubr.msk.f32.vlgmr.msra.gmra.mrb[78].mxu1 %vm140_vm1, %v13991_v9  ;;  %13142 = vmatprep.subr.mxu0 %v13880_v2 }
  0xab   :  { %13147 = vmatprep.subr.mxu1 %v13880_v2  ;;  %13143 = vmatpush3.msk.msra.mxu0 %vm144_vm0, %v11900_v59 }
  0xac   :  { %13144 = vmatprep.mubr.msk.f32.mxu0 %vm13881_vm2, %v13880_v2  ;;  %13148 = vmatpush3.msk.msra.mxu1 %vm144_vm0, %v11902_v61 }
  0xad   :  { %13149 = vmatprep.mubr.msk.f32.mxu1 %vm13881_vm2, %v13880_v2  ;;  %13145 = vmatmul.mubr.msk.f32.vlgmr.msra.gmra.mrb[80].mxu0 %vm140_vm1, %v13958_v4 }
  0xae   :  { %13150 = vmatmul.mubr.msk.f32.vlgmr.msra.gmra.mrb[80].mxu1 %vm140_vm1, %v13963_v5  ;;  %13152 = vmatprep.subr.mxu0 %v13880_v2 }
  0xaf   :  { %13157 = vmatprep.subr.mxu1 %v13880_v2  ;;  %13153 = vmatpush3.msk.msra.mxu0 %vm144_vm0, %v11899_v60 }
  0xb0   :  { %13154 = vmatprep.mubr.msk.f32.mxu0 %vm13881_vm2, %v13880_v2  ;;  %13158 = vmatpush3.msk.msra.mxu1 %vm144_vm0, %v11901_v62 }
  0xb1   :  { %13159 = vmatprep.mubr.msk.f32.mxu1 %vm13881_vm2, %v13880_v2  ;;  %13155 = vmatmul.mubr.msk.f32.vlgmr.msra.gmra.mrb[82].mxu0 %vm140_vm1, %v13986_v8 }
  0xb2   :  { %13160 = vmatmul.mubr.msk.f32.vlgmr.msra.gmra.mrb[82].mxu1 %vm140_vm1, %v13991_v9  ;;  %13162 = vmatprep.subr.mxu0 %v13880_v2 }
  0xb3   :  { %13167 = vmatprep.subr.mxu1 %v13880_v2  ;;  %13163 = vmatpush3.msk.msra.mxu0 %vm144_vm0, %v11902_v61 }
  0xb4   :  { %13164 = vmatprep.mubr.msk.f32.mxu0 %vm13881_vm2, %v13880_v2  ;;  %13168 = vmatpush3.msk.msra.mxu1 %vm144_vm0, %v11904_v63 }
  0xb5   :  { %13169 = vmatprep.mubr.msk.f32.mxu1 %vm13881_vm2, %v13880_v2  ;;  %13165 = vmatmul.mubr.msk.f32.vlgmr.msra.gmra.mrb[84].mxu0 %vm140_vm1, %v13958_v4 }
  0xb6   :  { %13170 = vmatmul.mubr.msk.f32.vlgmr.msra.gmra.mrb[84].mxu1 %vm140_vm1, %v13963_v5  ;;  %13172 = vmatprep.subr.mxu0 %v13880_v2 }
  0xb7   :  { %13177 = vmatprep.subr.mxu1 %v13880_v2  ;;  %13173 = vmatpush3.msk.msra.mxu0 %vm144_vm0, %v11901_v62  ;;  %v14706_v62 = vld [vmem:[%s15341_s3 + $0x38] sm:$0xff] }
  0xb8   :  { %13174 = vmatprep.mubr.msk.f32.mxu0 %vm13881_vm2, %v13880_v2  ;;  %13178 = vmatpush3.msk.msra.mxu1 %vm144_vm0, %v11903_v0 }
  0xb9   :  { %13179 = vmatprep.mubr.msk.f32.mxu1 %vm13881_vm2, %v13880_v2  ;;  %13175 = vmatmul.mubr.msk.f32.vlgmr.msra.gmra.mrb[86].mxu0 %vm140_vm1, %v13986_v8 }
  0xba   :  { %13180 = vmatmul.mubr.msk.f32.vlgmr.msra.gmra.mrb[86].mxu1 %vm140_vm1, %v13991_v9  ;;  %13184 = vmatprep.mubr.msk.f32.mxu0 %vm6536_vm3, %v14664_v1 }
  0xbb   :  { %13204 = vmatprep.mubr.msk.f32.mxu1 %vm6536_vm3, %v14664_v1  ;;  %13855 = vset.pattern.permute.xlu1 %v13882_v33 }
  0xbc   :  { %6870 = vperm.xlu1 %13855, %v6535_v29  }
  0xda   :  { %v214_v3 = vpop.f32.mrb[0].mxu0  ;;  %v290_v4 = vpop.f32.mrb[0].mxu1 }
  0xdb   :  { %v12746_v5 = vpop.f32.mrb[1].mxu0  ;;  %v12751_v6 = vpop.f32.mrb[1].mxu1 }
  0xdc   :  { %v14711_v6 = vld [vmem:[%s15341_s3] sm:$0xff] }
  0xde   :  { %v366_v7 = vpop.f32.mrb[2].mxu0  ;;  %v442_v2 = vpop.f32.mrb[2].mxu1 }
  0xdf   :  { %v367_v10 = vadd.f32 %v366_v7, %v214_v3  ;;  %v443_v11 = vadd.f32 %v442_v2, %v290_v4  ;;  %v12756_v8 = vpop.f32.mrb[3].mxu0  ;;  %v12761_v12 = vpop.f32.mrb[3].mxu1 }
  0xe1   :  { %v446_v13 = vadd.f32 %v443_v11, %v367_v10 }
  0xe2   :  { %v520_v9 = vpop.f32.mrb[4].mxu0  ;;  %v593_v14 = vpop.f32.mrb[4].mxu1 }
  0xe3   :  { %v12766_v15 = vpop.f32.mrb[5].mxu0  ;;  %v12771_v16 = vpop.f32.mrb[5].mxu1 }
  0xe4   :  { %v14680_v23 = vpop.permute.xlu0 %449 }
  0xe5   :  { %v452_v57 = vadd.f32 %v14680_v23, %v446_v13 }
  0xe6   :  { %v663_v17 = vpop.f32.mrb[6].mxu0  ;;  %v736_v18 = vpop.f32.mrb[6].mxu1 }
  0xe7   :  { %v664_v19 = vadd.f32 %v663_v17, %v520_v9  ;;  %v737_v20 = vadd.f32 %v736_v18, %v593_v14  ;;  %v12776_v21 = vpop.f32.mrb[7].mxu0  ;;  %v12781_v22 = vpop.f32.mrb[7].mxu1  ;;  %v453_v5 = vmax.f32 %v452_v57, 0.0  ;;  %v14724_v9 = vld [vmem:[%s15341_s3 + $0x8] sm:$0xff]  ;;  %v14729_v17 = vld [vmem:[%s15341_s3 + $0x20] sm:$0xff] }
  0xe9   :  { %v740_v24 = vadd.f32 %v737_v20, %v664_v19 }
  0xea   :  { %v809_v25 = vpop.f32.mrb[8].mxu0  ;;  %v882_v26 = vpop.f32.mrb[8].mxu1 }
  0xeb   :  { %v12786_v27 = vpop.f32.mrb[9].mxu0  ;;  %v741_v28 = vadd.f32 %v740_v24, %v14680_v23  ;;  %v12791_v30 = vpop.f32.mrb[9].mxu1 }
  0xed   :  { %v742_v31 = vmax.f32 %v741_v28, 0.0 }
  0xee   :  { %v952_v32 = vpop.f32.mrb[10].mxu0  ;;  %v1025_v33 = vpop.f32.mrb[10].mxu1 }
  0xef   :  { %v953_v35 = vadd.f32 %v952_v32, %v809_v25  ;;  %v1026_v36 = vadd.f32 %v1025_v33, %v882_v26  ;;  %v12796_v37 = vpop.f32.mrb[11].mxu0  ;;  %13182 = vmatprep.subr.mxu0 %v742_v31  ;;  %v12801_v39 = vpop.f32.mrb[11].mxu1 }
  0xf0   :  { %13183 = vmatpush3.msra.mxu0 %v742_v31  ;;  %v14740_v31 = vld [vmem:[%s15341_s3 + $0x28] sm:$0xff] }
  0xf1   :  { %v1029_v40 = vadd.f32 %v1026_v36, %v953_v35  ;;  %13185 = vmatmul.mubr.msk.f32.vlgmr.msra.gmra.mrb[88].mxu0 %vm6536_vm3, %v14689_v34 }
  0xf2   :  { %v1098_v41 = vpop.f32.mrb[12].mxu0  ;;  %v1171_v42 = vpop.f32.mrb[12].mxu1  ;;  %13189 = vmatprep.mubr.msk.f32.mxu0 %vm6536_vm3, %v14694_v38 }
  0xf3   :  { %v12806_v43 = vpop.f32.mrb[13].mxu0  ;;  %v12811_v44 = vpop.f32.mrb[13].mxu1  ;;  %v1030_v58 = vadd.f32 %v1029_v40, %v14680_v23 }
  0xf5   :  { %v1031_v7 = vmax.f32 %v1030_v58, 0.0 }
  0xf6   :  { %v1241_v45 = vpop.f32.mrb[14].mxu0  ;;  %v1314_v46 = vpop.f32.mrb[14].mxu1 }
  0xf7   :  { %v1242_v47 = vadd.f32 %v1241_v45, %v1098_v41  ;;  %v1315_v48 = vadd.f32 %v1314_v46, %v1171_v42  ;;  %v12816_v49 = vpop.f32.mrb[15].mxu0  ;;  %v12821_v50 = vpop.f32.mrb[15].mxu1 }
  0xf9   :  { %v1318_v51 = vadd.f32 %v1315_v48, %v1242_v47 }
  0xfa   :  { %v1387_v52 = vpop.f32.mrb[16].mxu0  ;;  %v1460_v53 = vpop.f32.mrb[16].mxu1 }
  0xfb   :  { %v1319_v54 = vadd.f32 %v1318_v51, %v14680_v23  ;;  %v12826_v55 = vpop.f32.mrb[17].mxu0  ;;  %v12831_v56 = vpop.f32.mrb[17].mxu1 }
  0xfd   :  { %v1320_v59 = vmax.f32 %v1319_v54, 0.0 }
  0xfe   :  { %v1530_v60 = vpop.f32.mrb[18].mxu0  ;;  %v1603_v61 = vpop.f32.mrb[18].mxu1 }
  0xff   :  { %v1531_v63 = vadd.f32 %v1530_v60, %v1387_v52  ;;  %v1604_v0 = vadd.f32 %v1603_v61, %v1460_v53  ;;  %v12836_v3 = vpop.f32.mrb[19].mxu0  ;;  %v12841_v4 = vpop.f32.mrb[19].mxu1  ;;  %13187 = vmatprep.subr.mxu0 %v1320_v59  ;;  %13202 = vmatprep.subr.mxu1 %v1320_v59 }
 0x100   :  { %13188 = vmatpush3.msra.mxu0 %v1320_v59  ;;  %13203 = vmatpush3.msra.mxu1 %v1320_v59 }
 0x101   :  { %v1607_v2 = vadd.f32 %v1604_v0, %v1531_v63  ;;  %13190 = vmatmul.mubr.msk.f32.vlgmr.msra.gmra.mrb[88].mxu0 %vm6536_vm3, %v14706_v62  ;;  %13192 = vmatprep.subr.mxu0 %v453_v5 }
 0x102   :  { %v1676_v10 = vpop.f32.mrb[20].mxu0  ;;  %v1749_v11 = vpop.f32.mrb[20].mxu1  ;;  %13193 = vmatpush3.msra.mxu0 %v453_v5  ;;  %13194 = vmatprep.mubr.msk.f32.mxu0 %vm6536_vm3, %v14711_v6 }
 0x103   :  { %v12846_v8 = vpop.f32.mrb[21].mxu0  ;;  %v12851_v12 = vpop.f32.mrb[21].mxu1  ;;  %13197 = vmatprep.subr.mxu0 %v1031_v7  ;;  %13205 = vmatmul.mubr.msk.f32.vlgmr.msra.gmra.mrb[88].mxu1 %vm6536_vm3, %v14689_v34  ;;  %v1608_v27 = vadd.f32 %v1607_v2, %v14680_v23 }
 0x104   :  { %13209 = vmatprep.mubr.msk.f32.mxu1 %vm6536_vm3, %v14694_v38 }
 0x105   :  { %v1609_v39 = vmax.f32 %v1608_v27, 0.0 }
 0x106   :  { %v1819_v13 = vpop.f32.mrb[22].mxu0  ;;  %v1892_v15 = vpop.f32.mrb[22].mxu1 }
 0x107   :  { %v1820_v14 = vadd.f32 %v1819_v13, %v1676_v10  ;;  %v12856_v16 = vpop.f32.mrb[23].mxu0  ;;  %v1893_v18 = vadd.f32 %v1892_v15, %v1749_v11  ;;  %v12861_v19 = vpop.f32.mrb[23].mxu1 }
 0x108   :  { %v9650_v16 = vld [vmem:[%s15344_s6] sm:$0xff] }
 0x109   :  { %13195 = vmatmul.mubr.msk.f32.vlgmr.msra.gmra.mrb[88].mxu0 %vm6536_vm3, %v14724_v9  ;;  %v1896_v20 = vadd.f32 %v1893_v18, %v1820_v14  ;;  %10049 = vperm.xlu1 %13855, %v9650_v16  }
 0x10a   :  { %13198 = vmatpush3.msra.mxu0 %v1031_v7  ;;  %v1965_v21 = vpop.f32.mrb[24].mxu0  ;;  %13199 = vmatprep.mubr.msk.f32.mxu0 %vm6536_vm3, %v14729_v17  ;;  %v2038_v22 = vpop.f32.mrb[24].mxu1 }
 0x10b   :  { %v12866_v24 = vpop.f32.mrb[25].mxu0  ;;  %v1897_v25 = vadd.f32 %v1896_v20, %v14680_v23  ;;  %v12871_v26 = vpop.f32.mrb[25].mxu1 }
 0x10d   :  { %v1898_v28 = vmax.f32 %v1897_v25, 0.0 }
 0x10e   :  { %v2108_v29 = vpop.f32.mrb[26].mxu0  ;;  %v2181_v30 = vpop.f32.mrb[26].mxu1 }
 0x10f   :  { %v2109_v32 = vadd.f32 %v2108_v29, %v1965_v21  ;;  %v2182_v33 = vadd.f32 %v2181_v30, %v2038_v22  ;;  %v12876_v35 = vpop.f32.mrb[27].mxu0  ;;  %v12881_v36 = vpop.f32.mrb[27].mxu1  ;;  %13207 = vmatprep.subr.mxu1 %v1898_v28  ;;  %13222 = vmatprep.subr.mxu0 %v1898_v28  ;;  %v9652_v21 = vld [vmem:[%s15344_s6 + $0x10] sm:$0xff] }
 0x110   :  { %13208 = vmatpush3.msra.mxu1 %v1898_v28  ;;  %10059 = vperm.xlu1 %13855, %v9652_v21   ;;  %v11172_v21 = vld [vmem:[%s15346_s8 + $0x30] sm:$0xff] }
 0x111   :  { %v2185_v37 = vadd.f32 %v2182_v33, %v2109_v32  ;;  %13200 = vmatmul.mubr.msk.f32.vlgmr.msra.gmra.mrb[88].mxu0 %vm6536_vm3, %v14740_v31  ;;  %13210 = vmatmul.mubr.msk.f32.vlgmr.msra.gmra.mrb[88].mxu1 %vm6536_vm3, %v14706_v62 }
 0x112   :  { %13212 = vmatprep.subr.mxu1 %v1031_v7  ;;  %v2254_v40 = vpop.f32.mrb[28].mxu0  ;;  %v2327_v41 = vpop.f32.mrb[28].mxu1  ;;  %13223 = vmatpush3.msra.mxu0 %v1898_v28 }
 0x113   :  { %13213 = vmatpush3.msra.mxu1 %v1031_v7  ;;  %v12886_v42 = vpop.f32.mrb[29].mxu0  ;;  %v12891_v43 = vpop.f32.mrb[29].mxu1  ;;  %13214 = vmatprep.mubr.msk.f32.mxu1 %vm6536_vm3, %v14711_v6  ;;  %v2186_v56 = vadd.f32 %v2185_v37, %v14680_v23 }
 0x114   :  { %13217 = vmatprep.subr.mxu1 %v1609_v39  ;;  %13224 = vmatprep.mubr.msk.f32.mxu0 %vm6536_vm3, %v14664_v1 }
 0x115   :  { %13225 = vmatmul.mubr.msk.f32.vlgmr.msra.gmra.mrb[90].mxu0 %vm6536_vm3, %v14689_v34  ;;  %v2187_v3 = vmax.f32 %v2186_v56, 0.0 }
 0x116   :  { %v2397_v44 = vpop.f32.mrb[30].mxu0  ;;  %v2470_v45 = vpop.f32.mrb[30].mxu1  ;;  %13229 = vmatprep.mubr.msk.f32.mxu0 %vm6536_vm3, %v14694_v38 }
 0x117   :  { %v2398_v46 = vadd.f32 %v2397_v44, %v2254_v40  ;;  %v2471_v47 = vadd.f32 %v2470_v45, %v2327_v41  ;;  %v12896_v48 = vpop.f32.mrb[31].mxu0  ;;  %v12901_v49 = vpop.f32.mrb[31].mxu1  ;;  %v11166_v41 = vld [vmem:[%s15346_s8] sm:$0xff]  ;;  %v11168_v44 = vld [vmem:[%s15346_s8 + $0x10] sm:$0xff] }
 0x118   :  { %11701 = vperm.xlu1 %13855, %v11166_v41  }
 0x119   :  { %v2474_v50 = vadd.f32 %v2471_v47, %v2398_v46  ;;  %13215 = vmatmul.mubr.msk.f32.vlgmr.msra.gmra.mrb[88].mxu1 %vm6536_vm3, %v14724_v9 }
 0x11a   :  { %v2543_v51 = vpop.f32.mrb[32].mxu0  ;;  %v2616_v52 = vpop.f32.mrb[32].mxu1  ;;  %13218 = vmatpush3.msra.mxu1 %v1609_v39  ;;  %13219 = vmatprep.mubr.msk.f32.mxu1 %vm6536_vm3, %v14729_v17 }
 0x11b   :  { %v2475_v53 = vadd.f32 %v2474_v50, %v14680_v23  ;;  %v12906_v54 = vpop.f32.mrb[33].mxu0  ;;  %v12911_v55 = vpop.f32.mrb[33].mxu1 }
 0x11c   :  { %11711 = vperm.xlu1 %13855, %v11168_v44  }
 0x11d   :  { %v2476_v57 = vmax.f32 %v2475_v53, 0.0 }
 0x11e   :  { %v2686_v58 = vpop.f32.mrb[34].mxu0  ;;  %v2759_v59 = vpop.f32.mrb[34].mxu1 }
 0x11f   :  { %v2687_v60 = vadd.f32 %v2686_v58, %v2543_v51  ;;  %v2760_v61 = vadd.f32 %v2759_v59, %v2616_v52  ;;  %v12916_v63 = vpop.f32.mrb[35].mxu0  ;;  %v12921_v0 = vpop.f32.mrb[35].mxu1  ;;  %13227 = vmatprep.subr.mxu0 %v2476_v57  ;;  %13242 = vmatprep.subr.mxu1 %v2476_v57  ;;  %v11755_v52 = vld [vmem:[%s15347_s9] sm:$0xff] }
 0x120   :  { %13228 = vmatpush3.msra.mxu0 %v2476_v57  ;;  %11765 = vperm.xlu1 %13855, %v11755_v52  }
 0x121   :  { %v2763_v4 = vadd.f32 %v2760_v61, %v2687_v60  ;;  %13230 = vmatmul.mubr.msk.f32.vlgmr.msra.gmra.mrb[90].mxu0 %vm6536_vm3, %v14706_v62  ;;  %13232 = vmatprep.subr.mxu0 %v1609_v39 }
 0x122   :  { %13220 = vmatmul.mubr.msk.f32.vlgmr.msra.gmra.mrb[88].mxu1 %vm6536_vm3, %v14740_v31  ;;  %v2832_v5 = vpop.f32.mrb[36].mxu0  ;;  %v2905_v7 = vpop.f32.mrb[36].mxu1  ;;  %13233 = vmatpush3.msra.mxu0 %v1609_v39 }
 0x123   :  { %13243 = vmatpush3.msra.mxu1 %v2476_v57  ;;  %v12926_v2 = vpop.f32.mrb[37].mxu0  ;;  %v12931_v10 = vpop.f32.mrb[37].mxu1  ;;  %13237 = vmatprep.subr.mxu0 %v2187_v3  ;;  %v2764_v27 = vadd.f32 %v2763_v4, %v14680_v23 }
 0x124   :  { %13234 = vmatprep.mubr.msk.f32.mxu0 %vm6536_vm3, %v14711_v6  ;;  %13244 = vmatprep.mubr.msk.f32.mxu1 %vm6536_vm3, %v14664_v1 }
 0x125   :  { %v2765_v37 = vmax.f32 %v2764_v27, 0.0 }
 0x126   :  { %v2975_v11 = vpop.f32.mrb[38].mxu0  ;;  %v3048_v8 = vpop.f32.mrb[38].mxu1  ;;  %13245 = vmatmul.mubr.msk.f32.vlgmr.msra.gmra.mrb[90].mxu1 %vm6536_vm3, %v14689_v34 }
 0x127   :  { %v2976_v12 = vadd.f32 %v2975_v11, %v2832_v5  ;;  %v3049_v13 = vadd.f32 %v3048_v8, %v2905_v7  ;;  %v12936_v14 = vpop.f32.mrb[39].mxu0  ;;  %v12941_v15 = vpop.f32.mrb[39].mxu1  ;;  %13249 = vmatprep.mubr.msk.f32.mxu1 %vm6536_vm3, %v14694_v38  ;;  %v11170_v7 = vld [vmem:[%s15346_s8 + $0x20] sm:$0xff] }
 0x128   :  { %11721 = vperm.xlu1 %13855, %v11170_v7  }
 0x129   :  { %v3052_v18 = vadd.f32 %v3049_v13, %v2976_v12  ;;  %13235 = vmatmul.mubr.msk.f32.vlgmr.msra.gmra.mrb[90].mxu0 %vm6536_vm3, %v14724_v9  ;;  %v11171_v13 = vld [vmem:[%s15346_s8 + $0x28] sm:$0xff] }
 0x12a   :  { %13238 = vmatpush3.msra.mxu0 %v2187_v3  ;;  %v3121_v19 = vpop.f32.mrb[40].mxu0  ;;  %v3194_v20 = vpop.f32.mrb[40].mxu1  ;;  %13239 = vmatprep.mubr.msk.f32.mxu0 %vm6536_vm3, %v14729_v17 }
 0x12b   :  { %v3053_v22 = vadd.f32 %v3052_v18, %v14680_v23  ;;  %v12946_v24 = vpop.f32.mrb[41].mxu0  ;;  %v12951_v25 = vpop.f32.mrb[41].mxu1 }
 0x12c   :  { %11726 = vperm.xlu1 %13855, %v11171_v13  }
 0x12d   :  { %v3054_v26 = vmax.f32 %v3053_v22, 0.0 }
 0x12e   :  { %v3264_v28 = vpop.f32.mrb[42].mxu0  ;;  %v3337_v29 = vpop.f32.mrb[42].mxu1 }
 0x12f   :  { %v3265_v30 = vadd.f32 %v3264_v28, %v3121_v19  ;;  %v3338_v32 = vadd.f32 %v3337_v29, %v3194_v20  ;;  %v12956_v33 = vpop.f32.mrb[43].mxu0  ;;  %v12961_v35 = vpop.f32.mrb[43].mxu1  ;;  %13247 = vmatprep.subr.mxu1 %v3054_v26  ;;  %13262 = vmatprep.subr.mxu0 %v3054_v26  ;;  %v11173_v29 = vld [vmem:[%s15346_s8 + $0x38] sm:$0xff] }
 0x130   :  { %13248 = vmatpush3.msra.mxu1 %v3054_v26  ;;  %11731 = vperm.xlu1 %13855, %v11172_v21  }
 0x131   :  { %v3341_v36 = vadd.f32 %v3338_v32, %v3265_v30  ;;  %13240 = vmatmul.mubr.msk.f32.vlgmr.msra.gmra.mrb[90].mxu0 %vm6536_vm3, %v14740_v31  ;;  %13250 = vmatmul.mubr.msk.f32.vlgmr.msra.gmra.mrb[90].mxu1 %vm6536_vm3, %v14706_v62 }
 0x132   :  { %13252 = vmatprep.subr.mxu1 %v2187_v3  ;;  %13263 = vmatpush3.msra.mxu0 %v3054_v26  ;;  %v3410_v39 = vpop.f32.mrb[44].mxu0  ;;  %v3483_v40 = vpop.f32.mrb[44].mxu1 }
 0x133   :  { %13253 = vmatpush3.msra.mxu1 %v2187_v3  ;;  %v12966_v42 = vpop.f32.mrb[45].mxu0  ;;  %v12971_v43 = vpop.f32.mrb[45].mxu1  ;;  %13254 = vmatprep.mubr.msk.f32.mxu1 %vm6536_vm3, %v14711_v6  ;;  %v3342_v58 = vadd.f32 %v3341_v36, %v14680_v23 }
 0x134   :  { %13257 = vmatprep.subr.mxu1 %v2765_v37  ;;  %13264 = vmatprep.mubr.msk.f32.mxu0 %vm6536_vm3, %v14664_v1  ;;  %v11761_v42 = vld [vmem:[%s15347_s9 + $0x30] sm:$0xff] }
 0x135   :  { %13265 = vmatmul.mubr.msk.f32.vlgmr.msra.gmra.mrb[92].mxu0 %vm6536_vm3, %v14689_v34  ;;  %v3343_v5 = vmax.f32 %v3342_v58, 0.0  ;;  %11736 = vperm.xlu1 %13855, %v11173_v29  }
 0x136   :  { %13269 = vmatprep.mubr.msk.f32.mxu0 %vm6536_vm3, %v14694_v38 }
 0x137   :  { %v3553_v45 = vpop.f32.mrb[46].mxu0  ;;  %v3626_v46 = vpop.f32.mrb[46].mxu1 }
 0x138   :  { %v3554_v47 = vadd.f32 %v3553_v45, %v3410_v39  ;;  %v3627_v48 = vadd.f32 %v3626_v46, %v3483_v40  ;;  %v12976_v49 = vpop.f32.mrb[47].mxu0  ;;  %v12981_v50 = vpop.f32.mrb[47].mxu1 }
 0x139   :  { %13255 = vmatmul.mubr.msk.f32.vlgmr.msra.gmra.mrb[90].mxu1 %vm6536_vm3, %v14724_v9  ;;  %11795 = vperm.xlu1 %13855, %v11761_v42  }
 0x13a   :  { %v3630_v51 = vadd.f32 %v3627_v48, %v3554_v47  ;;  %13258 = vmatpush3.msra.mxu1 %v2765_v37  ;;  %13259 = vmatprep.mubr.msk.f32.mxu1 %vm6536_vm3, %v14729_v17  ;;  %v11833_v48 = vld [vmem:[#allocation2] sm:$0x1] }
 0x13b   :  { %v3699_v53 = vpop.f32.mrb[48].mxu0  ;;  %v3772_v54 = vpop.f32.mrb[48].mxu1 }
 0x13c   :  { %v3631_v55 = vadd.f32 %v3630_v51, %v14680_v23  ;;  %v12986_v56 = vpop.f32.mrb[49].mxu0  ;;  %v12991_v57 = vpop.f32.mrb[49].mxu1 }
 0x13d   :  { %11836 = vperm.xlu1 %13855, %v11833_v48  }
 0x13e   :  { %v3632_v59 = vmax.f32 %v3631_v55, 0.0 }
 0x13f   :  { %v3842_v60 = vpop.f32.mrb[50].mxu0 }
 0x140   :  { %v3843_v61 = vadd.f32 %v3842_v60, %v3699_v53  ;;  %v3915_v63 = vpop.f32.mrb[50].mxu1  ;;  %v12996_v0 = vpop.f32.mrb[51].mxu0  ;;  %13267 = vmatprep.subr.mxu0 %v3632_v59  ;;  %13282 = vmatprep.subr.mxu1 %v3632_v59 }
 0x141   :  { %v3916_v3 = vadd.f32 %v3915_v63, %v3772_v54  ;;  %v13001_v4 = vpop.f32.mrb[51].mxu1  ;;  %13268 = vmatpush3.msra.mxu0 %v3632_v59  ;;  %13260 = vmatmul.mubr.msk.f32.vlgmr.msra.gmra.mrb[90].mxu1 %vm6536_vm3, %v14740_v31 }
 0x142   :  { %13270 = vmatmul.mubr.msk.f32.vlgmr.msra.gmra.mrb[92].mxu0 %vm6536_vm3, %v14706_v62  ;;  %13272 = vmatprep.subr.mxu0 %v2765_v37 }
 0x143   :  { %v3919_v2 = vadd.f32 %v3916_v3, %v3843_v61  ;;  %13283 = vmatpush3.msra.mxu1 %v3632_v59  ;;  %13273 = vmatpush3.msra.mxu0 %v2765_v37 }
 0x144   :  { %v3988_v10 = vpop.f32.mrb[52].mxu0  ;;  %v4061_v11 = vpop.f32.mrb[52].mxu1  ;;  %13277 = vmatprep.subr.mxu0 %v3343_v5  ;;  %13274 = vmatprep.mubr.msk.f32.mxu0 %vm6536_vm3, %v14711_v6 }
 0x145   :  { %v13006_v8 = vpop.f32.mrb[53].mxu0  ;;  %v13011_v12 = vpop.f32.mrb[53].mxu1  ;;  %13284 = vmatprep.mubr.msk.f32.mxu1 %vm6536_vm3, %v14664_v1  ;;  %v3920_v30 = vadd.f32 %v3919_v2, %v14680_v23 }
 0x146   :  { %13285 = vmatmul.mubr.msk.f32.vlgmr.msra.gmra.mrb[92].mxu1 %vm6536_vm3, %v14689_v34 }
 0x147   :  { %13289 = vmatprep.mubr.msk.f32.mxu1 %vm6536_vm3, %v14694_v38  ;;  %v3921_v41 = vmax.f32 %v3920_v30, 0.0 }
 0x148   :  { %v4131_v14 = vpop.f32.mrb[54].mxu0 }
 0x149   :  { %v4132_v15 = vadd.f32 %v4131_v14, %v3988_v10  ;;  %v4204_v16 = vpop.f32.mrb[54].mxu1  ;;  %v13016_v18 = vpop.f32.mrb[55].mxu0 }
 0x14a   :  { %v4205_v19 = vadd.f32 %v4204_v16, %v4061_v11  ;;  %v13021_v20 = vpop.f32.mrb[55].mxu1  ;;  %13275 = vmatmul.mubr.msk.f32.vlgmr.msra.gmra.mrb[92].mxu0 %vm6536_vm3, %v14724_v9 }
 0x14b   :  { %13278 = vmatpush3.msra.mxu0 %v3343_v5  ;;  %13279 = vmatprep.mubr.msk.f32.mxu0 %vm6536_vm3, %v14729_v17 }
 0x14c   :  { %v4208_v22 = vadd.f32 %v4205_v19, %v4132_v15 }
 0x14d   :  { %v4277_v24 = vpop.f32.mrb[56].mxu0  ;;  %v4350_v25 = vpop.f32.mrb[56].mxu1 }
 0x14e   :  { %v4209_v26 = vadd.f32 %v4208_v22, %v14680_v23  ;;  %v13026_v27 = vpop.f32.mrb[57].mxu0  ;;  %v13031_v28 = vpop.f32.mrb[57].mxu1 }
 0x150   :  { %v4210_v32 = vmax.f32 %v4209_v26, 0.0 }
 0x151   :  { %v4420_v33 = vpop.f32.mrb[58].mxu0 }
 0x152   :  { %v4421_v35 = vadd.f32 %v4420_v33, %v4277_v24  ;;  %v4493_v36 = vpop.f32.mrb[58].mxu1  ;;  %v13036_v37 = vpop.f32.mrb[59].mxu0  ;;  %13287 = vmatprep.subr.mxu1 %v4210_v32  ;;  %13302 = vmatprep.subr.mxu0 %v4210_v32 }
 0x153   :  { %v4494_v39 = vadd.f32 %v4493_v36, %v4350_v25  ;;  %v13041_v40 = vpop.f32.mrb[59].mxu1  ;;  %13288 = vmatpush3.msra.mxu1 %v4210_v32  ;;  %13280 = vmatmul.mubr.msk.f32.vlgmr.msra.gmra.mrb[92].mxu0 %vm6536_vm3, %v14740_v31 }
 0x154   :  { %13290 = vmatmul.mubr.msk.f32.vlgmr.msra.gmra.mrb[92].mxu1 %vm6536_vm3, %v14706_v62  ;;  %13292 = vmatprep.subr.mxu1 %v3343_v5 }
 0x155   :  { %v4497_v43 = vadd.f32 %v4494_v39, %v4421_v35  ;;  %13303 = vmatpush3.msra.mxu0 %v4210_v32  ;;  %13293 = vmatpush3.msra.mxu1 %v3343_v5 }
 0x156   :  { %v4566_v44 = vpop.f32.mrb[60].mxu0  ;;  %v4639_v45 = vpop.f32.mrb[60].mxu1  ;;  %13297 = vmatprep.subr.mxu1 %v3921_v41  ;;  %13294 = vmatprep.mubr.msk.f32.mxu1 %vm6536_vm3, %v14711_v6 }
 0x157   :  { %v13046_v46 = vpop.f32.mrb[61].mxu0  ;;  %v13051_v47 = vpop.f32.mrb[61].mxu1  ;;  %13304 = vmatprep.mubr.msk.f32.mxu0 %vm6536_vm3, %v14664_v1  ;;  %v4498_v61 = vadd.f32 %v4497_v43, %v14680_v23 }
 0x158   :  { %13305 = vmatmul.mubr.msk.f32.vlgmr.msra.gmra.mrb[94].mxu0 %vm6536_vm3, %v14689_v34 }
 0x159   :  { %13309 = vmatprep.mubr.msk.f32.mxu0 %vm6536_vm3, %v14694_v38  ;;  %v4499_v10 = vmax.f32 %v4498_v61, 0.0 }
 0x15a   :  { %v4709_v49 = vpop.f32.mrb[62].mxu0 }
 0x15b   :  { %v4710_v50 = vadd.f32 %v4709_v49, %v4566_v44  ;;  %v4782_v51 = vpop.f32.mrb[62].mxu1  ;;  %v13056_v52 = vpop.f32.mrb[63].mxu0 }
 0x15c   :  { %v4783_v53 = vadd.f32 %v4782_v51, %v4639_v45  ;;  %v13061_v54 = vpop.f32.mrb[63].mxu1  ;;  %13295 = vmatmul.mubr.msk.f32.vlgmr.msra.gmra.mrb[92].mxu1 %vm6536_vm3, %v14724_v9 }
 0x15d   :  { %13298 = vmatpush3.msra.mxu1 %v3921_v41  ;;  %13299 = vmatprep.mubr.msk.f32.mxu1 %vm6536_vm3, %v14729_v17 }
 0x15e   :  { %v4786_v55 = vadd.f32 %v4783_v53, %v4710_v50 }
 0x15f   :  { %v4855_v56 = vpop.f32.mrb[64].mxu0  ;;  %v4928_v57 = vpop.f32.mrb[64].mxu1 }
 0x160   :  { %v4787_v58 = vadd.f32 %v4786_v55, %v14680_v23  ;;  %v13066_v59 = vpop.f32.mrb[65].mxu0  ;;  %v13071_v60 = vpop.f32.mrb[65].mxu1 }
 0x162   :  { %v4788_v63 = vmax.f32 %v4787_v58, 0.0 }
 0x163   :  { %v4998_v0 = vpop.f32.mrb[66].mxu0 }
 0x164   :  { %v4999_v3 = vadd.f32 %v4998_v0, %v4855_v56  ;;  %v5071_v4 = vpop.f32.mrb[66].mxu1  ;;  %v13076_v5 = vpop.f32.mrb[67].mxu0  ;;  %13307 = vmatprep.subr.mxu0 %v4788_v63  ;;  %13322 = vmatprep.subr.mxu1 %v4788_v63 }
 0x165   :  { %v5072_v7 = vadd.f32 %v5071_v4, %v4928_v57  ;;  %v13081_v2 = vpop.f32.mrb[67].mxu1  ;;  %13308 = vmatpush3.msra.mxu0 %v4788_v63  ;;  %13300 = vmatmul.mubr.msk.f32.vlgmr.msra.gmra.mrb[92].mxu1 %vm6536_vm3, %v14740_v31 }
 0x166   :  { %13310 = vmatmul.mubr.msk.f32.vlgmr.msra.gmra.mrb[94].mxu0 %vm6536_vm3, %v14706_v62  ;;  %13312 = vmatprep.subr.mxu0 %v3921_v41 }
 0x167   :  { %v5075_v11 = vadd.f32 %v5072_v7, %v4999_v3  ;;  %13323 = vmatpush3.msra.mxu1 %v4788_v63  ;;  %13313 = vmatpush3.msra.mxu0 %v3921_v41 }
 0x168   :  { %v5144_v8 = vpop.f32.mrb[68].mxu0  ;;  %v5217_v12 = vpop.f32.mrb[68].mxu1  ;;  %13317 = vmatprep.subr.mxu0 %v4499_v10  ;;  %13314 = vmatprep.mubr.msk.f32.mxu0 %vm6536_vm3, %v14711_v6 }
 0x169   :  { %v13086_v13 = vpop.f32.mrb[69].mxu0  ;;  %v13091_v14 = vpop.f32.mrb[69].mxu1  ;;  %13324 = vmatprep.mubr.msk.f32.mxu1 %vm6536_vm3, %v14664_v1  ;;  %v5076_v29 = vadd.f32 %v5075_v11, %v14680_v23 }
 0x16a   :  { %13325 = vmatmul.mubr.msk.f32.vlgmr.msra.gmra.mrb[94].mxu1 %vm6536_vm3, %v14689_v34 }
 0x16b   :  { %13329 = vmatprep.mubr.msk.f32.mxu1 %vm6536_vm3, %v14694_v38  ;;  %v5077_v40 = vmax.f32 %v5076_v29, 0.0 }
 0x16c   :  { %v5287_v15 = vpop.f32.mrb[70].mxu0 }
 0x16d   :  { %v5288_v16 = vadd.f32 %v5287_v15, %v5144_v8  ;;  %v5360_v18 = vpop.f32.mrb[70].mxu1  ;;  %v13096_v19 = vpop.f32.mrb[71].mxu0 }
 0x16e   :  { %v5361_v20 = vadd.f32 %v5360_v18, %v5217_v12  ;;  %v13101_v21 = vpop.f32.mrb[71].mxu1  ;;  %13315 = vmatmul.mubr.msk.f32.vlgmr.msra.gmra.mrb[94].mxu0 %vm6536_vm3, %v14724_v9 }
 0x16f   :  { %13318 = vmatpush3.msra.mxu0 %v4499_v10  ;;  %13319 = vmatprep.mubr.msk.f32.mxu0 %vm6536_vm3, %v14729_v17  ;;  %v14925_v21 = vld [vmem:[%s15343_s5 + $0x20] sm:$0xff] }
 0x170   :  { %v5364_v22 = vadd.f32 %v5361_v20, %v5288_v16  ;;  %v5433_v24 = vpop.f32.mrb[72].mxu0 }
 0x171   :  { %v5506_v25 = vpop.f32.mrb[72].mxu1  ;;  %v13106_v26 = vpop.f32.mrb[73].mxu0 }
 0x172   :  { %v5365_v27 = vadd.f32 %v5364_v22, %v14680_v23  ;;  %v13111_v28 = vpop.f32.mrb[73].mxu1 }
 0x174   :  { %v5366_v30 = vmax.f32 %v5365_v27, 0.0  ;;  %v5576_v32 = vpop.f32.mrb[74].mxu0 }
 0x175   :  { %v5577_v33 = vadd.f32 %v5576_v32, %v5433_v24  ;;  %v5649_v35 = vpop.f32.mrb[74].mxu1  ;;  %v13116_v36 = vpop.f32.mrb[75].mxu0 }
 0x176   :  { %v5650_v37 = vadd.f32 %v5649_v35, %v5506_v25  ;;  %v13121_v39 = vpop.f32.mrb[75].mxu1  ;;  %13327 = vmatprep.subr.mxu1 %v5366_v30  ;;  %13342 = vmatprep.subr.mxu0 %v5366_v30  ;;  %v14948_v35 = vld [vmem:[%s15343_s5 + $0x28] sm:$0xff]  ;;  %v14953_v36 = vld [vmem:[%s15343_s5 + $0x30] sm:$0xff] }
 0x177   :  { %13328 = vmatpush3.msra.mxu1 %v5366_v30  ;;  %13320 = vmatmul.mubr.msk.f32.vlgmr.msra.gmra.mrb[94].mxu0 %vm6536_vm3, %v14740_v31  ;;  %v14967_v39 = vld [vmem:[%s15343_s5 + $0x60] sm:$0xff] }
 0x178   :  { %v5653_v41 = vadd.f32 %v5650_v37, %v5577_v33  ;;  %13330 = vmatmul.mubr.msk.f32.vlgmr.msra.gmra.mrb[94].mxu1 %vm6536_vm3, %v14706_v62  ;;  %13332 = vmatprep.subr.mxu1 %v4499_v10  ;;  %v5722_v42 = vpop.f32.mrb[76].mxu0  ;;  %v14962_v37 = vld [vmem:[%s15343_s5 + $0x38] sm:$0xff] }
 0x179   :  { %13343 = vmatpush3.msra.mxu0 %v5366_v30  ;;  %v5795_v43 = vpop.f32.mrb[76].mxu1  ;;  %13333 = vmatpush3.msra.mxu1 %v4499_v10  ;;  %v13126_v44 = vpop.f32.mrb[77].mxu0 }
 0x17a   :  { %v13131_v45 = vpop.f32.mrb[77].mxu1  ;;  %13337 = vmatprep.subr.mxu1 %v5077_v40  ;;  %13334 = vmatprep.mubr.msk.f32.mxu1 %vm6536_vm3, %v14711_v6  ;;  %v5654_v60 = vadd.f32 %v5653_v41, %v14680_v23 }
 0x17b   :  { %13344 = vmatprep.mubr.msk.f32.mxu0 %vm6536_vm3, %v14664_v1 }
 0x17c   :  { %v5865_v46 = vpop.f32.mrb[78].mxu0  ;;  %13345 = vmatmul.mubr.msk.f32.vlgmr.msra.gmra.mrb[96].mxu0 %vm6536_vm3, %v14689_v34  ;;  %v5655_v2 = vmax.f32 %v5654_v60, 0.0  ;;  %v15024_v60 = vld [vmem:[%s15343_s5 + $0x10] sm:$0xff] }
 0x17d   :  { %v5866_v47 = vadd.f32 %v5865_v46, %v5722_v42  ;;  %v5938_v48 = vpop.f32.mrb[78].mxu1  ;;  %v13136_v49 = vpop.f32.mrb[79].mxu0  ;;  %13349 = vmatprep.mubr.msk.f32.mxu0 %vm6536_vm3, %v14694_v38 }
 0x17e   :  { %v5939_v50 = vadd.f32 %v5938_v48, %v5795_v43  ;;  %v13141_v51 = vpop.f32.mrb[79].mxu1 }
 0x180   :  { %v5942_v52 = vadd.f32 %v5939_v50, %v5866_v47  ;;  %13335 = vmatmul.mubr.msk.f32.vlgmr.msra.gmra.mrb[94].mxu1 %vm6536_vm3, %v14724_v9  ;;  %v6011_v53 = vpop.f32.mrb[80].mxu0 }
 0x181   :  { %13338 = vmatpush3.msra.mxu1 %v5077_v40  ;;  %v6084_v54 = vpop.f32.mrb[80].mxu1  ;;  %v13146_v55 = vpop.f32.mrb[81].mxu0  ;;  %13339 = vmatprep.mubr.msk.f32.mxu1 %vm6536_vm3, %v14729_v17 }
 0x182   :  { %v5943_v56 = vadd.f32 %v5942_v52, %v14680_v23  ;;  %v13151_v57 = vpop.f32.mrb[81].mxu1  ;;  %v14987_v55 = vld [vmem:[%s15343_s5 + $0x70] sm:$0xff] }
 0x183   :  { %v15004_v57 = vld [vmem:[%s15343_s5] sm:$0xff] }
 0x184   :  { %v5944_v58 = vmax.f32 %v5943_v56, 0.0  ;;  %v6154_v59 = vpop.f32.mrb[82].mxu0  ;;  %v14998_v56 = vld [vmem:[%s15343_s5 + $0x78] sm:$0xff] }
 0x185   :  { %v6155_v61 = vadd.f32 %v6154_v59, %v6011_v53  ;;  %v6227_v63 = vpop.f32.mrb[82].mxu1  ;;  %v13156_v0 = vpop.f32.mrb[83].mxu0 }
 0x186   :  { %v6228_v3 = vadd.f32 %v6227_v63, %v6084_v54  ;;  %v13161_v4 = vpop.f32.mrb[83].mxu1  ;;  %13347 = vmatprep.subr.mxu0 %v5944_v58  ;;  %13362 = vmatprep.subr.mxu1 %v5944_v58  ;;  %v14982_v54 = vld [vmem:[%s15343_s5 + $0x68] sm:$0xff] }
 0x187   :  { %13348 = vmatpush3.msra.mxu0 %v5944_v58  ;;  %v15036_v4 = vld [vmem:[%s15343_s5 + $0x18] sm:$0xff] }
 0x188   :  { %v6231_v5 = vadd.f32 %v6228_v3, %v6155_v61  ;;  %13340 = vmatmul.mubr.msk.f32.vlgmr.msra.gmra.mrb[94].mxu1 %vm6536_vm3, %v14740_v31  ;;  %13350 = vmatmul.mubr.msk.f32.vlgmr.msra.gmra.mrb[96].mxu0 %vm6536_vm3, %v14706_v62  ;;  %v6300_v7 = vpop.f32.mrb[84].mxu0 }
 0x189   :  { %13352 = vmatprep.subr.mxu0 %v5077_v40  ;;  %13363 = vmatpush3.msra.mxu1 %v5944_v58  ;;  %v6373_v10 = vpop.f32.mrb[84].mxu1  ;;  %v13166_v11 = vpop.f32.mrb[85].mxu0  ;;  %v15017_v58 = vld [vmem:[%s15343_s5 + $0x8] sm:$0xff] }
 0x18a   :  { %13353 = vmatpush3.msra.mxu0 %v5077_v40  ;;  %v13171_v8 = vpop.f32.mrb[85].mxu1  ;;  %13354 = vmatprep.mubr.msk.f32.mxu0 %vm6536_vm3, %v14711_v6  ;;  %v15055_v11 = vld [vmem:[%s15343_s5 + $0x50] sm:$0xff] }
 0x18b   :  { %13357 = vmatprep.subr.mxu0 %v5655_v2  ;;  %13364 = vmatprep.mubr.msk.f32.mxu1 %vm6536_vm3, %v14664_v1  ;;  %v15064_v8 = vld [vmem:[%s15343_s5 + $0x58] sm:$0xff] }
 0x18c   :  { %v6443_v12 = vpop.f32.mrb[86].mxu0  ;;  %13365 = vmatmul.mubr.msk.f32.vlgmr.msra.gmra.mrb[96].mxu1 %vm6536_vm3, %v14689_v34  ;;  %v6232_v34 = vadd.f32 %v6231_v5, %v14680_v23 }
 0x18d   :  { %v6444_v13 = vadd.f32 %v6443_v12, %v6300_v7  ;;  %v6516_v14 = vpop.f32.mrb[86].mxu1  ;;  %v13176_v15 = vpop.f32.mrb[87].mxu0  ;;  %13369 = vmatprep.mubr.msk.f32.mxu1 %vm6536_vm3, %v14694_v38  ;;  %v15041_v7 = vld [vmem:[%s15343_s5 + $0x40] sm:$0xff] }
 0x18e   :  { %v6517_v16 = vadd.f32 %v6516_v14, %v6373_v10  ;;  %v13181_v18 = vpop.f32.mrb[87].mxu1  ;;  %v6233_v38 = vmax.f32 %v6232_v34, 0.0  ;;  %v15050_v10 = vld [vmem:[%s15343_s5 + $0x48] sm:$0xff] }
 0x190   :  { %v6520_v19 = vadd.f32 %v6517_v16, %v6444_v13  ;;  %13355 = vmatmul.mubr.msk.f32.vlgmr.msra.gmra.mrb[96].mxu0 %vm6536_vm3, %v14724_v9 }
 0x191   :  { %13358 = vmatpush3.msra.mxu0 %v5655_v2  ;;  %13359 = vmatprep.mubr.msk.f32.mxu0 %vm6536_vm3, %v14729_v17 }
 0x192   :  { %v6521_v1 = vadd.f32 %v6520_v19, %v14680_v23  ;;  %v14937_v23 = vpop.permute.xlu1 %6870 }
 0x194   :  { %v6522_v20 = vmax.f32 %v6521_v1, 0.0 }
 0x196   :  { %13367 = vmatprep.subr.mxu1 %v6522_v20 }
 0x197   :  { %13368 = vmatpush3.msra.mxu1 %v6522_v20 }
 0x198   :  { %13360 = vmatmul.mubr.msk.f32.vlgmr.msra.gmra.mrb[96].mxu0 %vm6536_vm3, %v14740_v31  ;;  %13370 = vmatmul.mubr.msk.f32.vlgmr.msra.gmra.mrb[96].mxu1 %vm6536_vm3, %v14706_v62 }
 0x199   :  { %13372 = vmatprep.subr.mxu1 %v5655_v2  ;;  %13374 = vmatprep.mubr.msk.f32.mxu1 %vm6536_vm3, %v14711_v6  ;;  %v14939_v6 = vpop.permute.xlu0 %6865 }
 0x19a   :  { %13373 = vmatpush3.msra.mxu1 %v5655_v2  ;;  %13386 = vmatprep.mubr.msk.f32.mxu0 %vm9654_vm4, %v14925_v21 }
 0x19b   :  { %13377 = vmatprep.subr.mxu1 %v6233_v38 }
 0x1a0   :  { %13375 = vmatmul.mubr.msk.f32.vlgmr.msra.gmra.mrb[96].mxu1 %vm6536_vm3, %v14724_v9 }
 0x1a1   :  { %13378 = vmatpush3.msra.mxu1 %v6233_v38  ;;  %13379 = vmatprep.mubr.msk.f32.mxu1 %vm6536_vm3, %v14729_v17 }
 0x1a8   :  { %13380 = vmatmul.mubr.msk.f32.vlgmr.msra.gmra.mrb[96].mxu1 %vm6536_vm3, %v14740_v31 }
 0x1a9   :  { %13426 = vmatprep.mubr.msk.f32.mxu1 %vm9654_vm4, %v14925_v21 }
 0x1e4   :  { %v13201_v62 = vpop.f32.mrb[88].mxu0 }
 0x1e5   :  { %v6852_v22 = vpop.f32.mrb[89].mxu0  ;;  %v6874_v24 = vadd.f32 %v13201_v62, %v14937_v23 }
 0x1e6   :  { %v6873_v9 = vadd.f32 %v14939_v6, %v6852_v22 }
 0x1e7   :  { %v6876_v25 = vmax.f32 %v6874_v24, 0.0 }
 0x1e8   :  { %v6875_v26 = vmax.f32 %v6873_v9, 0.0 }
 0x1ea   :  { %v13630_v27 = vpack.c.bf16 %v6876_v25, %v6875_v26 }
 0x1f5   :  { %v13221_v17 = vpop.f32.mrb[88].mxu1 }
 0x1f6   :  { %v7180_v28 = vadd.f32 %v13221_v17, %v14937_v23  ;;  %v7168_v31 = vpop.f32.mrb[89].mxu1 }
 0x1f7   :  { %v7179_v29 = vadd.f32 %v7168_v31, %v14939_v6 }
 0x1f8   :  { %v7182_v30 = vmax.f32 %v7180_v28, 0.0 }
 0x1f9   :  { %v7181_v32 = vmax.f32 %v7179_v29, 0.0 }
 0x1fb   :  { %v13622_v33 = vpack.c.bf16 %v7182_v30, %v7181_v32 }
 0x1fd   :  { %13623 = vmatprep.subr.bf16.mxu0 %v13622_v33 }
 0x1fe   :  { %13625 = vmatpush3.bf16.msra.mxu0 %v13622_v33 }
 0x201   :  { %13387 = vmatmul.mubr.msk.f32.vlgmr.msra.gmra.mrb[98].mxu0 %vm9654_vm4, %v14948_v35 }
 0x202   :  { %13389 = vmatprep.mubr.msk.f32.mxu0 %vm9654_vm4, %v14953_v36 }
 0x204   :  { %v13241_v40 = vpop.f32.mrb[90].mxu0 }
 0x205   :  { %v7486_v41 = vadd.f32 %v13241_v40, %v14937_v23  ;;  %v7474_v42 = vpop.f32.mrb[91].mxu0  ;;  %13390 = vmatmul.mubr.msk.f32.gmra.mrb[100].mxu0 %vm9654_vm4, %v14962_v37 }
 0x206   :  { %v7485_v43 = vadd.f32 %v7474_v42, %v14939_v6  ;;  %13396 = vmatprep.mubr.msk.f32.mxu0 %vm9654_vm4, %v14967_v39 }
 0x207   :  { %v7488_v44 = vmax.f32 %v7486_v41, 0.0 }
 0x208   :  { %v7487_v45 = vmax.f32 %v7485_v43, 0.0 }
 0x20a   :  { %v14975_v46 = vpack.c.bf16 %v7488_v44, %v7487_v45  ;;  %v15174_v45 = vpop.permute.xlu0 %10054 }
 0x214   :  { %v13261_v47 = vpop.f32.mrb[90].mxu1 }
 0x215   :  { %v7792_v48 = vadd.f32 %v13261_v47, %v14937_v23  ;;  %v7780_v49 = vpop.f32.mrb[91].mxu1 }
 0x216   :  { %v7791_v50 = vadd.f32 %v7780_v49, %v14939_v6 }
 0x217   :  { %v7794_v51 = vmax.f32 %v7792_v48, 0.0 }
 0x218   :  { %v7793_v52 = vmax.f32 %v7791_v50, 0.0 }
 0x21a   :  { %v13626_v53 = vpack.c.bf16 %v7794_v51, %v7793_v52  ;;  %v15180_v52 = vpop.permute.xlu0 %10064 }
 0x21c   :  { %13627 = vmatprep.subr.bf16.mxu0 %v13626_v53  ;;  %13639 = vmatprep.subr.bf16.mxu1 %v13626_v53 }
 0x21d   :  { %13629 = vmatpush3.bf16.msra.mxu0 %v13626_v53  ;;  %13641 = vmatpush3.bf16.msra.mxu1 %v13626_v53 }
 0x21e   :  { %13631 = vmatprep.subr.bf16.mxu0 %v13630_v27 }
 0x220   :  { %13397 = vmatmul.mubr.msk.f32.vlgmr.msra.gmra.mrb[98].mxu0 %vm9654_vm4, %v14982_v54  ;;  %13427 = vmatmul.mubr.msk.f32.vlgmr.msra.gmra.mrb[98].mxu1 %vm9654_vm4, %v14948_v35 }
 0x221   :  { %13633 = vmatpush3.bf16.msra.mxu0 %v13630_v27  ;;  %13399 = vmatprep.mubr.msk.f32.mxu0 %vm9654_vm4, %v14987_v55 }
 0x222   :  { %13635 = vmatprep.subr.bf16.mxu0 %v14975_v46  ;;  %13429 = vmatprep.mubr.msk.f32.mxu1 %vm9654_vm4, %v14953_v36 }
 0x224   :  { %13400 = vmatmul.mubr.msk.f32.gmra.mrb[100].mxu0 %vm9654_vm4, %v14998_v56  ;;  %13430 = vmatmul.mubr.msk.f32.gmra.mrb[100].mxu1 %vm9654_vm4, %v14962_v37 }
 0x225   :  { %13406 = vmatprep.mubr.msk.f32.mxu0 %vm9654_vm4, %v15004_v57  ;;  %13436 = vmatprep.mubr.msk.f32.mxu1 %vm9654_vm4, %v14967_v39 }
 0x226   :  { %v13281_v59 = vpop.f32.mrb[92].mxu0 }
 0x227   :  { %v8098_v61 = vadd.f32 %v13281_v59, %v14937_v23  ;;  %v8086_v63 = vpop.f32.mrb[93].mxu0 }
 0x228   :  { %v8097_v0 = vadd.f32 %v8086_v63, %v14939_v6  ;;  %13407 = vmatmul.mubr.msk.f32.vlgmr.msra.gmra.mrb[98].mxu0 %vm9654_vm4, %v15017_v58 }
 0x229   :  { %v8100_v3 = vmax.f32 %v8098_v61, 0.0  ;;  %13637 = vmatpush3.bf16.msra.mxu0 %v14975_v46  ;;  %13409 = vmatprep.mubr.msk.f32.mxu0 %vm9654_vm4, %v15024_v60 }
 0x22a   :  { %v8099_v5 = vmax.f32 %v8097_v0, 0.0  ;;  %v11132_v0 = vld [vmem:[%s15345_s7 + $0x8] sm:$0xff] }
 0x22c   :  { %v13650_v2 = vpack.c.bf16 %v8100_v3, %v8099_v5  ;;  %13410 = vmatmul.mubr.msk.f32.gmra.mrb[100].mxu0 %vm9654_vm4, %v15036_v4  ;;  %v11133_v3 = vld [vmem:[%s15345_s7 + $0x10] sm:$0xff]  ;;  %v11135_v5 = vld [vmem:[%s15345_s7 + $0x20] sm:$0xff] }
 0x22d   :  { %13416 = vmatprep.mubr.msk.f32.mxu0 %vm9654_vm4, %v15041_v7 }
 0x230   :  { %13417 = vmatmul.mubr.msk.f32.vlgmr.msra.gmra.mrb[98].mxu0 %vm9654_vm4, %v15050_v10 }
 0x231   :  { %13419 = vmatprep.mubr.msk.f32.mxu0 %vm9654_vm4, %v15055_v11 }
 0x234   :  { %13420 = vmatmul.mubr.msk.f32.gmra.mrb[100].mxu0 %vm9654_vm4, %v15064_v8 }
 0x235   :  { %13466 = vmatprep.mubr.msk.f32.mxu0 %vm9654_vm4, %v14925_v21 }
 0x238   :  { %v13301_v12 = vpop.f32.mrb[92].mxu1 }
 0x239   :  { %v8404_v13 = vadd.f32 %v13301_v12, %v14937_v23  ;;  %v8392_v14 = vpop.f32.mrb[93].mxu1 }
 0x23a   :  { %v8403_v15 = vadd.f32 %v8392_v14, %v14939_v6 }
 0x23b   :  { %v8406_v16 = vmax.f32 %v8404_v13, 0.0 }
 0x23c   :  { %v8405_v18 = vmax.f32 %v8403_v15, 0.0 }
 0x23e   :  { %v13642_v19 = vpack.c.bf16 %v8406_v16, %v8405_v18 }
 0x240   :  { %13643 = vmatprep.subr.bf16.mxu1 %v13642_v19  ;;  %13655 = vmatprep.subr.bf16.mxu0 %v13642_v19 }
 0x241   :  { %13645 = vmatpush3.bf16.msra.mxu1 %v13642_v19  ;;  %13657 = vmatpush3.bf16.msra.mxu0 %v13642_v19 }
 0x242   :  { %13647 = vmatprep.subr.bf16.mxu1 %v14975_v46 }
 0x244   :  { %13437 = vmatmul.mubr.msk.f32.vlgmr.msra.gmra.mrb[98].mxu1 %vm9654_vm4, %v14982_v54  ;;  %13467 = vmatmul.mubr.msk.f32.vlgmr.msra.gmra.mrb[102].mxu0 %vm9654_vm4, %v14948_v35 }
 0x245   :  { %13649 = vmatpush3.bf16.msra.mxu1 %v14975_v46  ;;  %13439 = vmatprep.mubr.msk.f32.mxu1 %vm9654_vm4, %v14987_v55  ;;  %v15176_v46 = vpop.permute.xlu1 %10049 }
 0x246   :  { %13651 = vmatprep.subr.bf16.mxu1 %v13650_v2  ;;  %13469 = vmatprep.mubr.msk.f32.mxu0 %vm9654_vm4, %v14953_v36 }
 0x248   :  { %13440 = vmatmul.mubr.msk.f32.gmra.mrb[100].mxu1 %vm9654_vm4, %v14998_v56  ;;  %13470 = vmatmul.mubr.msk.f32.gmra.mrb[104].mxu0 %vm9654_vm4, %v14962_v37 }
 0x249   :  { %13446 = vmatprep.mubr.msk.f32.mxu1 %vm9654_vm4, %v15004_v57  ;;  %13476 = vmatprep.mubr.msk.f32.mxu0 %vm9654_vm4, %v14967_v39 }
 0x24a   :  { %v13321_v1 = vpop.f32.mrb[94].mxu0 }
 0x24b   :  { %v8710_v20 = vadd.f32 %v13321_v1, %v14937_v23  ;;  %v8698_v34 = vpop.f32.mrb[95].mxu0 }
 0x24c   :  { %v8709_v38 = vadd.f32 %v8698_v34, %v14939_v6  ;;  %13447 = vmatmul.mubr.msk.f32.vlgmr.msra.gmra.mrb[98].mxu1 %vm9654_vm4, %v15017_v58 }
 0x24d   :  { %v8712_v62 = vmax.f32 %v8710_v20, 0.0  ;;  %13653 = vmatpush3.bf16.msra.mxu1 %v13650_v2  ;;  %13449 = vmatprep.mubr.msk.f32.mxu1 %vm9654_vm4, %v15024_v60 }
 0x24e   :  { %v8711_v22 = vmax.f32 %v8709_v38, 0.0 }
 0x250   :  { %v13666_v24 = vpack.c.bf16 %v8712_v62, %v8711_v22  ;;  %13450 = vmatmul.mubr.msk.f32.gmra.mrb[100].mxu1 %vm9654_vm4, %v15036_v4 }
 0x251   :  { %13456 = vmatprep.mubr.msk.f32.mxu1 %vm9654_vm4, %v15041_v7 }
 0x254   :  { %13457 = vmatmul.mubr.msk.f32.vlgmr.msra.gmra.mrb[98].mxu1 %vm9654_vm4, %v15050_v10 }
 0x255   :  { %13459 = vmatprep.mubr.msk.f32.mxu1 %vm9654_vm4, %v15055_v11 }
 0x258   :  { %13460 = vmatmul.mubr.msk.f32.gmra.mrb[100].mxu1 %vm9654_vm4, %v15064_v8 }
 0x259   :  { %13506 = vmatprep.mubr.msk.f32.mxu1 %vm9654_vm4, %v14925_v21 }
 0x25b   :  { %v13341_v9 = vpop.f32.mrb[94].mxu1 }
 0x25c   :  { %v9016_v25 = vadd.f32 %v13341_v9, %v14937_v23  ;;  %v9004_v26 = vpop.f32.mrb[95].mxu1  ;;  %v12248_v9 = vld [vmem:[%s15345_s7 + $0x50] sm:$0xff] }
 0x25d   :  { %v9015_v27 = vadd.f32 %v9004_v26, %v14939_v6  ;;  %v12250_v26 = vld [vmem:[%s15345_s7 + $0x60] sm:$0xff] }
 0x25e   :  { %v9018_v17 = vmax.f32 %v9016_v25, 0.0  ;;  %v12249_v25 = vld [vmem:[%s15345_s7 + $0x58] sm:$0xff] }
 0x25f   :  { %v9017_v28 = vmax.f32 %v9015_v27, 0.0  ;;  %v12251_v27 = vld [vmem:[%s15345_s7 + $0x68] sm:$0xff] }
 0x261   :  { %v13658_v31 = vpack.c.bf16 %v9018_v17, %v9017_v28  ;;  %v12252_v17 = vld [vmem:[%s15345_s7 + $0x70] sm:$0xff]  ;;  %v12253_v28 = vld [vmem:[%s15345_s7 + $0x78] sm:$0xff] }
 0x263   :  { %13659 = vmatprep.subr.bf16.mxu0 %v13658_v31  ;;  %13671 = vmatprep.subr.bf16.mxu1 %v13658_v31 }
 0x264   :  { %13661 = vmatpush3.bf16.msra.mxu0 %v13658_v31  ;;  %13673 = vmatpush3.bf16.msra.mxu1 %v13658_v31  ;;  %v12262_v31 = vld [vmem:[%s15345_s7 + $0xc0] sm:$0xff] }
 0x265   :  { %13663 = vmatprep.subr.bf16.mxu0 %v13650_v2 }
 0x267   :  { %13477 = vmatmul.mubr.msk.f32.vlgmr.msra.gmra.mrb[102].mxu0 %vm9654_vm4, %v14982_v54  ;;  %13507 = vmatmul.mubr.msk.f32.vlgmr.msra.gmra.mrb[102].mxu1 %vm9654_vm4, %v14948_v35 }
 0x268   :  { %13665 = vmatpush3.bf16.msra.mxu0 %v13650_v2  ;;  %13479 = vmatprep.mubr.msk.f32.mxu0 %vm9654_vm4, %v14987_v55  ;;  %v11137_v2 = vld [vmem:[%s15345_s7 + $0x30] sm:$0xff] }
 0x269   :  { %13667 = vmatprep.subr.bf16.mxu0 %v13666_v24  ;;  %13509 = vmatprep.mubr.msk.f32.mxu1 %vm9654_vm4, %v14953_v36 }
 0x26b   :  { %v13361_v21 = vpop.f32.mrb[96].mxu0  ;;  %13480 = vmatmul.mubr.msk.f32.gmra.mrb[104].mxu0 %vm9654_vm4, %v14998_v56  ;;  %13510 = vmatmul.mubr.msk.f32.gmra.mrb[104].mxu1 %vm9654_vm4, %v14962_v37 }
 0x26c   :  { %v9322_v29 = vadd.f32 %v13361_v21, %v14937_v23  ;;  %v9310_v30 = vpop.f32.mrb[97].mxu0  ;;  %13486 = vmatprep.mubr.msk.f32.mxu0 %vm9654_vm4, %v15004_v57  ;;  %13516 = vmatprep.mubr.msk.f32.mxu1 %vm9654_vm4, %v14967_v39 }
 0x26d   :  { %v9321_v32 = vadd.f32 %v9310_v30, %v14939_v6 }
 0x26e   :  { %v9324_v33 = vmax.f32 %v9322_v29, 0.0 }
 0x26f   :  { %v9323_v35 = vmax.f32 %v9321_v32, 0.0  ;;  %13487 = vmatmul.mubr.msk.f32.vlgmr.msra.gmra.mrb[102].mxu0 %vm9654_vm4, %v15017_v58 }
 0x270   :  { %13669 = vmatpush3.bf16.msra.mxu0 %v13666_v24  ;;  %13489 = vmatprep.mubr.msk.f32.mxu0 %vm9654_vm4, %v15024_v60 }
 0x271   :  { %v13682_v36 = vpack.c.bf16 %v9324_v33, %v9323_v35 }
 0x273   :  { %13490 = vmatmul.mubr.msk.f32.gmra.mrb[104].mxu0 %vm9654_vm4, %v15036_v4 }
 0x274   :  { %13496 = vmatprep.mubr.msk.f32.mxu0 %vm9654_vm4, %v15041_v7 }
 0x277   :  { %13497 = vmatmul.mubr.msk.f32.vlgmr.msra.gmra.mrb[102].mxu0 %vm9654_vm4, %v15050_v10 }
 0x278   :  { %13499 = vmatprep.mubr.msk.f32.mxu0 %vm9654_vm4, %v15055_v11 }
 0x27b   :  { %v13381_v37 = vpop.f32.mrb[96].mxu1  ;;  %13500 = vmatmul.mubr.msk.f32.gmra.mrb[104].mxu0 %vm9654_vm4, %v15064_v8 }
 0x27c   :  { %v9628_v39 = vadd.f32 %v13381_v37, %v14937_v23  ;;  %v9616_v40 = vpop.f32.mrb[97].mxu1  ;;  %v11131_v23 = vld [vmem:[%s15345_s7] sm:$0xff] }
 0x27d   :  { %v9627_v41 = vadd.f32 %v9616_v40, %v14939_v6  ;;  %13590 = vmatprep.mubr.msk.f32.mxu0 %vm11174_vm5, %v11131_v23  ;;  %v12246_v6 = vld [vmem:[%s15345_s7 + $0x40] sm:$0xff]  ;;  %v12255_v23 = vld [vmem:[%s15345_s7 + $0x88] sm:$0xff] }
 0x27e   :  { %v9630_v42 = vmax.f32 %v9628_v39, 0.0 }
 0x27f   :  { %v9629_v43 = vmax.f32 %v9627_v41, 0.0 }
 0x281   :  { %v13674_v44 = vpack.c.bf16 %v9630_v42, %v9629_v43 }
 0x283   :  { %13675 = vmatprep.subr.bf16.mxu1 %v13674_v44 }
 0x284   :  { %13677 = vmatpush3.bf16.msra.mxu1 %v13674_v44 }
 0x285   :  { %13679 = vmatprep.subr.bf16.mxu1 %v13666_v24 }
 0x287   :  { %13517 = vmatmul.mubr.msk.f32.vlgmr.msra.gmra.mrb[102].mxu1 %vm9654_vm4, %v14982_v54 }
 0x288   :  { %13681 = vmatpush3.bf16.msra.mxu1 %v13666_v24  ;;  %13519 = vmatprep.mubr.msk.f32.mxu1 %vm9654_vm4, %v14987_v55  ;;  %v15182_v55 = vpop.permute.xlu1 %10059  ;;  %v12247_v24 = vld [vmem:[%s15345_s7 + $0x48] sm:$0xff] }
 0x289   :  { %13683 = vmatprep.subr.bf16.mxu1 %v13682_v36 }
 0x28b   :  { %13520 = vmatmul.mubr.msk.f32.gmra.mrb[104].mxu1 %vm9654_vm4, %v14998_v56 }
 0x28c   :  { %13526 = vmatprep.mubr.msk.f32.mxu1 %vm9654_vm4, %v15004_v57 }
 0x28f   :  { %13527 = vmatmul.mubr.msk.f32.vlgmr.msra.gmra.mrb[102].mxu1 %vm9654_vm4, %v15017_v58 }
 0x290   :  { %13685 = vmatpush3.bf16.msra.mxu1 %v13682_v36  ;;  %13529 = vmatprep.mubr.msk.f32.mxu1 %vm9654_vm4, %v15024_v60 }
 0x293   :  { %13530 = vmatmul.mubr.msk.f32.gmra.mrb[104].mxu1 %vm9654_vm4, %v15036_v4  ;;  %v11134_v4 = vld [vmem:[%s15345_s7 + $0x18] sm:$0xff] }
 0x294   :  { %13536 = vmatprep.mubr.msk.f32.mxu1 %vm9654_vm4, %v15041_v7  ;;  %v11136_v7 = vld [vmem:[%s15345_s7 + $0x28] sm:$0xff] }
 0x297   :  { %13537 = vmatmul.mubr.msk.f32.vlgmr.msra.gmra.mrb[102].mxu1 %vm9654_vm4, %v15050_v10  ;;  %v11138_v10 = vld [vmem:[%s15345_s7 + $0x38] sm:$0xff] }
 0x298   :  { %13539 = vmatprep.mubr.msk.f32.mxu1 %vm9654_vm4, %v15055_v11  ;;  %v12254_v11 = vld [vmem:[%s15345_s7 + $0x80] sm:$0xff] }
 0x29b   :  { %13540 = vmatmul.mubr.msk.f32.gmra.mrb[104].mxu1 %vm9654_vm4, %v15064_v8 }
 0x29c   :  { %13550 = vmatprep.mubr.msk.f32.mxu1 %vm11174_vm5, %v12246_v6  ;;  %v12256_v6 = vld [vmem:[%s15345_s7 + $0x90] sm:$0xff] }
 0x303   :  { %v13418_v47 = vpop.f32.mrb[98].mxu0 }
 0x304   :  { %v10068_v48 = vadd.f32 %v13418_v47, %v15174_v45  ;;  %v10024_v49 = vpop.f32.mrb[99].mxu0  ;;  %v12257_v47 = vld [vmem:[%s15345_s7 + $0x98] sm:$0xff] }
 0x305   :  { %v10067_v50 = vadd.f32 %v15176_v46, %v10024_v49  ;;  %v12259_v49 = vld [vmem:[%s15345_s7 + $0xa8] sm:$0xff] }
 0x306   :  { %v10072_v51 = vmax.f32 %v10068_v48, 0.0  ;;  %v12258_v48 = vld [vmem:[%s15345_s7 + $0xa0] sm:$0xff] }
 0x307   :  { %v10071_v53 = vmax.f32 %v10067_v50, 0.0  ;;  %v13421_v54 = vpop.f32.mrb[100].mxu0  ;;  %v12260_v50 = vld [vmem:[%s15345_s7 + $0xb0] sm:$0xff] }
 0x308   :  { %v10070_v56 = vadd.f32 %v13421_v54, %v15180_v52  ;;  %v10034_v57 = vpop.f32.mrb[101].mxu0 }
 0x309   :  { %v13702_v58 = vpack.c.bf16 %v10072_v51, %v10071_v53  ;;  %v10069_v59 = vadd.f32 %v15182_v55, %v10034_v57  ;;  %v12261_v51 = vld [vmem:[%s15345_s7 + $0xb8] sm:$0xff] }
 0x30a   :  { %v10074_v60 = vmax.f32 %v10070_v56, 0.0 }
 0x30b   :  { %v10073_v61 = vmax.f32 %v10069_v59, 0.0  ;;  %13703 = vmatprep.subr.bf16.mxu0 %v13702_v58 }
 0x30c   :  { %13705 = vmatpush3.bf16.msra.mxu0 %v13702_v58 }
 0x30d   :  { %v13706_v63 = vpack.c.bf16 %v10074_v60, %v10073_v61 }
 0x30f   :  { %13707 = vmatprep.subr.bf16.mxu0 %v13706_v63 }
 0x310   :  { %13709 = vmatpush3.bf16.msra.mxu0 %v13706_v63 }
 0x313   :  { %13591 = vmatmul.mubr.msk.f32.vlgmr.msra.gmra.mrb[106].mxu0 %vm11174_vm5, %v11132_v0 }
 0x314   :  { %13593 = vmatprep.mubr.msk.f32.mxu0 %vm11174_vm5, %v11133_v3 }
 0x317   :  { %13594 = vmatmul.mubr.msk.f32.gmra.mrb[108].mxu0 %vm11174_vm5, %v11134_v4 }
 0x318   :  { %13596 = vmatprep.mubr.msk.f32.mxu0 %vm11174_vm5, %v11135_v5 }
 0x31b   :  { %13597 = vmatmul.mubr.msk.f32.gmra.mrb[110].mxu0 %vm11174_vm5, %v11136_v7 }
 0x31c   :  { %13599 = vmatprep.mubr.msk.f32.mxu0 %vm11174_vm5, %v11137_v2  ;;  %v12267_v2 = vld [vmem:[%s15345_s7 + $0xe8] sm:$0xff] }
 0x31f   :  { %13600 = vmatmul.mubr.msk.f32.gmra.mrb[112].mxu0 %vm11174_vm5, %v11138_v10  ;;  %v12268_v10 = vld [vmem:[%s15345_s7 + $0xf0] sm:$0xff] }
 0x320   :  { %13610 = vmatprep.mubr.msk.f32.mxu0 %vm11174_vm5, %v12254_v11  ;;  %v12269_v11 = vld [vmem:[%s15345_s7 + $0xf8] sm:$0xff] }
 0x327   :  { %v13458_v8 = vpop.f32.mrb[98].mxu1 }
 0x328   :  { %v10420_v12 = vadd.f32 %v13458_v8, %v15174_v45  ;;  %v10396_v13 = vpop.f32.mrb[99].mxu1 }
 0x329   :  { %v10419_v14 = vadd.f32 %v10396_v13, %v15176_v46 }
 0x32a   :  { %v10424_v15 = vmax.f32 %v10420_v12, 0.0 }
 0x32b   :  { %v10423_v16 = vmax.f32 %v10419_v14, 0.0  ;;  %v13461_v18 = vpop.f32.mrb[100].mxu1 }
 0x32c   :  { %v10422_v19 = vadd.f32 %v13461_v18, %v15180_v52  ;;  %v10406_v1 = vpop.f32.mrb[101].mxu1  ;;  %v11702_v18 = vpop.permute.xlu1 %11701 }
 0x32d   :  { %v13686_v20 = vpack.c.bf16 %v10424_v15, %v10423_v16  ;;  %v10421_v34 = vadd.f32 %v10406_v1, %v15182_v55  ;;  %v11707_v15 = vpop.permute.xlu0 %11706 }
 0x32e   :  { %v10426_v38 = vmax.f32 %v10422_v19, 0.0 }
 0x32f   :  { %v10425_v62 = vmax.f32 %v10421_v34, 0.0  ;;  %13687 = vmatprep.subr.bf16.mxu1 %v13686_v20 }
 0x330   :  { %13689 = vmatpush3.bf16.msra.mxu1 %v13686_v20 }
 0x331   :  { %v13690_v22 = vpack.c.bf16 %v10426_v38, %v10425_v62  ;;  %v11717_v34 = vpop.permute.xlu0 %11716  ;;  %v11712_v38 = vpop.permute.xlu1 %11711 }
 0x333   :  { %13691 = vmatprep.subr.bf16.mxu1 %v13690_v22 }
 0x334   :  { %13693 = vmatpush3.bf16.msra.mxu1 %v13690_v22 }
 0x335   :  { %v11771_v62 = vpop.permute.xlu0 %11770  ;;  %v11766_v22 = vpop.permute.xlu1 %11765 }
 0x337   :  { %13551 = vmatmul.mubr.msk.f32.vlgmr.msra.gmra.mrb[106].mxu1 %vm11174_vm5, %v12247_v24 }
 0x338   :  { %13553 = vmatprep.mubr.msk.f32.mxu1 %vm11174_vm5, %v12248_v9 }
 0x339   :  { %v11776_v24 = vpop.permute.xlu0 %11775  ;;  %v11722_v9 = vpop.permute.xlu1 %11721 }
 0x33b   :  { %13554 = vmatmul.mubr.msk.f32.gmra.mrb[108].mxu1 %vm11174_vm5, %v12249_v25 }
 0x33c   :  { %13556 = vmatprep.mubr.msk.f32.mxu1 %vm11174_vm5, %v12250_v26 }
 0x33d   :  { %v11781_v25 = vpop.permute.xlu0 %11780 }
 0x33f   :  { %13557 = vmatmul.mubr.msk.f32.gmra.mrb[110].mxu1 %vm11174_vm5, %v12251_v27  ;;  %v11727_v27 = vpop.permute.xlu1 %11726 }
 0x340   :  { %13559 = vmatprep.mubr.msk.f32.mxu1 %vm11174_vm5, %v12252_v17 }
 0x343   :  { %13560 = vmatmul.mubr.msk.f32.gmra.mrb[112].mxu1 %vm11174_vm5, %v12253_v28 }
 0x344   :  { %13570 = vmatprep.mubr.msk.f32.mxu1 %vm11174_vm5, %v12262_v31 }
 0x34a   :  { %v13498_v21 = vpop.f32.mrb[102].mxu0 }
 0x34b   :  { %v10772_v29 = vadd.f32 %v13498_v21, %v15174_v45  ;;  %v10748_v30 = vpop.f32.mrb[103].mxu0 }
 0x34c   :  { %v10771_v32 = vadd.f32 %v10748_v30, %v15176_v46 }
 0x34d   :  { %v10776_v33 = vmax.f32 %v10772_v29, 0.0 }
 0x34e   :  { %v10775_v35 = vmax.f32 %v10771_v32, 0.0  ;;  %v13501_v36 = vpop.f32.mrb[104].mxu0 }
 0x34f   :  { %v10774_v37 = vadd.f32 %v13501_v36, %v15180_v52  ;;  %v10758_v39 = vpop.f32.mrb[105].mxu0  ;;  %v11786_v36 = vpop.permute.xlu0 %11785 }
 0x350   :  { %v13710_v40 = vpack.c.bf16 %v10776_v33, %v10775_v35  ;;  %v10773_v41 = vadd.f32 %v10758_v39, %v15182_v55 }
 0x351   :  { %v10778_v42 = vmax.f32 %v10774_v37, 0.0 }
 0x352   :  { %v10777_v43 = vmax.f32 %v10773_v41, 0.0  ;;  %13711 = vmatprep.subr.bf16.mxu0 %v13710_v40 }
 0x353   :  { %13713 = vmatpush3.bf16.msra.mxu0 %v13710_v40  ;;  %v11732_v40 = vpop.permute.xlu1 %11731 }
 0x354   :  { %v13714_v44 = vpack.c.bf16 %v10778_v42, %v10777_v43 }
 0x356   :  { %13715 = vmatprep.subr.bf16.mxu0 %v13714_v44 }
 0x357   :  { %13717 = vmatpush3.bf16.msra.mxu0 %v13714_v44 }
 0x35a   :  { %13611 = vmatmul.mubr.msk.f32.vlgmr.msra.gmra.mrb[106].mxu0 %vm11174_vm5, %v12255_v23 }
 0x35b   :  { %13613 = vmatprep.mubr.msk.f32.mxu0 %vm11174_vm5, %v12256_v6 }
 0x35e   :  { %13614 = vmatmul.mubr.msk.f32.gmra.mrb[108].mxu0 %vm11174_vm5, %v12257_v47 }
 0x35f   :  { %13616 = vmatprep.mubr.msk.f32.mxu0 %vm11174_vm5, %v12258_v48 }
 0x362   :  { %13617 = vmatmul.mubr.msk.f32.gmra.mrb[110].mxu0 %vm11174_vm5, %v12259_v49 }
 0x363   :  { %13619 = vmatprep.mubr.msk.f32.mxu0 %vm11174_vm5, %v12260_v50 }
 0x366   :  { %13620 = vmatmul.mubr.msk.f32.gmra.mrb[112].mxu0 %vm11174_vm5, %v12261_v51 }
 0x36a   :  { %v13538_v53 = vpop.f32.mrb[102].mxu1 }
 0x36b   :  { %v11124_v54 = vadd.f32 %v13538_v53, %v15174_v45  ;;  %v11100_v56 = vpop.f32.mrb[103].mxu1  ;;  %v12263_v45 = vld [vmem:[%s15345_s7 + $0xc8] sm:$0xff] }
 0x36c   :  { %v11123_v57 = vadd.f32 %v11100_v56, %v15176_v46  ;;  %v12264_v46 = vld [vmem:[%s15345_s7 + $0xd0] sm:$0xff] }
 0x36d   :  { %v11128_v58 = vmax.f32 %v11124_v54, 0.0 }
 0x36e   :  { %v11127_v59 = vmax.f32 %v11123_v57, 0.0  ;;  %v13541_v60 = vpop.f32.mrb[104].mxu1  ;;  %v11791_v57 = vpop.permute.xlu0 %11790 }
 0x36f   :  { %v11126_v61 = vadd.f32 %v13541_v60, %v15180_v52  ;;  %v11110_v63 = vpop.f32.mrb[105].mxu1  ;;  %v12265_v52 = vld [vmem:[%s15345_s7 + $0xd8] sm:$0xff] }
 0x370   :  { %v13694_v0 = vpack.c.bf16 %v11128_v58, %v11127_v59  ;;  %v11125_v3 = vadd.f32 %v11110_v63, %v15182_v55  ;;  %v12266_v55 = vld [vmem:[%s15345_s7 + $0xe0] sm:$0xff]  ;;  %v11737_v63 = vpop.permute.xlu1 %11736  ;;  %s13883_s7 = smov [#allocation3]  }
 0x371   :  { %v11130_v4 = vmax.f32 %v11126_v61, 0.0  ;;  %s11852_s28 = sshll.u32 %s13883_s7, 4  ;;  %s11853_s28 = int_to_ptr.vmem [resolvable:$true] %s11852_s28 }
 0x372   :  { %v11129_v5 = vmax.f32 %v11125_v3, 0.0  ;;  %13695 = vmatprep.subr.bf16.mxu1 %v13694_v0  ;;  %s13856_s29 = scalar_lea.vmem %s11853_s28, 16  ;;  %s13860_s30 = scalar_lea.vmem %s11853_s28, 32 }
 0x373   :  { %13697 = vmatpush3.bf16.msra.mxu1 %v13694_v0  ;;  %p13857_p0 = scmp.ne.s32.totalorder %s11853_s28, %s13856_s29  ;;  %p13861_p1 = scmp.lt.s32.totalorder %s11853_s28, %s11853_s28 }
 0x374   :  { %v13698_v7 = vpack.c.bf16 %v11130_v4, %v11129_v5  ;;  %p13862_p2 = scmp.lt.s32.totalorder %s13860_s30, %s13856_s29 }
 0x376   :  { %13699 = vmatprep.subr.bf16.mxu1 %v13698_v7  ;;  %p13863_p3 = por %p13862_p2, %p13861_p1 }
 0x377   :  { %13701 = vmatpush3.bf16.msra.mxu1 %v13698_v7 }
 0x378   :  { %p13864_p4 = pnand %p13863_p3, %p13857_p0 }
 0x37a   :  { %13571 = vmatmul.mubr.msk.f32.vlgmr.msra.gmra.mrb[106].mxu1 %vm11174_vm5, %v12263_v45 }
 0x37b   :  { %13573 = vmatprep.mubr.msk.f32.mxu1 %vm11174_vm5, %v12264_v46 }
 0x37e   :  { %13574 = vmatmul.mubr.msk.f32.gmra.mrb[108].mxu1 %vm11174_vm5, %v12265_v52 }
 0x37f   :  { %13576 = vmatprep.mubr.msk.f32.mxu1 %vm11174_vm5, %v12266_v55 }
 0x382   :  { %13577 = vmatmul.mubr.msk.f32.gmra.mrb[110].mxu1 %vm11174_vm5, %v12267_v2 }
 0x383   :  { %13579 = vmatprep.mubr.msk.f32.mxu1 %vm11174_vm5, %v12268_v10 }
 0x386   :  { %13580 = vmatmul.mubr.msk.f32.gmra.mrb[112].mxu1 %vm11174_vm5, %v12269_v11 }
 0x42d   :  { %v13612_v8 = vpop.f32.mrb[106].mxu0 }
 0x42e   :  { %v11652_v12 = vpop.f32.mrb[107].mxu0 }
 0x431   :  { %v13615_v13 = vpop.f32.mrb[108].mxu0 }
 0x432   :  { %v11662_v14 = vpop.f32.mrb[109].mxu0 }
 0x435   :  { %v13618_v16 = vpop.f32.mrb[110].mxu0 }
 0x436   :  { %v11672_v19 = vpop.f32.mrb[111].mxu0 }
 0x439   :  { %v13621_v1 = vpop.f32.mrb[112].mxu0 }
 0x43a   :  { %v11682_v20 = vpop.f32.mrb[113].mxu0 }
 0x44d   :  { %v13572_v26 = vpop.f32.mrb[106].mxu1 }
 0x44e   :  { %v11658_v17 = vadd.f32 %v13612_v8, %v13572_v26  ;;  %v11394_v28 = vpop.f32.mrb[107].mxu1 }
 0x44f   :  { %v11653_v31 = vadd.f32 %v11652_v12, %v11394_v28 }
 0x450   :  { %v11740_v21 = vadd.f32 %v11707_v15, %v11658_v17  ;;  %v11801_v15 = vpop.permute.xlu0 %11800 }
 0x451   :  { %v11739_v29 = vadd.f32 %v11702_v18, %v11653_v31  ;;  %v13575_v30 = vpop.f32.mrb[108].mxu1 }
 0x452   :  { %v11748_v32 = vmax.f32 %v11740_v21, 0.0  ;;  %v11668_v33 = vadd.f32 %v13615_v13, %v13575_v30  ;;  %v11404_v35 = vpop.f32.mrb[109].mxu1 }
 0x453   :  { %v11747_v37 = vmax.f32 %v11739_v29, 0.0  ;;  %v11663_v39 = vadd.f32 %v11662_v14, %v11404_v35 }
 0x454   :  { %v11804_v41 = vmul.f32 %v11771_v62, %v11748_v32  ;;  %v11742_v42 = vadd.f32 %v11717_v34, %v11668_v33 }
 0x455   :  { %v11803_v43 = vmul.f32 %v11766_v22, %v11747_v37  ;;  %v11741_v44 = vadd.f32 %v11712_v38, %v11663_v39  ;;  %v13578_v23 = vpop.f32.mrb[110].mxu1 }
 0x456   :  { %v11813_v6 = vsel %vm11811_vm6, %v11804_v41, 0.0  ;;  %v11750_v47 = vmax.f32 %v11742_v42, 0.0  ;;  %v11678_v48 = vadd.f32 %v13618_v16, %v13578_v23  ;;  %v11414_v49 = vpop.f32.mrb[111].mxu1  ;;  %v11796_v16 = vpop.permute.xlu1 %11795 }
 0x457   :  { %v11812_v50 = vsel %vm11811_vm6, %v11803_v43, 0.0  ;;  %v11749_v51 = vmax.f32 %v11741_v44, 0.0  ;;  %v11673_v53 = vadd.f32 %v11672_v19, %v11414_v49 }
 0x458   :  { %v11814_v54 = vadd.f32 %v11813_v6, %v11812_v50  ;;  %v11744_v56 = vadd.f32 %v11727_v27, %v11678_v48  ;;  %v11806_v58 = vmul.f32 %v11781_v25, %v11750_v47 }
 0x459   :  { %v11805_v59 = vmul.f32 %v11776_v24, %v11749_v51  ;;  %v11743_v60 = vadd.f32 %v11722_v9, %v11673_v53  ;;  %v13581_v61 = vpop.f32.mrb[112].mxu1  ;;  %v11839_v24 = vlaneseq }
 0x45a   :  { %v11752_v0 = vmax.f32 %v11744_v56, 0.0  ;;  %v11688_v3 = vadd.f32 %v13621_v1, %v13581_v61  ;;  %v11424_v4 = vpop.f32.mrb[113].mxu1  ;;  %v11817_v55 = vsel %vm11811_vm6, %v11806_v58, 0.0  ;;  %v11837_v21 = vpop.permute.xlu1 %11836 }
 0x45b   :  { %v11815_v5 = vsel %vm11811_vm6, %v11805_v59, 0.0  ;;  %v11751_v7 = vmax.f32 %v11743_v60, 0.0  ;;  %v11683_v45 = vadd.f32 %v11682_v20, %v11424_v4  ;;  %v11840_v26 = vshrl.u32 %v11839_v24, 7 }
 0x45c   :  { %v11816_v46 = vadd.f32 %v11815_v5, %v11814_v54  ;;  %v11746_v52 = vadd.f32 %v11737_v63, %v11688_v3  ;;  %v11808_v2 = vmul.f32 %v11791_v57, %v11752_v0 }
 0x45d   :  { %v11807_v10 = vmul.f32 %v11786_v36, %v11751_v7  ;;  %v11745_v11 = vadd.f32 %v11732_v40, %v11683_v45  ;;  %v11841_v28 = vsub.s32 0, %v11840_v26 }
 0x45e   :  { %v11818_v8 = vadd.f32 %v11817_v55, %v11816_v46  ;;  %v11754_v12 = vmax.f32 %v11746_v52, 0.0  ;;  %v11821_v19 = vsel %vm11811_vm6, %v11808_v2, 0.0 }
 0x45f   :  { %v11819_v13 = vsel %vm11811_vm6, %v11807_v10, 0.0  ;;  %v11753_v14 = vmax.f32 %v11745_v11, 0.0  ;;  %v11842_v30 = vrot.slane %v11837_v21, %v11841_v28 }
 0x460   :  { %v11820_v18 = vadd.f32 %v11819_v13, %v11818_v8  ;;  %v11810_v1 = vmul.f32 %v11801_v15, %v11754_v12 }
 0x461   :  { %v11809_v34 = vmul.f32 %v11796_v16, %v11753_v14 }
 0x462   :  { %v11822_v20 = vadd.f32 %v11821_v19, %v11820_v18  ;;  %v11825_v22 = vsel %vm11811_vm6, %v11810_v1, 0.0 }
 0x463   :  { %v11823_v38 = vsel %vm11811_vm6, %v11809_v34, 0.0 }
 0x464   :  { %v11824_v62 = vadd.f32 %v11823_v38, %v11822_v20 }
 0x466   :  { %v11826_v9 = vadd.f32 %v11825_v22, %v11824_v62 }
 0x468   :  { %v11827_v25 = vrot.slane %v11826_v9, 4 }
 0x46a   :  { %v11828_v27 = vadd.f32 %v11827_v25, %v11826_v9 }
 0x46c   :  { %v11829_v17 = vrot.slane %v11828_v27, 2 }
 0x46e   :  { %v11830_v31 = vadd.f32 %v11829_v17, %v11828_v27 }
 0x470   :  { %v11831_v29 = vrot.slane %v11830_v31, 1 }
 0x472   :  { %v11832_v32 = vadd.f32 %v11831_v29, %v11830_v31 }
 0x474   :  { %v11843_v33 = vadd.f32 %v11842_v30, %v11832_v32 }
 0x476   :  { %11845 = vst.msk [vmem:[#allocation3] sm:$0x1] %vm11844_vm7, %v11843_v33 }
 0x477   :  { %13867 = shalt.err (!%p13864_p4)
}
 0x478   :  { %s13868_s13 = scalar_lea.hbm %s15349_s11, 16 }
 0x479   :  { %p13869_p5 = scmp.ne.s32.totalorder %s15349_s11, %s13868_s13  ;;  %p13872_p6 = scmp.lt.u32.totalorder %s13868_s13, %s15349_s11 }
 0x47b   :  { %p13874_p7 = pnand %p13872_p6, %p13869_p5 }
 0x47d   :  { %13877 = shalt.err (!%p13874_p7)
}
 0x47e   :  { %11855 = dma.vmem_to_hbm [thread:$0]  %s11853_s28, 16, %s15349_s11, [#allocation4]  }
 0x47f   :  { %13878 = dma.done.wait [#allocation4], 16  }
 0x480   :  { %13879 = vsyncadd [#allocation4], 4294967280 }
 0x481   :  { %11859 = vsyncpa [#allocation4], 1 }

</bundles_post_ra>
